<compile_context>
chip_gen: v7x
topology: tpu7x:2x2x1
jax: 0.10.0
libtpu: 0.0.40
codegen_flags: <defaults>
</compile_context>

<pallas_src>
from functools import partial

import jax
import jax.numpy as jnp
from jax.experimental import pallas as pl
from jax.experimental.pallas import tpu as pltpu

_INV_SQRT2 = 0.7071067811865476


def _mlp_kernel(D, H, W, Ch, PAD, x_ref, w1_ref, b1_ref, wp_ref, bdw_ref,
                w2_ref, b2_ref, o_ref, hp_ref):
    # x_ref : (D*H, W*Cin)   bf16   packed per-batch input block (lanes = w*Cin + ci)
    # w1_ref: (W*Cin, W*Ch)  bf16   block-diagonal fc1 weights (kron(I_W, w1))
    # b1_ref: (1, W*Ch)      f32
    # wp_ref: (27, W*Ch)     f32    per-(kd,kh,kw) tiled depthwise weights * w-boundary mask
    # bdw_ref:(1, W*Ch)      f32
    # w2_ref: (W*Ch, W*Cout) bf16   block-diagonal fc2 weights
    # b2_ref: (1, W*Cout)    f32
    # o_ref : (D*H, W*Cout)         lane-dense output block
    # hp_ref: (PAD + D*H + PAD, W*Ch) f32  flat zero-padded hidden scratch
    f32 = jnp.float32
    DH = D * H
    WCh = W * Ch

    # ---- fc1: 1x1x1 conv == one lane-dense bf16 MXU matmul (f32 accumulate) ----
    h2 = jnp.dot(x_ref[...], w1_ref[...], preferred_element_type=f32)
    h2 = h2 + b1_ref[...]                                   # (DH, WCh) f32

    # ---- flat zero-padded hidden scratch (rows = d*H + h, lanes = w*Ch + c) ----
    # Pads are re-zeroed every grid step so the kernel stays correct if the
    # batch axis is sharded across cores (each step is self-contained).
    hp_ref[0:PAD, :] = jnp.zeros((PAD, WCh), f32)
    hp_ref[PAD + DH:PAD + DH + PAD, :] = jnp.zeros((PAD, WCh), f32)
    hp_ref[PAD:PAD + DH, :] = h2

    # Row masks for the h (height) boundary; the d boundary lands in the zero pad.
    hpos = jax.lax.broadcasted_iota(jnp.int32, (DH, 1), 0) % H
    mask_lo = (hpos >= 1).astype(f32)          # valid output rows when reading h-1 (kh=0)
    mask_hi = (hpos <= H - 2).astype(f32)      # valid output rows when reading h+1 (kh=2)

    # ---- depthwise 3x3x3 conv: 9 row-window reads + 18 lane rolls + 27 FMAs ----
    # (all VPU/XLU; the w-boundary masks are pre-folded into wp_ref)
    acc = jnp.broadcast_to(bdw_ref[...], (DH, WCh)).astype(f32)
    for kd in range(3):
        for kh in range(3):
            s = (kd - 1) * H + (kh - 1)
            slab = hp_ref[PAD + s:PAD + s + DH, :]          # shifted hidden window
            if kh == 0:
                slab = slab * mask_lo
            elif kh == 2:
                slab = slab * mask_hi
            for kw in range(3):
                if kw == 1:
                    tap = slab
                else:
                    tap = pltpu.roll(slab, shift=((1 - kw) * Ch) % WCh, axis=1)
                kidx = (kd * 3 + kh) * 3 + kw
                acc = acc + tap * wp_ref[kidx:kidx + 1, :]

    # ---- exact (erf) GELU, matching torch.nn.GELU() default ----
    g = 0.5 * acc * (1.0 + jax.lax.erf(acc * _INV_SQRT2))

    # ---- fc2: 1x1x1 conv, bf16 MXU matmul, lane-dense output store ----
    out = jnp.dot(g.astype(jnp.bfloat16), w2_ref[...],
                  preferred_element_type=f32) + b2_ref[...]
    o_ref[...] = out.astype(o_ref.dtype)


def pack_params(params, W):
    """Pre-pack Conv3d params into the lane-packed (w, channel) layout.

    Done ONCE at model load time (cached), not per forward call.
    """
    w1, b1, wdw, bdw, w2, b2 = params
    Cin, Ch = w1.shape
    f32 = jnp.float32
    eye_w = jnp.eye(W, dtype=f32)

    w1p = jnp.kron(eye_w, w1.astype(f32)).astype(jnp.bfloat16)   # (W*Cin, W*Ch)
    w2p = jnp.kron(eye_w, w2.astype(f32)).astype(jnp.bfloat16)   # (W*Ch, W*Cout)
    b1p = jnp.tile(b1.astype(f32), (1, W))                       # (1, W*Ch)
    bdwp = jnp.tile(bdw.astype(f32), (1, W))                     # (1, W*Ch)
    b2p = jnp.tile(b2.astype(f32), (1, W))                       # (1, W*Cout)

    # Per-tap depthwise weights on the packed lane axis (lane = w*Ch + c):
    #   wp[(kd*3+kh)*3+kw, w*Ch + c] = wdw[kd, kh, kw, c] * valid(kw, w)
    # where valid() zeroes the w==0 (kw=0) / w==W-1 (kw=2) boundary lanes that
    # would otherwise receive wrapped data from the lane roll.
    w_idx = jnp.arange(W)
    lane_valid = jnp.stack([(w_idx >= 1),
                            jnp.ones((W,), bool),
                            (w_idx <= W - 2)], axis=0).astype(f32)   # (3, W)
    lane_valid = jnp.repeat(lane_valid, Ch, axis=1)                  # (3, W*Ch)
    wtiled = jnp.tile(wdw.astype(f32), (1, 1, 1, W))                 # (3,3,3, W*Ch)
    wp = (wtiled * lane_valid[None, None, :, :]).reshape(27, W * Ch)
    return w1p, b1p, wp, bdwp, w2p, b2p


def mlp_pallas(x_ncdhw, packed):
    w1p, b1p, wp, bdwp, w2p, b2p = packed
    N, Cin, D, H, W = x_ncdhw.shape
    Ch = w1p.shape[1] // W
    Cout = w2p.shape[1] // W
    WCin, WCh, WCout = W * Cin, W * Ch, W * Cout
    DH = D * H
    PAD = ((H + 1 + 7) // 8) * 8          # >= H+1 halo rows, 8-row aligned interior

    # NCDHW -> (N, D*H, W*Cin): channels-last with (w, c) packed on the lane axis.
    x2 = jnp.transpose(x_ncdhw, (0, 2, 3, 4, 1)).reshape(N, DH, WCin)
    x2 = x2.astype(jnp.bfloat16)          # bf16 MXU operand, halves input DMA bytes

    kernel = partial(_mlp_kernel, D, H, W, Ch, PAD)

    out2 = pl.pallas_call(
        kernel,
        out_shape=jax.ShapeDtypeStruct((N, DH, WCout), x_ncdhw.dtype),
        grid_spec=pltpu.PrefetchScalarGridSpec(
            num_scalar_prefetch=0,
            grid=(N,),
            in_specs=[
                pl.BlockSpec((None, DH, WCin), lambda n: (n, 0, 0)),
                pl.BlockSpec((WCin, WCh), lambda n: (0, 0)),
                pl.BlockSpec((1, WCh), lambda n: (0, 0)),
                pl.BlockSpec((27, WCh), lambda n: (0, 0)),
                pl.BlockSpec((1, WCh), lambda n: (0, 0)),
                pl.BlockSpec((WCh, WCout), lambda n: (0, 0)),
                pl.BlockSpec((1, WCout), lambda n: (0, 0)),
            ],
            out_specs=pl.BlockSpec((None, DH, WCout), lambda n: (n, 0, 0)),
            scratch_shapes=[pltpu.VMEM((DH + 2 * PAD, WCh), jnp.float32)],
        ),
        compiler_params=pltpu.CompilerParams(
            dimension_semantics=("parallel",),
            vmem_limit_bytes=32 * 1024 * 1024,   # tiny footprint; safe on v5e/v6e/v7x
        ),
    )(x2, w1p, b1p, wp, bdwp, w2p, b2p)

    out = out2.reshape(N, D, H, W, Cout)
    return jnp.transpose(out, (0, 4, 1, 2, 3))  # -> NCDHW


def mlp_reference(x_ncdhw, params):
    """Pure-JAX f32 reference matching the PyTorch forward semantics."""
    w1, b1, wdw, bdw, w2, b2 = params
    hi = jax.lax.Precision.HIGHEST
    x = jnp.transpose(x_ncdhw, (0, 2, 3, 4, 1)).astype(jnp.float32)
    N, D, H, W, Cin = x.shape
    h = jnp.einsum('ndhwc,ce->ndhwe', x, w1, precision=hi) + b1[0]
    hp = jnp.pad(h, ((0, 0), (1, 1), (1, 1), (1, 1), (0, 0)))
    acc = jnp.zeros_like(h)
    for kd in range(3):
        for kh in range(3):
            for kw in range(3):
                acc = acc + hp[:, kd:kd + D, kh:kh + H, kw:kw + W, :] * wdw[kd, kh, kw]
    acc = acc + bdw[0]
    g = jax.nn.gelu(acc, approximate=False)
    out = jnp.einsum('ndhwe,ef->ndhwf', g, w2, precision=hi) + b2[0]
    return jnp.transpose(out, (0, 4, 1, 2, 3))


def init_params(key, in_features, hidden_features, out_features):
    k1, k2, k3, k4, k5, k6 = jax.random.split(key, 6)
    # Equivalent layouts of the PyTorch Conv3d weights:
    #   fc1.weight (Ch,Cin,1,1,1) -> w1 (Cin,Ch); dwconv.weight (Ch,1,3,3,3) -> wdw (3,3,3,Ch)
    w1 = jax.random.normal(k1, (in_features, hidden_features), jnp.float32) / jnp.sqrt(in_features)
    b1 = jax.random.normal(k2, (1, hidden_features), jnp.float32) * 0.1
    wdw = jax.random.normal(k3, (3, 3, 3, hidden_features), jnp.float32) / jnp.sqrt(27.0)
    bdw = jax.random.normal(k4, (1, hidden_features), jnp.float32) * 0.1
    w2 = jax.random.normal(k5, (hidden_features, out_features), jnp.float32) / jnp.sqrt(hidden_features)
    b2 = jax.random.normal(k6, (1, out_features), jnp.float32) * 0.1
    return (w1, b1, wdw, bdw, w2, b2)


if __name__ == "__main__":
    # Shapes chosen so W*Cin = W*Cout = 128 and W*Ch = 256 -> every block lane-dense.
    N, Cin, D, H, W = 2, 16, 8, 8, 8
    hidden = 32
    Cout = Cin  # out_features defaults to in_features in the module

    key = jax.random.PRNGKey(0)
    kx, kp = jax.random.split(key)
    x = jax.random.normal(kx, (N, Cin, D, H, W), jnp.float32)   # NCDHW like PyTorch
    params = init_params(kp, Cin, hidden, Cout)

    # Make x and the fc weights bf16-representable so the f32 reference matches the
    # bf16-MXU kernel tightly (both still accumulate in f32; dwconv/GELU are f32).
    rb = lambda a: a.astype(jnp.bfloat16).astype(jnp.float32)
    x = rb(x)
    w1, b1, wdw, bdw, w2, b2 = params
    params = (rb(w1), b1, wdw, bdw, rb(w2), b2)

    packed = pack_params(params, W)   # done once at "load time", not per call
    fwd = jax.jit(lambda xx: mlp_pallas(xx, packed))

    out = jax.block_until_ready(fwd(x))
    ref = jax.block_until_ready(mlp_reference(x, params))

    assert out.shape == (N, Cout, D, H, W), out.shape
    max_err = float(jnp.max(jnp.abs(out - ref)))
    assert jnp.allclose(out, ref, rtol=2e-2, atol=2e-2), max_err
    print("KERNEL_OK")
</pallas_src>

<mosaic_0001>
module attributes {stable_mosaic.version = 11 : i64} {
  func.func @_mlp_kernel(%arg0: i32, %arg1: memref<1x64x128xbf16, #tpu.memory_space<vmem>>, %arg2: memref<128x256xbf16, #tpu.memory_space<vmem>>, %arg3: memref<1x256xf32, #tpu.memory_space<vmem>>, %arg4: memref<27x256xf32, #tpu.memory_space<vmem>>, %arg5: memref<1x256xf32, #tpu.memory_space<vmem>>, %arg6: memref<256x128xbf16, #tpu.memory_space<vmem>>, %arg7: memref<1x128xf32, #tpu.memory_space<vmem>>, %arg8: memref<1x64x128xf32, #tpu.memory_space<vmem>>, %arg9: memref<96x256xf32, #tpu.memory_space<vmem>>) attributes {dimension_semantics = [#tpu.dimension_semantics<parallel>], iteration_bounds = array<i64: 2>, scalar_prefetch = 0 : i64, scratch_operands = 1 : i64, tpu.core_type = #tpu.core_type<tc>, window_params = [{transform_indices = @transform_0, window_bounds = array<i64: 1, 64, 128>}, {pipeline_mode = #tpu.pipeline_mode<synchronous>, transform_indices = @transform_1, window_bounds = array<i64: 128, 256>}, {pipeline_mode = #tpu.pipeline_mode<synchronous>, transform_indices = @transform_2, window_bounds = array<i64: 1, 256>}, {pipeline_mode = #tpu.pipeline_mode<synchronous>, transform_indices = @transform_3, window_bounds = array<i64: 27, 256>}, {pipeline_mode = #tpu.pipeline_mode<synchronous>, transform_indices = @transform_4, window_bounds = array<i64: 1, 256>}, {pipeline_mode = #tpu.pipeline_mode<synchronous>, transform_indices = @transform_5, window_bounds = array<i64: 256, 128>}, {pipeline_mode = #tpu.pipeline_mode<synchronous>, transform_indices = @transform_6, window_bounds = array<i64: 1, 128>}, {transform_indices = @transform_7, window_bounds = array<i64: 1, 64, 128>}]} {
    %c0 = arith.constant 0 : index
    %c0_0 = arith.constant 0 : index
    %c0_1 = arith.constant 0 : index
    %0 = vector.load %arg1[%c0, %c0_0, %c0_1] : memref<1x64x128xbf16, #tpu.memory_space<vmem>>, vector<1x64x128xbf16>
    %1 = vector.shape_cast %0 : vector<1x64x128xbf16> to vector<64x128xbf16>
    %c0_2 = arith.constant 0 : index
    %c0_3 = arith.constant 0 : index
    %2 = vector.load %arg2[%c0_2, %c0_3] : memref<128x256xbf16, #tpu.memory_space<vmem>>, vector<128x256xbf16>
    %cst = arith.constant dense<0.000000e+00> : vector<64x256xf32>
    %3 = tpu.matmul %1, %2, %cst {dimension_numbers = #tpu.dot_dimension_numbers<[1], [0], [0], [1], [0, 0, 1, 1], [], []>} : vector<64x128xbf16>, vector<128x256xbf16>, vector<64x256xf32> -> vector<64x256xf32>
    %c0_4 = arith.constant 0 : index
    %c0_5 = arith.constant 0 : index
    %4 = vector.load %arg3[%c0_4, %c0_5] : memref<1x256xf32, #tpu.memory_space<vmem>>, vector<1x256xf32>
    %5 = vector.broadcast %4 : vector<1x256xf32> to vector<64x256xf32>
    %6 = arith.addf %3, %5 : vector<64x256xf32>
    %cst_6 = arith.constant 0.000000e+00 : f32
    %7 = vector.broadcast %cst_6 : f32 to vector<16x256xf32>
    %c0_7 = arith.constant 0 : index
    %c0_8 = arith.constant 0 : index
    %8 = vector.load %arg9[%c0_7, %c0_8] : memref<96x256xf32, #tpu.memory_space<vmem>>, vector<16x256xf32>
    tpu.vector_store %arg9[%c0_7, %c0_8], %7 {strides = array<i32>} : memref<96x256xf32, #tpu.memory_space<vmem>>, vector<16x256xf32>,
    %cst_9 = arith.constant 0.000000e+00 : f32
    %9 = vector.broadcast %cst_9 : f32 to vector<16x256xf32>
    %c80 = arith.constant 80 : index
    %c0_10 = arith.constant 0 : index
    %10 = vector.load %arg9[%c80, %c0_10] : memref<96x256xf32, #tpu.memory_space<vmem>>, vector<16x256xf32>
    tpu.vector_store %arg9[%c80, %c0_10], %9 {strides = array<i32>} : memref<96x256xf32, #tpu.memory_space<vmem>>, vector<16x256xf32>,
    %c16 = arith.constant 16 : index
    %c0_11 = arith.constant 0 : index
    %11 = vector.load %arg9[%c16, %c0_11] : memref<96x256xf32, #tpu.memory_space<vmem>>, vector<64x256xf32>
    tpu.vector_store %arg9[%c16, %c0_11], %6 {strides = array<i32>} : memref<96x256xf32, #tpu.memory_space<vmem>>, vector<64x256xf32>,
    %12 = tpu.iota {dimensions = array<i32: 0>} : vector<64x1xi32>
    %c8_i32 = arith.constant 8 : i32
    %c0_i32 = arith.constant 0 : i32
    %13 = arith.cmpi eq, %c8_i32, %c0_i32 : i32
    %c1_i32 = arith.constant 1 : i32
    %14 = arith.select %13, %c1_i32, %c8_i32 : i32
    %15 = vector.broadcast %14 : i32 to vector<64x1xi32>
    %16 = arith.remsi %12, %15 : vector<64x1xi32>
    %c0_i32_12 = arith.constant 0 : i32
    %17 = vector.broadcast %c0_i32_12 : i32 to vector<64x1xi32>
    %18 = arith.cmpi ne, %16, %17 : vector<64x1xi32>
    %c0_i32_13 = arith.constant 0 : i32
    %19 = vector.broadcast %c0_i32_13 : i32 to vector<64x1xi32>
    %20 = arith.cmpi slt, %16, %19 : vector<64x1xi32>
    %c0_i32_14 = arith.constant 0 : i32
    %21 = arith.cmpi slt, %14, %c0_i32_14 : i32
    %22 = vector.broadcast %21 : i1 to vector<64x1xi1>
    %23 = vector.broadcast %22 : vector<64x1xi1> to vector<64x1xi1>
    %24 = arith.xori %20, %23 : vector<64x1xi1>
    %25 = arith.andi %24, %18 : vector<64x1xi1>
    %26 = vector.broadcast %14 : i32 to vector<64x1xi32>
    %27 = arith.addi %16, %26 : vector<64x1xi32>
    %28 = arith.select %25, %27, %16 : vector<64x1xi1>, vector<64x1xi32>
    %c1_i32_15 = arith.constant 1 : i32
    %29 = vector.broadcast %c1_i32_15 : i32 to vector<64x1xi32>
    %30 = arith.cmpi sge, %28, %29 : vector<64x1xi32>
    %31 = arith.extui %30 : vector<64x1xi1> to vector<64x1xi32>
    %32 = arith.sitofp %31 : vector<64x1xi32> to vector<64x1xf32>
    %c6_i32 = arith.constant 6 : i32
    %33 = vector.broadcast %c6_i32 : i32 to vector<64x1xi32>
    %34 = arith.cmpi sle, %28, %33 : vector<64x1xi32>
    %35 = arith.extui %34 : vector<64x1xi1> to vector<64x1xi32>
    %36 = arith.sitofp %35 : vector<64x1xi32> to vector<64x1xf32>
    %c0_16 = arith.constant 0 : index
    %c0_17 = arith.constant 0 : index
    %37 = vector.load %arg5[%c0_16, %c0_17] : memref<1x256xf32, #tpu.memory_space<vmem>>, vector<1x256xf32>
    %38 = vector.shape_cast %37 : vector<1x256xf32> to vector<1x256xf32>
    %39 = vector.broadcast %38 : vector<1x256xf32> to vector<64x256xf32>
    %c7 = arith.constant 7 : index
    %c0_18 = arith.constant 0 : index
    %40 = vector.load %arg9[%c7, %c0_18] : memref<96x256xf32, #tpu.memory_space<vmem>>, vector<64x256xf32>
    %41 = vector.broadcast %32 : vector<64x1xf32> to vector<64x256xf32>
    %42 = arith.mulf %40, %41 : vector<64x256xf32>
    %c32_i32 = arith.constant 32 : i32
    %43 = tpu.dynamic_rotate %42 by %c32_i32 dim 1 : vector<64x256xf32>, i32 -> vector<64x256xf32>
    %c0_19 = arith.constant 0 : index
    %c0_20 = arith.constant 0 : index
    %44 = vector.load %arg4[%c0_19, %c0_20] : memref<27x256xf32, #tpu.memory_space<vmem>>, vector<1x256xf32>
    %45 = vector.broadcast %44 : vector<1x256xf32> to vector<64x256xf32>
    %46 = arith.mulf %43, %45 : vector<64x256xf32>
    %47 = arith.addf %39, %46 : vector<64x256xf32>
    %c1 = arith.constant 1 : index
    %c0_21 = arith.constant 0 : index
    %48 = vector.load %arg4[%c1, %c0_21] : memref<27x256xf32, #tpu.memory_space<vmem>>, vector<1x256xf32>
    %49 = vector.broadcast %48 : vector<1x256xf32> to vector<64x256xf32>
    %50 = arith.mulf %42, %49 : vector<64x256xf32>
    %51 = arith.addf %47, %50 : vector<64x256xf32>
    %c224_i32 = arith.constant 224 : i32
    %52 = tpu.dynamic_rotate %42 by %c224_i32 dim 1 : vector<64x256xf32>, i32 -> vector<64x256xf32>
    %c2 = arith.constant 2 : index
    %c0_22 = arith.constant 0 : index
    %53 = vector.load %arg4[%c2, %c0_22] : memref<27x256xf32, #tpu.memory_space<vmem>>, vector<1x256xf32>
    %54 = vector.broadcast %53 : vector<1x256xf32> to vector<64x256xf32>
    %55 = arith.mulf %52, %54 : vector<64x256xf32>
    %56 = arith.addf %51, %55 : vector<64x256xf32>
    %c8 = arith.constant 8 : index
    %c0_23 = arith.constant 0 : index
    %57 = vector.load %arg9[%c8, %c0_23] : memref<96x256xf32, #tpu.memory_space<vmem>>, vector<64x256xf32>
    %c32_i32_24 = arith.constant 32 : i32
    %58 = tpu.dynamic_rotate %57 by %c32_i32_24 dim 1 : vector<64x256xf32>, i32 -> vector<64x256xf32>
    %c3 = arith.constant 3 : index
    %c0_25 = arith.constant 0 : index
    %59 = vector.load %arg4[%c3, %c0_25] : memref<27x256xf32, #tpu.memory_space<vmem>>, vector<1x256xf32>
    %60 = vector.broadcast %59 : vector<1x256xf32> to vector<64x256xf32>
    %61 = arith.mulf %58, %60 : vector<64x256xf32>
    %62 = arith.addf %56, %61 : vector<64x256xf32>
    %c4 = arith.constant 4 : index
    %c0_26 = arith.constant 0 : index
    %63 = vector.load %arg4[%c4, %c0_26] : memref<27x256xf32, #tpu.memory_space<vmem>>, vector<1x256xf32>
    %64 = vector.broadcast %63 : vector<1x256xf32> to vector<64x256xf32>
    %65 = arith.mulf %57, %64 : vector<64x256xf32>
    %66 = arith.addf %62, %65 : vector<64x256xf32>
    %c224_i32_27 = arith.constant 224 : i32
    %67 = tpu.dynamic_rotate %57 by %c224_i32_27 dim 1 : vector<64x256xf32>, i32 -> vector<64x256xf32>
    %c5 = arith.constant 5 : index
    %c0_28 = arith.constant 0 : index
    %68 = vector.load %arg4[%c5, %c0_28] : memref<27x256xf32, #tpu.memory_space<vmem>>, vector<1x256xf32>
    %69 = vector.broadcast %68 : vector<1x256xf32> to vector<64x256xf32>
    %70 = arith.mulf %67, %69 : vector<64x256xf32>
    %71 = arith.addf %66, %70 : vector<64x256xf32>
    %c9 = arith.constant 9 : index
    %c0_29 = arith.constant 0 : index
    %72 = vector.load %arg9[%c9, %c0_29] : memref<96x256xf32, #tpu.memory_space<vmem>>, vector<64x256xf32>
    %73 = vector.broadcast %36 : vector<64x1xf32> to vector<64x256xf32>
    %74 = arith.mulf %72, %73 : vector<64x256xf32>
    %c32_i32_30 = arith.constant 32 : i32
    %75 = tpu.dynamic_rotate %74 by %c32_i32_30 dim 1 : vector<64x256xf32>, i32 -> vector<64x256xf32>
    %c6 = arith.constant 6 : index
    %c0_31 = arith.constant 0 : index
    %76 = vector.load %arg4[%c6, %c0_31] : memref<27x256xf32, #tpu.memory_space<vmem>>, vector<1x256xf32>
    %77 = vector.broadcast %76 : vector<1x256xf32> to vector<64x256xf32>
    %78 = arith.mulf %75, %77 : vector<64x256xf32>
    %79 = arith.addf %71, %78 : vector<64x256xf32>
    %c7_32 = arith.constant 7 : index
    %c0_33 = arith.constant 0 : index
    %80 = vector.load %arg4[%c7_32, %c0_33] : memref<27x256xf32, #tpu.memory_space<vmem>>, vector<1x256xf32>
    %81 = vector.broadcast %80 : vector<1x256xf32> to vector<64x256xf32>
    %82 = arith.mulf %74, %81 : vector<64x256xf32>
    %83 = arith.addf %79, %82 : vector<64x256xf32>
    %c224_i32_34 = arith.constant 224 : i32
    %84 = tpu.dynamic_rotate %74 by %c224_i32_34 dim 1 : vector<64x256xf32>, i32 -> vector<64x256xf32>
    %c8_35 = arith.constant 8 : index
    %c0_36 = arith.constant 0 : index
    %85 = vector.load %arg4[%c8_35, %c0_36] : memref<27x256xf32, #tpu.memory_space<vmem>>, vector<1x256xf32>
    %86 = vector.broadcast %85 : vector<1x256xf32> to vector<64x256xf32>
    %87 = arith.mulf %84, %86 : vector<64x256xf32>
    %88 = arith.addf %83, %87 : vector<64x256xf32>
    %c15 = arith.constant 15 : index
    %c0_37 = arith.constant 0 : index
    %89 = vector.load %arg9[%c15, %c0_37] : memref<96x256xf32, #tpu.memory_space<vmem>>, vector<64x256xf32>
    %90 = vector.broadcast %32 : vector<64x1xf32> to vector<64x256xf32>
    %91 = arith.mulf %89, %90 : vector<64x256xf32>
    %c32_i32_38 = arith.constant 32 : i32
    %92 = tpu.dynamic_rotate %91 by %c32_i32_38 dim 1 : vector<64x256xf32>, i32 -> vector<64x256xf32>
    %c9_39 = arith.constant 9 : index
    %c0_40 = arith.constant 0 : index
    %93 = vector.load %arg4[%c9_39, %c0_40] : memref<27x256xf32, #tpu.memory_space<vmem>>, vector<1x256xf32>
    %94 = vector.broadcast %93 : vector<1x256xf32> to vector<64x256xf32>
    %95 = arith.mulf %92, %94 : vector<64x256xf32>
    %96 = arith.addf %88, %95 : vector<64x256xf32>
    %c10 = arith.constant 10 : index
    %c0_41 = arith.constant 0 : index
    %97 = vector.load %arg4[%c10, %c0_41] : memref<27x256xf32, #tpu.memory_space<vmem>>, vector<1x256xf32>
    %98 = vector.broadcast %97 : vector<1x256xf32> to vector<64x256xf32>
    %99 = arith.mulf %91, %98 : vector<64x256xf32>
    %100 = arith.addf %96, %99 : vector<64x256xf32>
    %c224_i32_42 = arith.constant 224 : i32
    %101 = tpu.dynamic_rotate %91 by %c224_i32_42 dim 1 : vector<64x256xf32>, i32 -> vector<64x256xf32>
    %c11 = arith.constant 11 : index
    %c0_43 = arith.constant 0 : index
    %102 = vector.load %arg4[%c11, %c0_43] : memref<27x256xf32, #tpu.memory_space<vmem>>, vector<1x256xf32>
    %103 = vector.broadcast %102 : vector<1x256xf32> to vector<64x256xf32>
    %104 = arith.mulf %101, %103 : vector<64x256xf32>
    %105 = arith.addf %100, %104 : vector<64x256xf32>
    %c16_44 = arith.constant 16 : index
    %c0_45 = arith.constant 0 : index
    %106 = vector.load %arg9[%c16_44, %c0_45] : memref<96x256xf32, #tpu.memory_space<vmem>>, vector<64x256xf32>
    %c32_i32_46 = arith.constant 32 : i32
    %107 = tpu.dynamic_rotate %106 by %c32_i32_46 dim 1 : vector<64x256xf32>, i32 -> vector<64x256xf32>
    %c12 = arith.constant 12 : index
    %c0_47 = arith.constant 0 : index
    %108 = vector.load %arg4[%c12, %c0_47] : memref<27x256xf32, #tpu.memory_space<vmem>>, vector<1x256xf32>
    %109 = vector.broadcast %108 : vector<1x256xf32> to vector<64x256xf32>
    %110 = arith.mulf %107, %109 : vector<64x256xf32>
    %111 = arith.addf %105, %110 : vector<64x256xf32>
    %c13 = arith.constant 13 : index
    %c0_48 = arith.constant 0 : index
    %112 = vector.load %arg4[%c13, %c0_48] : memref<27x256xf32, #tpu.memory_space<vmem>>, vector<1x256xf32>
    %113 = vector.broadcast %112 : vector<1x256xf32> to vector<64x256xf32>
    %114 = arith.mulf %106, %113 : vector<64x256xf32>
    %115 = arith.addf %111, %114 : vector<64x256xf32>
    %c224_i32_49 = arith.constant 224 : i32
    %116 = tpu.dynamic_rotate %106 by %c224_i32_49 dim 1 : vector<64x256xf32>, i32 -> vector<64x256xf32>
    %c14 = arith.constant 14 : index
    %c0_50 = arith.constant 0 : index
    %117 = vector.load %arg4[%c14, %c0_50] : memref<27x256xf32, #tpu.memory_space<vmem>>, vector<1x256xf32>
    %118 = vector.broadcast %117 : vector<1x256xf32> to vector<64x256xf32>
    %119 = arith.mulf %116, %118 : vector<64x256xf32>
    %120 = arith.addf %115, %119 : vector<64x256xf32>
    %c17 = arith.constant 17 : index
    %c0_51 = arith.constant 0 : index
    %121 = vector.load %arg9[%c17, %c0_51] : memref<96x256xf32, #tpu.memory_space<vmem>>, vector<64x256xf32>
    %122 = vector.broadcast %36 : vector<64x1xf32> to vector<64x256xf32>
    %123 = arith.mulf %121, %122 : vector<64x256xf32>
    %c32_i32_52 = arith.constant 32 : i32
    %124 = tpu.dynamic_rotate %123 by %c32_i32_52 dim 1 : vector<64x256xf32>, i32 -> vector<64x256xf32>
    %c15_53 = arith.constant 15 : index
    %c0_54 = arith.constant 0 : index
    %125 = vector.load %arg4[%c15_53, %c0_54] : memref<27x256xf32, #tpu.memory_space<vmem>>, vector<1x256xf32>
    %126 = vector.broadcast %125 : vector<1x256xf32> to vector<64x256xf32>
    %127 = arith.mulf %124, %126 : vector<64x256xf32>
    %128 = arith.addf %120, %127 : vector<64x256xf32>
    %c16_55 = arith.constant 16 : index
    %c0_56 = arith.constant 0 : index
    %129 = vector.load %arg4[%c16_55, %c0_56] : memref<27x256xf32, #tpu.memory_space<vmem>>, vector<1x256xf32>
    %130 = vector.broadcast %129 : vector<1x256xf32> to vector<64x256xf32>
    %131 = arith.mulf %123, %130 : vector<64x256xf32>
    %132 = arith.addf %128, %131 : vector<64x256xf32>
    %c224_i32_57 = arith.constant 224 : i32
    %133 = tpu.dynamic_rotate %123 by %c224_i32_57 dim 1 : vector<64x256xf32>, i32 -> vector<64x256xf32>
    %c17_58 = arith.constant 17 : index
    %c0_59 = arith.constant 0 : index
    %134 = vector.load %arg4[%c17_58, %c0_59] : memref<27x256xf32, #tpu.memory_space<vmem>>, vector<1x256xf32>
    %135 = vector.broadcast %134 : vector<1x256xf32> to vector<64x256xf32>
    %136 = arith.mulf %133, %135 : vector<64x256xf32>
    %137 = arith.addf %132, %136 : vector<64x256xf32>
    %c23 = arith.constant 23 : index
    %c0_60 = arith.constant 0 : index
    %138 = vector.load %arg9[%c23, %c0_60] : memref<96x256xf32, #tpu.memory_space<vmem>>, vector<64x256xf32>
    %139 = vector.broadcast %32 : vector<64x1xf32> to vector<64x256xf32>
    %140 = arith.mulf %138, %139 : vector<64x256xf32>
    %c32_i32_61 = arith.constant 32 : i32
    %141 = tpu.dynamic_rotate %140 by %c32_i32_61 dim 1 : vector<64x256xf32>, i32 -> vector<64x256xf32>
    %c18 = arith.constant 18 : index
    %c0_62 = arith.constant 0 : index
    %142 = vector.load %arg4[%c18, %c0_62] : memref<27x256xf32, #tpu.memory_space<vmem>>, vector<1x256xf32>
    %143 = vector.broadcast %142 : vector<1x256xf32> to vector<64x256xf32>
    %144 = arith.mulf %141, %143 : vector<64x256xf32>
    %145 = arith.addf %137, %144 : vector<64x256xf32>
    %c19 = arith.constant 19 : index
    %c0_63 = arith.constant 0 : index
    %146 = vector.load %arg4[%c19, %c0_63] : memref<27x256xf32, #tpu.memory_space<vmem>>, vector<1x256xf32>
    %147 = vector.broadcast %146 : vector<1x256xf32> to vector<64x256xf32>
    %148 = arith.mulf %140, %147 : vector<64x256xf32>
    %149 = arith.addf %145, %148 : vector<64x256xf32>
    %c224_i32_64 = arith.constant 224 : i32
    %150 = tpu.dynamic_rotate %140 by %c224_i32_64 dim 1 : vector<64x256xf32>, i32 -> vector<64x256xf32>
    %c20 = arith.constant 20 : index
    %c0_65 = arith.constant 0 : index
    %151 = vector.load %arg4[%c20, %c0_65] : memref<27x256xf32, #tpu.memory_space<vmem>>, vector<1x256xf32>
    %152 = vector.broadcast %151 : vector<1x256xf32> to vector<64x256xf32>
    %153 = arith.mulf %150, %152 : vector<64x256xf32>
    %154 = arith.addf %149, %153 : vector<64x256xf32>
    %c24 = arith.constant 24 : index
    %c0_66 = arith.constant 0 : index
    %155 = vector.load %arg9[%c24, %c0_66] : memref<96x256xf32, #tpu.memory_space<vmem>>, vector<64x256xf32>
    %c32_i32_67 = arith.constant 32 : i32
    %156 = tpu.dynamic_rotate %155 by %c32_i32_67 dim 1 : vector<64x256xf32>, i32 -> vector<64x256xf32>
    %c21 = arith.constant 21 : index
    %c0_68 = arith.constant 0 : index
    %157 = vector.load %arg4[%c21, %c0_68] : memref<27x256xf32, #tpu.memory_space<vmem>>, vector<1x256xf32>
    %158 = vector.broadcast %157 : vector<1x256xf32> to vector<64x256xf32>
    %159 = arith.mulf %156, %158 : vector<64x256xf32>
    %160 = arith.addf %154, %159 : vector<64x256xf32>
    %c22 = arith.constant 22 : index
    %c0_69 = arith.constant 0 : index
    %161 = vector.load %arg4[%c22, %c0_69] : memref<27x256xf32, #tpu.memory_space<vmem>>, vector<1x256xf32>
    %162 = vector.broadcast %161 : vector<1x256xf32> to vector<64x256xf32>
    %163 = arith.mulf %155, %162 : vector<64x256xf32>
    %164 = arith.addf %160, %163 : vector<64x256xf32>
    %c224_i32_70 = arith.constant 224 : i32
    %165 = tpu.dynamic_rotate %155 by %c224_i32_70 dim 1 : vector<64x256xf32>, i32 -> vector<64x256xf32>
    %c23_71 = arith.constant 23 : index
    %c0_72 = arith.constant 0 : index
    %166 = vector.load %arg4[%c23_71, %c0_72] : memref<27x256xf32, #tpu.memory_space<vmem>>, vector<1x256xf32>
    %167 = vector.broadcast %166 : vector<1x256xf32> to vector<64x256xf32>
    %168 = arith.mulf %165, %167 : vector<64x256xf32>
    %169 = arith.addf %164, %168 : vector<64x256xf32>
    %c25 = arith.constant 25 : index
    %c0_73 = arith.constant 0 : index
    %170 = vector.load %arg9[%c25, %c0_73] : memref<96x256xf32, #tpu.memory_space<vmem>>, vector<64x256xf32>
    %171 = vector.broadcast %36 : vector<64x1xf32> to vector<64x256xf32>
    %172 = arith.mulf %170, %171 : vector<64x256xf32>
    %c32_i32_74 = arith.constant 32 : i32
    %173 = tpu.dynamic_rotate %172 by %c32_i32_74 dim 1 : vector<64x256xf32>, i32 -> vector<64x256xf32>
    %c24_75 = arith.constant 24 : index
    %c0_76 = arith.constant 0 : index
    %174 = vector.load %arg4[%c24_75, %c0_76] : memref<27x256xf32, #tpu.memory_space<vmem>>, vector<1x256xf32>
    %175 = vector.broadcast %174 : vector<1x256xf32> to vector<64x256xf32>
    %176 = arith.mulf %173, %175 : vector<64x256xf32>
    %177 = arith.addf %169, %176 : vector<64x256xf32>
    %c25_77 = arith.constant 25 : index
    %c0_78 = arith.constant 0 : index
    %178 = vector.load %arg4[%c25_77, %c0_78] : memref<27x256xf32, #tpu.memory_space<vmem>>, vector<1x256xf32>
    %179 = vector.broadcast %178 : vector<1x256xf32> to vector<64x256xf32>
    %180 = arith.mulf %172, %179 : vector<64x256xf32>
    %181 = arith.addf %177, %180 : vector<64x256xf32>
    %c224_i32_79 = arith.constant 224 : i32
    %182 = tpu.dynamic_rotate %172 by %c224_i32_79 dim 1 : vector<64x256xf32>, i32 -> vector<64x256xf32>
    %c26 = arith.constant 26 : index
    %c0_80 = arith.constant 0 : index
    %183 = vector.load %arg4[%c26, %c0_80] : memref<27x256xf32, #tpu.memory_space<vmem>>, vector<1x256xf32>
    %184 = vector.broadcast %183 : vector<1x256xf32> to vector<64x256xf32>
    %185 = arith.mulf %182, %184 : vector<64x256xf32>
    %186 = arith.addf %181, %185 : vector<64x256xf32>
    %cst_81 = arith.constant 5.000000e-01 : f32
    %187 = vector.broadcast %cst_81 : f32 to vector<64x256xf32>
    %188 = arith.mulf %187, %186 : vector<64x256xf32>
    %cst_82 = arith.constant 0.707106769 : f32
    %189 = vector.broadcast %cst_82 : f32 to vector<64x256xf32>
    %190 = arith.mulf %186, %189 : vector<64x256xf32>
    %191 = math.erf %190 : vector<64x256xf32>
    %cst_83 = arith.constant 1.000000e+00 : f32
    %192 = vector.broadcast %cst_83 : f32 to vector<64x256xf32>
    %193 = arith.addf %192, %191 : vector<64x256xf32>
    %194 = arith.mulf %188, %193 : vector<64x256xf32>
    %195 = arith.truncf %194 : vector<64x256xf32> to vector<64x256xbf16>
    %c0_84 = arith.constant 0 : index
    %c0_85 = arith.constant 0 : index
    %196 = vector.load %arg6[%c0_84, %c0_85] : memref<256x128xbf16, #tpu.memory_space<vmem>>, vector<256x128xbf16>
    %cst_86 = arith.constant dense<0.000000e+00> : vector<64x128xf32>
    %197 = tpu.matmul %195, %196, %cst_86 {dimension_numbers = #tpu.dot_dimension_numbers<[1], [0], [0], [1], [0, 0, 1, 1], [], []>} : vector<64x256xbf16>, vector<256x128xbf16>, vector<64x128xf32> -> vector<64x128xf32>
    %c0_87 = arith.constant 0 : index
    %c0_88 = arith.constant 0 : index
    %198 = vector.load %arg7[%c0_87, %c0_88] : memref<1x128xf32, #tpu.memory_space<vmem>>, vector<1x128xf32>
    %199 = vector.broadcast %198 : vector<1x128xf32> to vector<64x128xf32>
    %200 = arith.addf %197, %199 : vector<64x128xf32>
    %c0_89 = arith.constant 0 : index
    %c0_90 = arith.constant 0 : index
    %c0_91 = arith.constant 0 : index
    %201 = vector.load %arg8[%c0_89, %c0_90, %c0_91] : memref<1x64x128xf32, #tpu.memory_space<vmem>>, vector<1x64x128xf32>
    %202 = vector.shape_cast %201 : vector<1x64x128xf32> to vector<64x128xf32>
    %203 = vector.shape_cast %200 : vector<64x128xf32> to vector<1x64x128xf32>
    tpu.vector_store %arg8[%c0_89, %c0_90, %c0_91], %203 {strides = array<i32>} : memref<1x64x128xf32, #tpu.memory_space<vmem>>, vector<1x64x128xf32>,
    return
  }
  func.func @transform_0(%arg0: i32) -> (i32, i32, i32) {
    %c0_i32 = arith.constant 0 : i32
    %c0_i32_0 = arith.constant 0 : i32
    %c0_i32_1 = arith.constant 0 : i32
    return %arg0, %c0_i32, %c0_i32_0 : i32, i32, i32
  }
  func.func @transform_1(%arg0: i32) -> (i32, i32) {
    %c0_i32 = arith.constant 0 : i32
    %c0_i32_0 = arith.constant 0 : i32
    %c0_i32_1 = arith.constant 0 : i32
    return %c0_i32, %c0_i32_0 : i32, i32
  }
  func.func @transform_2(%arg0: i32) -> (i32, i32) {
    %c0_i32 = arith.constant 0 : i32
    %c0_i32_0 = arith.constant 0 : i32
    %c0_i32_1 = arith.constant 0 : i32
    return %c0_i32, %c0_i32_0 : i32, i32
  }
  func.func @transform_3(%arg0: i32) -> (i32, i32) {
    %c0_i32 = arith.constant 0 : i32
    %c0_i32_0 = arith.constant 0 : i32
    %c0_i32_1 = arith.constant 0 : i32
    return %c0_i32, %c0_i32_0 : i32, i32
  }
  func.func @transform_4(%arg0: i32) -> (i32, i32) {
    %c0_i32 = arith.constant 0 : i32
    %c0_i32_0 = arith.constant 0 : i32
    %c0_i32_1 = arith.constant 0 : i32
    return %c0_i32, %c0_i32_0 : i32, i32
  }
  func.func @transform_5(%arg0: i32) -> (i32, i32) {
    %c0_i32 = arith.constant 0 : i32
    %c0_i32_0 = arith.constant 0 : i32
    %c0_i32_1 = arith.constant 0 : i32
    return %c0_i32, %c0_i32_0 : i32, i32
  }
  func.func @transform_6(%arg0: i32) -> (i32, i32) {
    %c0_i32 = arith.constant 0 : i32
    %c0_i32_0 = arith.constant 0 : i32
    %c0_i32_1 = arith.constant 0 : i32
    return %c0_i32, %c0_i32_0 : i32, i32
  }
  func.func @transform_7(%arg0: i32) -> (i32, i32, i32) {
    %c0_i32 = arith.constant 0 : i32
    %c0_i32_0 = arith.constant 0 : i32
    %c0_i32_1 = arith.constant 0 : i32
    return %arg0, %c0_i32, %c0_i32_0 : i32, i32, i32
  }
}

</mosaic_0001>

<bundles_post_ra>
// kernel: _lambda_.1
= control target key start
LH: loop header
LB: loop body
LE: loop exit
PB: predicated region body
PF: predicated region fallthrough
CT: control target
= control target key end

     0   :  { %s4428_s24 = smov 0   ;;  %s9273_s0 = inlined_call_operand.vmem [shape: bf16[2,64,128], index: 0, kind: input, shape index: {}]   ;;  %s9274_s1 = inlined_call_operand.vmem [shape: bf16[128,256], index: 1, kind: input, shape index: {}]   ;;  %s9275_s2 = inlined_call_operand.vmem [shape: f32[1,256], index: 2, kind: input, shape index: {}]   ;;  %s9276_s3 = inlined_call_operand.vmem [shape: f32[27,256], index: 3, kind: input, shape index: {}]   ;;  %s9277_s4 = inlined_call_operand.vmem [shape: f32[1,256], index: 4, kind: input, shape index: {}]   ;;  %s9278_s5 = inlined_call_operand.vmem [shape: bf16[256,128], index: 5, kind: input, shape index: {}]   ;;  %s9279_s6 = inlined_call_operand.vmem [shape: f32[1,128], index: 6, kind: input, shape index: {}]   ;;  %s9280_s7 = inlined_call_operand.vmem [shape: f32[2,64,128], index: 7, kind: output, shape index: {}]  }
   0x1 LB: > { %s4091_s25 = sadd.s32 4294967295, %s4382_s24   ;;  %p4095_p0 = scmp.ge.s32.totalorder %s4382_s24, 1  ;;  %s4382_s24 = sphi %s4428_s24, %s17_s24  }
   0x2   : > { %p237_p1 = scmp.lt.s32.totalorder %s4382_s24, 3 }
   0x4   : > { %p238_p2 = pnand %p4095_p0, %p237_p1 }
   0x6   : > { %241 = sbr.rel (%p238_p2) target bundleno = 1136 (0x470), region = 48 }
   0xd   : > { %v4255_v0 = vld [vmem:[%s9274_s1 + $0x4] ss:$8 sps:$4 sm:$0xff]   ;;  %p269_p3 = scmp.lt.s32.totalorder %s4091_s25, 1  ;;  %v9281_v1 = vlaneseq  ;;  %v4257_v2 = vld [vmem:[%s9274_s1] ss:$8 sps:$4 sm:$0xff]   ;;  %v4384_v3 = vmov 0  }
   0xe   : > { %452 = vmatprep.mubr.bf16.mxu0 %v4384_v3  ;;  %420 = vmatprep.subr.bf16.mxu0 %v4255_v0  ;;  %v4258_v4 = vld [vmem:[%s9274_s1 + $0x14] ss:$8 sps:$4 sm:$0xff]   ;;  %v4385_v5 = vmov 0.0   ;;  %v4260_v6 = vld [vmem:[%s9274_s1 + $0x10] ss:$8 sps:$4 sm:$0xff]   ;;  %s4386_s13 = smov 32  }
   0xf   : > { %s10768_s25 = smov (!%p269_p3, %s4091_s25), 1  ;;  %495 = vst [vmem:[#allocation2 + $0x10] sm:$0xff] %v4385_v5  ;;  %496 = vst [vmem:[#allocation2 + $0x18] sm:$0xff] %v4385_v5  ;;  %421 = vmatpush1.bf16.msra.mxu0 %v4257_v2  ;;  %v4460_v7 = vshrl.u32 %v9281_v1, 7  ;;  %v4261_v8 = vld [vmem:[%s9274_s1 + $0x24] ss:$8 sps:$4 sm:$0xff]   ;;  %4236 = vrot.lane.b32.xlu0 %v4385_v5, %s4386_s13 }
  0x10   : > { %493 = vst [vmem:[#allocation2] sm:$0xff] %v4385_v5  ;;  %494 = vst [vmem:[#allocation2 + $0x8] sm:$0xff] %v4385_v5  ;;  %422 = vmatprep.subr.bf16.mxu0 %v4258_v4  ;;  %s4181_s14 = sshll.u32 %s10768_s25, 5  ;;  %v4263_v10 = vld [vmem:[%s9274_s1 + $0x20] ss:$8 sps:$4 sm:$0xff]   ;;  %vm708_vm2 = vcmask 1046528  }
  0x11   : > { %497 = vst [vmem:[#allocation2 + $0xa0] sm:$0xff] %v4385_v5  ;;  %498 = vst [vmem:[#allocation2 + $0xa8] sm:$0xff] %v4385_v5  ;;  %v4469_v9 = vadd.s32 8, %v4460_v7  ;;  %v530_v11 = vand.u32 7, %v4460_v7  ;;  %v4264_v12 = vld [vmem:[%s9274_s1 + $0x34] ss:$8 sps:$4 sm:$0xff]   ;;  %s4482_s21 = scalar_lea.vmem %s9273_s0, %s4181_s14 }
  0x12   : > { %499 = vst [vmem:[#allocation2 + $0xb0] sm:$0xff] %v4385_v5  ;;  %500 = vst [vmem:[#allocation2 + $0xb8] sm:$0xff] %v4385_v5  ;;  %v4266_v14 = vld [vmem:[%s9274_s1 + $0x30] ss:$8 sps:$4 sm:$0xff]   ;;  %v4267_v15 = vld [vmem:[%s9274_s1 + $0x44] ss:$8 sps:$4 sm:$0xff]  }
  0x13   : > { %9729 = vst [vmem:[#allocation3_spill] sm:$0xff] %v4460_v7  ;;  %423 = vmatpush1.bf16.msra.mxu0 %v4260_v6  ;;  %v537_v13 = vand.u32 7, %v4469_v9  ;;  %vm622_vm0 = vcmp.ge.s32.totalorder %v530_v11, 1  ;;  %v4269_v18 = vld [vmem:[%s9274_s1 + $0x40] ss:$8 sps:$4 sm:$0xff]   ;;  %s4387_s11 = smov 96  }
  0x14   : > { %424 = vmatprep.subr.bf16.mxu0 %v4261_v8  ;;  %v4120_v16 = vsel %vm622_vm0, 1.0, %v4385_v5  ;;  %v4270_v23 = vld [vmem:[%s9274_s1 + $0x54] ss:$8 sps:$4 sm:$0xff]   ;;  %v4272_v24 = vld [vmem:[%s9274_s1 + $0x50] ss:$8 sps:$4 sm:$0xff]   ;;  %4241 = vrot.lane.b32.xlu1 %v4385_v5, %s4387_s11  ;;  %vm769_vm3 = vcmask 1040384  }
  0x15   : > { %vm623_vm1 = vcmp.ge.s32.totalorder %v537_v13, 1  ;;  %v4501_v20 = vrot.slane %v4120_v16, 1  ;;  %v4273_v27 = vld [vmem:[%s9274_s1 + $0x64] ss:$8 sps:$4 sm:$0xff]   ;;  %v4275_v33 = vld [vmem:[%s9274_s1 + $0x60] ss:$8 sps:$4 sm:$0xff]  }
  0x16   : > { %v4496_v17 = vsel %vm623_vm1, 1.0, %v4385_v5  ;;  %v4276_v35 = vld [vmem:[%s9274_s1 + $0x74] ss:$8 sps:$4 sm:$0xff]   ;;  %v4278_v37 = vld [vmem:[%s9274_s1 + $0x70] ss:$8 sps:$4 sm:$0xff]   ;;  %v4279_v38 = vld [vmem:[%s4482_s21] sm:$0xff]  }
  0x17   : > { %425 = vmatpush1.bf16.msra.mxu0 %v4263_v10  ;;  %v682_v19 = vld [vmem:[#allocation2] sm:$0x80]  ;;  %v710_v21 = vrot.slane %v4496_v17, 1  ;;  %v683_v22 = vld [vmem:[#allocation2 + $0x8] sm:$0x80]  ;;  %v4281_v40 = vld [vmem:[%s4482_s21 + $0x10] sm:$0xff]  }
  0x18   : > { %426 = vmatprep.subr.bf16.mxu0 %v4264_v12  ;;  %v733_v26 = vmul.f32 %v4501_v20, %v682_v19  ;;  %v734_v29 = vmul.f32 %v4501_v20, %v683_v22  ;;  %v4280_v39 = vld [vmem:[%s4482_s21 + $0x8] sm:$0xff]   ;;  %v4282_v41 = vld [vmem:[%s4482_s21 + $0x18] sm:$0xff]   ;;  %v520_v42 = vadd.s32 16, %v4460_v7  ;;  %v4552_v44 = vadd.s32 24, %v4460_v7  ;;  %s4182_s14 = sshll.u32 %s10768_s25, 6 }
  0x19   : > { %v4514_v25 = vsel %vm708_vm2, %v4501_v20, %v710_v21  ;;  %v4136_v51 = vld [vmem:[%s9276_s3 + $0x1] ss:$8 sm:$0x3]  ;;  %v4576_v52 = vsub.s32 0, %v4460_v7  ;;  %v4579_v53 = vsub.s32 1, %v4460_v7  ;;  %vm646_vm6 = vcmp.le.s32.totalorder %v530_v11, 6  ;;  %s9260_s19 = scalar_lea.vmem %s9280_s7, %s4182_s14 }
  0x1a   : > { %v735_v28 = vmul.f32 0.0, %v4514_v25  ;;  %v770_v30 = vrot.slane %v733_v26, 7  ;;  %v773_v32 = vrot.slane %v734_v29, 7  ;;  %v544_v43 = vand.u32 7, %v520_v42 }
  0x1b   : > { %427 = vmatpush1.bf16.msra.mxu0 %v4266_v14  ;;  %v551_v45 = vand.u32 7, %v4552_v44  ;;  %9731 = vst [vmem:[#allocation5_spill] sm:$0xff] %v4576_v52  ;;  %9732 = vst [vmem:[#allocation6_spill] sm:$0xff] %v4579_v53  ;;  %v4582_v54 = vrot.slane %v4136_v51, %v4576_v52  ;;  %v4585_v55 = vrot.slane %v4136_v51, %v4579_v53  ;;  %vm4669_vm8 = vcmp.le.s32.totalorder %v537_v13, 6 }
  0x1c   : > { %428 = vmatprep.subr.bf16.mxu0 %v4267_v15  ;;  %v4524_v31 = vrot.slane %v735_v28, 7  ;;  %vm648_vm4 = vcmp.le.s32.totalorder %v544_v43, 6  ;;  %vm624_vm7 = vcmp.ge.s32.totalorder %v544_v43, 1  ;;  %v522_v13 = vadd.s32 32, %v4460_v7 }
  0x1d   : > { %v4556_v46 = vsel %vm648_vm4, 1.0, %v4385_v5  ;;  %vm649_vm5 = vcmp.le.s32.totalorder %v551_v45, 6  ;;  %9733 = vst [vmem:[#allocation7_spill] sm:$0xff] %v4585_v55  ;;  %v928_v56 = vmul.f32 %v4582_v54, %v733_v26  ;;  %v929_v57 = vmul.f32 %v4585_v55, %v734_v29 }
  0x1e   : > { %v772_v34 = vsel %vm769_vm3, %v770_v30, %v4524_v31  ;;  %v775_v36 = vsel %vm769_vm3, %v773_v32, %v4524_v31  ;;  %v4561_v47 = vsel %vm649_vm5, 1.0, %v4385_v5  ;;  %v1384_v48 = vrot.slane %v4556_v46, 7 }
  0x1f   : > { %429 = vmatpush1.bf16.msra.mxu0 %v4269_v18  ;;  %820 = vrot.lane.b32.xlu0 %v772_v34, %s4386_s13  ;;  %v9284_v49 = vrot.slane %v4561_v47, 7  ;;  %v4590_v58 = vmul.f32 %v4582_v54, %v735_v28  ;;  %v4593_v59 = vmul.f32 %v4585_v55, %v735_v28  ;;  %v964_v60 = vrot.slane %v928_v56, 7  ;;  %v1358_v56 = vld [vmem:[#allocation2 + $0x18] sm:$0xfe] }
  0x20   : > { %430 = vmatprep.subr.bf16.mxu0 %v4270_v23  ;;  %v967_v61 = vrot.slane %v929_v57, 7  ;;  %v4128_v29 = vsel %vm646_vm6, 1.0, %v4385_v5  ;;  %v4122_v32 = vsel %vm624_vm7, 1.0, %v4385_v5  ;;  %vm625_vm9 = vcmp.ge.s32.totalorder %v551_v45, 1 }
  0x21   : > { %v4570_v50 = vsel %vm769_vm3, %v1384_v48, %v9284_v49  ;;  %v9283_v62 = vrot.slane %v4590_v58, 7  ;;  %v9282_v63 = vrot.slane %v4593_v59, 7  ;;  %v712_v42 = vrot.slane %v4122_v32, 1 }
  0x22   : > { %9730 = vst [vmem:[#allocation4_spill] sm:$0xff] %v4570_v50  ;;  %v4129_v43 = vsel %vm4669_vm8, 1.0, %v4385_v5  ;;  %v4700_v44 = vsel %vm625_vm9, 1.0, %v4385_v5 }
  0x23   : > { %431 = vmatpush1.bf16.msra.mxu0 %v4272_v24  ;;  %836 = vrot.lane.b32.xlu0 %v775_v36, %s4386_s13  ;;  %v4600_v0 = vsel %vm769_vm3, %v964_v60, %v9283_v62  ;;  %v4605_v2 = vsel %vm769_vm3, %v967_v61, %v9282_v63  ;;  %v1793_v61 = vld [vmem:[#allocation2 + $0x18] sm:$0x80] }
  0x24   : > { %432 = vmatprep.subr.bf16.mxu0 %v4273_v27  ;;  %9734 = vst [vmem:[#allocation8_spill] sm:$0xff] %v4600_v0  ;;  %9735 = vst [vmem:[#allocation9_spill] sm:$0xff] %v4605_v2 }
  0x27   : > { %433 = vmatpush1.bf16.msra.mxu0 %v4275_v33  ;;  %1030 = vrot.lane.b32.xlu0 %v772_v34, %s4387_s11  ;;  %v1357_v34 = vld [vmem:[#allocation2 + $0x10] sm:$0xfe] }
  0x28   : > { %434 = vmatprep.subr.bf16.mxu0 %v4276_v35  ;;  %v4673_v35 = vrot.slane %v4128_v29, 7 }
  0x2a   : > { %9741 = vst [vmem:[#allocation13_spill] sm:$0xff] %v4673_v35  ;;  %v4703_v45 = vmul.f32 %v4673_v35, %v1357_v34 }
  0x2b   : > { %435 = vmatpush1.bf16.msra.mxu0 %v4278_v37  ;;  %1046 = vrot.lane.b32.xlu0 %v775_v36, %s4387_s11  ;;  %v4142_v37 = vld [vmem:[%s9276_s3 + $0x7] ss:$8 sm:$0x3] }
  0x2c   : > { %v4706_v51 = vrot.slane %v4142_v37, %v4576_v52 }
  0x2e   : > { %453 = vmatmul.mubr.bf16.vlgmr.msra.gmra.mrb[0].mxu0 %v4279_v38  ;;  %9744 = vst [vmem:[#allocation16_spill] sm:$0xff] %v4706_v51 }
  0x2f   : > { %462 = vmatprep.mubr.bf16.mxu0 %v4384_v3 }
  0x36   : > { %463 = vmatmul.mubr.bf16.gmra.mrb[4].mxu0 %v4280_v39  ;;  %v1792_v39 = vld [vmem:[#allocation2 + $0x10] sm:$0x80] }
  0x37   : > { %472 = vmatprep.mubr.bf16.mxu0 %v4384_v3  ;;  %v4710_v57 = vmul.f32 %v1792_v39, %v4501_v20 }
  0x3e   : > { %473 = vmatmul.mubr.bf16.gmra.mrb[8].mxu0 %v4281_v40  ;;  %v4145_v40 = vld [vmem:[%s9276_s3 + $0x12] ss:$8 sm:$0x3] }
  0x3f   : > { %482 = vmatprep.mubr.bf16.mxu0 %v4384_v3  ;;  %v304_v3 = vld [vmem:[%s9275_s2] sm:$0x3]  ;;  %v4713_v60 = vrot.slane %v4145_v40, %v4576_v52  ;;  %v4739_v17 = vrot.slane %v4145_v40, %v4579_v53 }
  0x40   : > { %v4611_v4 = vrot.slane %v304_v3, %v4576_v52  ;;  %v4614_v6 = vrot.slane %v304_v3, %v4579_v53  ;;  %v558_v3 = vand.u32 7, %v522_v13  ;;  %v1441_v13 = vrot.slane %v4703_v45, 1 }
  0x41   : > { %9745 = vst [vmem:[#allocation17_spill] sm:$0xff] %v4713_v60  ;;  %9748 = vst [vmem:[#allocation20_spill] sm:$0xff] %v4739_v17  ;;  %v4747_v29 = vmul.f32 %v4713_v60, %v4710_v57 }
  0x42   : > { %9736 = vst [vmem:[#allocation10_spill] sm:$0xff] %v4611_v4  ;;  %9737 = vst [vmem:[#allocation11_spill] sm:$0xff] %v4614_v6  ;;  %vm626_vm10 = vcmp.ge.s32.totalorder %v558_v3, 1  ;;  %vm4784_vm12 = vcmp.le.s32.totalorder %v558_v3, 6 }
  0x43   : > { %v4132_v46 = vsel %vm4784_vm12, 1.0, %v4385_v5 }
  0x46   : > { %483 = vmatmul.mubr.bf16.gmra.mrb[12].mxu0 %v4282_v41 }
 0x101   : > { %v454_v8 = vpop.f32.mrb[0].mxu0 }
 0x102   : > { %v4617_v10 = vadd.f32 %v454_v8, %v4611_v4  ;;  %v456_v12 = vpop.f32.mrb[1].mxu0  ;;  %v523_v8 = vadd.s32 40, %v4460_v7 }
 0x103   : > { %v4620_v14 = vadd.f32 %v456_v12, %v4614_v6  ;;  %v458_v15 = vpop.f32.mrb[2].mxu0  ;;  %v1382_v12 = vrot.slane %v4129_v43, 7 }
 0x104   : > { %501 = vst [vmem:[#allocation2 + $0x20] sm:$0xff] %v4617_v10  ;;  %v4624_v16 = vadd.f32 %v458_v15, %v4611_v4  ;;  %v460_v18 = vpop.f32.mrb[3].mxu0  ;;  %1266 = vrot.lane.b32.xlu0 %v4617_v10, %s4387_s11  ;;  %1128 = vrot.lane.b32.xlu1 %v4617_v10, %s4386_s13  ;;  %v4717_v15 = vadd.s32 48, %v4460_v7  ;;  %v565_v32 = vand.u32 7, %v523_v8 }
 0x105   : > { %502 = vst [vmem:[#allocation2 + $0x28] sm:$0xff] %v4620_v14  ;;  %v4632_v19 = vadd.f32 %v460_v18, %v4614_v6  ;;  %v4722_v18 = vsel %vm708_vm2, %v710_v21, %v712_v42  ;;  %v4743_v21 = vmul.f32 %v4706_v51, %v4703_v45  ;;  %v4844_v45 = vmul.f32 %v4514_v25, %v4617_v10 }
 0x106   : > { %503 = vst [vmem:[#allocation2 + $0x30] sm:$0xff] %v4624_v16  ;;  %9746 = vst [vmem:[#allocation18_spill] sm:$0xff] %v4717_v15  ;;  %v4751_v33 = vmul.f32 %v4722_v18, %v4617_v10  ;;  %v9285_v34 = vand.u32 7, %v4717_v15  ;;  %vm4780_vm11 = vcmp.ge.s32.totalorder %v565_v32, 1  ;;  %vm651_vm14 = vcmp.le.s32.totalorder %v565_v32, 6 }
 0x107   : > { %504 = vst [vmem:[#allocation2 + $0x38] sm:$0xff] %v4632_v19  ;;  %v4151_v32 = vld [vmem:[%s9276_s3 + $0x20] ss:$8 sm:$0x3]  ;;  %v4125_v3 = vsel %vm4780_vm11, 1.0, %v4385_v5  ;;  %v1388_v15 = vrot.slane %v4132_v46, 7 }
 0x108   : > { %2185 = vrot.lane.b32.xlu0 %v4617_v10, %s4386_s13  ;;  %1282 = vrot.lane.b32.xlu1 %v4620_v14, %s4387_s11  ;;  %vm628_vm13 = vcmp.ge.s32.totalorder %v9285_v34, 1  ;;  %v4810_v34 = vsel %vm769_vm3, %v1382_v12, %v1384_v48  ;;  %v9761_v49 = vrot.slane %v4751_v33, 7 }
 0x109   : > { %v464_v22 = vpop.f32.mrb[4].mxu0  ;;  %9756 = vst [vmem:[#allocation24_spill] sm:$0xff] %v4810_v34  ;;  %v4828_v48 = vsel %vm628_vm13, 1.0, %v4385_v5 }
 0x10a   : > { %v4641_v23 = vadd.f32 %v464_v22, %v4611_v4  ;;  %v466_v24 = vpop.f32.mrb[5].mxu0  ;;  %v714_v22 = vrot.slane %v4700_v44, 1  ;;  %9758 = vst [vmem:[#allocation26_spill] sm:$0xff] %v4828_v48  ;;  %v4860_v44 = vmul.f32 %v4810_v34, %v4624_v16 }
 0x10b   : > { %v4644_v26 = vadd.f32 %v466_v24, %v4614_v6  ;;  %v468_v27 = vpop.f32.mrb[6].mxu0  ;;  %v4730_v24 = vmul.f32 %v4673_v35, %v1358_v56  ;;  %v777_v56 = vsel %vm769_vm3, %v4524_v31, %v9761_v49  ;;  %v718_v49 = vrot.slane %v4125_v3, 1 }
 0x10c   : > { %505 = vst [vmem:[#allocation2 + $0x40] sm:$0xff] %v4641_v23  ;;  %2317 = vrot.lane.b32.xlu0 %v4617_v10, %s4387_s11  ;;  %1268 = vrot.lane.b32.xlu1 %v4624_v16, %s4387_s11  ;;  %v470_v28 = vpop.f32.mrb[7].mxu0  ;;  %v4656_v30 = vadd.f32 %v468_v27, %v4611_v4  ;;  %v4733_v27 = vrot.slane %v4142_v37, %v4579_v53 }
 0x10d   : > { %506 = vst [vmem:[#allocation2 + $0x48] sm:$0xff] %v4644_v26  ;;  %v4659_v11 = vadd.f32 %v470_v28, %v4614_v6  ;;  %v4736_v28 = vmul.f32 %v1793_v61, %v4501_v20  ;;  %v4763_v37 = vsel %vm769_vm3, %v4673_v35, %v1382_v12  ;;  %v4831_v12 = vsel %vm651_vm14, 1.0, %v4385_v5 }
 0x10e   : > { %507 = vst [vmem:[#allocation2 + $0x50] sm:$0xff] %v4656_v30  ;;  %9747 = vst [vmem:[#allocation19_spill] sm:$0xff] %v4733_v27  ;;  %v4793_v63 = vmul.f32 %v4763_v37, %v4617_v10  ;;  %v4863_v10 = vrot.slane %v4151_v32, %v4579_v53  ;;  %v4907_v53 = vmul.f32 %v4514_v25, %v4620_v14 }
 0x10f   : > { %9738 = vst [vmem:[#allocation12_spill] sm:$0xff] %v4659_v11  ;;  %508 = vst [vmem:[#allocation2 + $0x58] sm:$0xff] %v4659_v11  ;;  %v4773_v40 = vmul.f32 %v4739_v17, %v4736_v28 }
 0x110   : > { %1144 = vrot.lane.b32.xlu0 %v4620_v14, %s4386_s13  ;;  %2187 = vrot.lane.b32.xlu1 %v4624_v16, %s4386_s13  ;;  %9750 = vst [vmem:[#allocation22_spill] sm:$0xff] %v4763_v37  ;;  %9759 = vst [vmem:[#allocation27_spill] sm:$0xff] %v4831_v12  ;;  %v9767_v46 = vrot.slane %v4793_v63, 1  ;;  %v4897_v3 = vmul.f32 %v4706_v51, %v4793_v63 }
 0x111   : > { %v474_v36 = vpop.f32.mrb[8].mxu0  ;;  %9751 = vst [vmem:[#allocation23_spill] sm:$0xff] %v4773_v40  ;;  %9765 = vst [vmem:[#allocation32_spill] sm:$0xff] %v4863_v10  ;;  %v9770_v10 = vrot.slane %v4561_v47, 7 }
 0x112   : > { %v4682_v38 = vadd.f32 %v474_v36, %v4611_v4  ;;  %v476_v9 = vpop.f32.mrb[9].mxu0  ;;  %v4755_v36 = vsel %vm708_vm2, %v712_v42, %v714_v22  ;;  %v4124_v42 = vsel %vm626_vm10, 1.0, %v4385_v5  ;;  %v4853_v5 = vrot.slane %v4151_v32, %v4576_v52 }
 0x113   : > { %v4689_v41 = vadd.f32 %v476_v9, %v4614_v6  ;;  %9749 = vst [vmem:[#allocation21_spill] sm:$0xff] %v4755_v36  ;;  %v4767_v9 = vmul.f32 %v4733_v27, %v4730_v24  ;;  %v4776_v43 = vpop.f32.mrb[10].mxu0  ;;  %v716_v39 = vrot.slane %v4124_v42, 1  ;;  %v4822_v42 = vmul.f32 %v4722_v18, %v4620_v14 }
 0x114   : > { %9742 = vst [vmem:[#allocation14_spill] sm:$0xff] %v4682_v38  ;;  %2199 = vrot.lane.b32.xlu0 %v4620_v14, %s4386_s13  ;;  %2319 = vrot.lane.b32.xlu1 %v4624_v16, %s4387_s11  ;;  %509 = vst [vmem:[#allocation2 + $0x60] sm:$0xff] %v4682_v38  ;;  %v4788_v8 = vpop.f32.mrb[11].mxu0  ;;  %v4835_v61 = vmul.f32 %v4755_v36, %v4624_v16  ;;  %v4848_v2 = vmul.f32 %v4755_v36, %v4632_v19  ;;  %v1447_v36 = vrot.slane %v4860_v44, 1 }
 0x115   : > { %9743 = vst [vmem:[#allocation15_spill] sm:$0xff] %v4689_v41  ;;  %510 = vst [vmem:[#allocation2 + $0x68] sm:$0xff] %v4689_v41  ;;  %v4856_v0 = vsel %vm708_vm2, %v714_v22, %v716_v39  ;;  %v4872_v52 = vmul.f32 %v4585_v55, %v4822_v42  ;;  %v4876_v22 = vmul.f32 %v4763_v37, %v4620_v14 }
 0x116   : > { %9757 = vst [vmem:[#allocation25_spill] sm:$0xff] %v4822_v42  ;;  %9760 = vst [vmem:[#allocation28_spill] sm:$0xff] %v4835_v61  ;;  %v4881_v32 = vmul.f32 %v4582_v54, %v4835_v61  ;;  %v1443_v7 = vsel %vm708_vm2, %v1441_v13, %v9767_v46  ;;  %v4889_v41 = vmul.f32 %v4570_v50, %v4641_v23 }
 0x117   : > { %9762 = vst [vmem:[#allocation29_spill] sm:$0xff] %v4848_v2  ;;  %9763 = vst [vmem:[#allocation30_spill] sm:$0xff] %v4853_v5  ;;  %v4893_v38 = vmul.f32 %v4585_v55, %v4848_v2  ;;  %v4903_v46 = vsel %vm708_vm2, %v716_v39, %v718_v49  ;;  %v4914_v11 = vsel %vm769_vm3, %v9770_v10, %v1388_v15  ;;  %v9772_v39 = vrot.slane %v4828_v48, 1 }
 0x118   : > { %2331 = vrot.lane.b32.xlu0 %v4620_v14, %s4387_s11  ;;  %1146 = vrot.lane.b32.xlu1 %v4632_v19, %s4386_s13  ;;  %9764 = vst [vmem:[#allocation31_spill] sm:$0xff] %v4856_v0  ;;  %9766 = vst [vmem:[#allocation33_spill] sm:$0xff] %v4876_v22  ;;  %v9774_v14 = vrot.slane %v4831_v12, 7  ;;  %v9776_v10 = vrot.slane %v4844_v45, 7  ;;  %v9778_v48 = vrot.slane %v4889_v41, 1  ;;  %v9782_v2 = vrot.slane %v4730_v24, 1 }
 0x119   : > { %v4795_v62 = vpop.f32.mrb[12].mxu0  ;;  %9768 = vst [vmem:[#allocation34_spill] sm:$0xff] %v4889_v41  ;;  %9769 = vst [vmem:[#allocation35_spill] sm:$0xff] %v4903_v46  ;;  %v4921_v55 = vsel %vm708_vm2, %v718_v49, %v9772_v39  ;;  %v4977_v39 = vmul.f32 %v4722_v18, %v4624_v16  ;;  %v4982_v12 = vmul.f32 %v4763_v37, %v4624_v16 }
 0x11a   : > { %v4818_v1 = vpop.f32.mrb[13].mxu0  ;;  %9771 = vst [vmem:[#allocation36_spill] sm:$0xff] %v4914_v11  ;;  %9773 = vst [vmem:[#allocation37_spill] sm:$0xff] %v4921_v55  ;;  %v4926_v40 = vsel %vm769_vm3, %v1388_v15, %v9774_v14  ;;  %v4938_v49 = vsel %vm708_vm2, %v1447_v36, %v9778_v48  ;;  %v4944_v14 = vmul.f32 %v4713_v60, %v4844_v45 }
 0x11b   : > { %9775 = vst [vmem:[#allocation38_spill] sm:$0xff] %v4926_v40  ;;  %9779 = vst [vmem:[#allocation39_spill] sm:$0xff] %v4938_v49  ;;  %v4954_v48 = vmul.f32 %v4733_v27, %v4876_v22  ;;  %v4960_v15 = vmul.f32 %v4810_v34, %v4632_v19  ;;  %v4990_v24 = vadd.f32 %v4776_v43, %v4611_v4 }
 0x11c   : > { %1130 = vrot.lane.b32.xlu0 %v4624_v16, %s4386_s13  ;;  %2201 = vrot.lane.b32.xlu1 %v4632_v19, %s4386_s13  ;;  %9783 = vst [vmem:[#allocation40_spill] sm:$0xff] %v4977_v39  ;;  %9784 = vst [vmem:[#allocation41_spill] sm:$0xff] %v4982_v12  ;;  %v5057_v43 = vmul.f32 %v4856_v0, %v4641_v23 }
 0x11d   : > { %9786 = vst [vmem:[#allocation43_spill] sm:$0xff] %v4990_v24  ;;  %511 = vst [vmem:[#allocation2 + $0x70] sm:$0xff] %v4990_v24 }
 0x11e   : > { %9796 = vst [vmem:[#allocation48_spill] sm:$0xff] %v5057_v43 }
 0x120   : > { %1284 = vrot.lane.b32.xlu0 %v4632_v19, %s4387_s11  ;;  %2333 = vrot.lane.b32.xlu1 %v4632_v19, %s4387_s11 }
 0x124   : > { %1032 = vrot.lane.b32.xlu1 %v777_v56, %s4387_s11  ;;  %822 = vrot.lane.b32.xlu0 %v777_v56, %s4386_s13  ;;  %v4868_v56 = vmul.f32 %v4582_v54, %v4751_v33 }
 0x128   : > { %1699 = vrot.lane.b32.xlu1 %v1443_v7, %s4387_s11  ;;  %1491 = vrot.lane.b32.xlu0 %v1443_v7, %s4386_s13  ;;  %v9777_v7 = vrot.slane %v4710_v57, 7  ;;  %v9780_v57 = vrot.slane %v4822_v42, 7  ;;  %v5005_v42 = vadd.f32 %v4818_v1, %v4614_v6  ;;  %v9793_v1 = vrot.slane %v4736_v28, 7 }
 0x129   : > { %v5053_v28 = vmul.f32 %v4853_v5, %v4982_v12 }
 0x12a   : > { %v1834_v13 = vsel %vm769_vm3, %v9777_v7, %v9776_v10  ;;  %v779_v7 = vsel %vm769_vm3, %v4524_v31, %v9780_v57  ;;  %v2404_v10 = vld [vmem:[#allocation2 + $0x20] sm:$0xfe]  ;;  %v4969_v31 = vmul.f32 %v4739_v17, %v4907_v53  ;;  %v4973_v57 = vmul.f32 %v4706_v51, %v4860_v44  ;;  %9789 = vst [vmem:[#allocation46_spill] sm:$0xff] %v5005_v42 }
 0x12b   : > { %v2408_v47 = vmul.f32 %v2404_v10, %v4673_v35  ;;  %v4997_v10 = vadd.f32 %v4788_v8, %v4614_v6  ;;  %v9790_v44 = vrot.slane %v4835_v61, 7  ;;  %v9315_v8 = vrot.slane %v4960_v15, 1  ;;  %514 = vst [vmem:[#allocation2 + $0x88] sm:$0xff] %v5005_v42 }
 0x12c   : > { %1882 = vrot.lane.b32.xlu1 %v1834_v13, %s4386_s13  ;;  %2090 = vrot.lane.b32.xlu0 %v1834_v13, %s4387_s11  ;;  %v9781_v13 = vrot.slane %v4876_v22, 1  ;;  %v9791_v22 = vrot.slane %v4751_v33, 7  ;;  %v9794_v61 = vrot.slane %v4793_v63, 1  ;;  %v9802_v42 = vrot.slane %v4593_v59, 7 }
 0x12d   : > { %9787 = vst [vmem:[#allocation44_spill] sm:$0xff] %v4997_v10  ;;  %512 = vst [vmem:[#allocation2 + $0x78] sm:$0xff] %v4997_v10  ;;  %v9805_v10 = vrot.slane %v4844_v45, 7  ;;  %v5097_v59 = vmul.f32 %v4903_v46, %v4656_v30 }
 0x12e   : > { %v1446_v49 = vsel %vm708_vm2, %v9782_v2, %v9781_v13  ;;  %v4986_v2 = vmul.f32 %v4570_v50, %v4644_v26  ;;  %v5001_v13 = vadd.f32 %v4795_v62, %v4611_v4  ;;  %v5013_v50 = vsel %vm769_vm3, %v9791_v22, %v9790_v44  ;;  %v2795_v44 = vld [vmem:[#allocation2 + $0x20] sm:$0x80]  ;;  %v2405_v22 = vld [vmem:[#allocation2 + $0x28] sm:$0xfe] }
 0x12f   : > { %v9792_v62 = vrot.slane %v4907_v53, 7  ;;  %v5027_v33 = vsel %vm708_vm2, %v9794_v61, %v1447_v36  ;;  %v5049_v61 = vmul.f32 %v4853_v5, %v2408_v47  ;;  %9807 = vst [vmem:[#allocation53_spill] sm:$0xff] %v5097_v59  ;;  %v5105_v45 = vmul.f32 %v2405_v22, %v4673_v35  ;;  %v9820_v22 = vld [vmem:[#allocation23_spill] sm:$0xff] }
 0x130   : > { %9785 = vst [vmem:[#allocation42_spill] sm:$0xff] %v4986_v2  ;;  %838 = vrot.lane.b32.xlu1 %v779_v7, %s4386_s13  ;;  %1507 = vrot.lane.b32.xlu0 %v1446_v49, %s4386_s13  ;;  %9788 = vst [vmem:[#allocation45_spill] sm:$0xff] %v5001_v13  ;;  %v9314_v40 = vrot.slane %v4986_v2, 1  ;;  %v5210_v4 = vmul.f32 %v4810_v34, %v4644_v26 }
 0x131   : > { %v1837_v6 = vsel %vm769_vm3, %v9793_v1, %v9792_v62  ;;  %513 = vst [vmem:[#allocation2 + $0x80] sm:$0xff] %v5001_v13  ;;  %v5036_v62 = vmul.f32 %v4713_v60, %v4977_v39  ;;  %v2444_v1 = vrot.slane %v2408_v47, 1  ;;  %v9799_v47 = vrot.slane %v4590_v58, 7 }
 0x132   : > { %v5043_v63 = vsel %vm708_vm2, %v9315_v8, %v9314_v40  ;;  %v5060_v40 = vmul.f32 %v2795_v44, %v4501_v20  ;;  %v9798_v8 = vrot.slane %v4868_v56, 7  ;;  %v9804_v44 = vrot.slane %v4977_v39, 7 }
 0x133   : > { %9795 = vst [vmem:[#allocation47_spill] sm:$0xff] %v5043_v63  ;;  %v9801_v63 = vrot.slane %v4872_v52, 7  ;;  %v5089_v58 = vmul.f32 %v4514_v25, %v4624_v16  ;;  %v9810_v16 = vrot.slane %v4743_v21, 1  ;;  %v5127_v21 = vmul.f32 %v4582_v54, %v5057_v43 }
 0x134   : > { %1048 = vrot.lane.b32.xlu1 %v779_v7, %s4387_s11  ;;  %2106 = vrot.lane.b32.xlu0 %v1837_v6, %s4387_s11  ;;  %v5064_v7 = vmul.f32 %v4722_v18, %v4632_v19  ;;  %v5071_v36 = vsel %vm769_vm3, %v9799_v47, %v9798_v8  ;;  %v5085_v24 = vsel %vm769_vm3, %v9805_v10, %v9804_v44  ;;  %v9809_v10 = vrot.slane %v4897_v3, 1 }
 0x135   : > { %9800 = vst [vmem:[#allocation50_spill] sm:$0xff] %v5071_v36  ;;  %v5078_v13 = vsel %vm769_vm3, %v9802_v42, %v9801_v63  ;;  %v5093_v8 = vmul.f32 %v4856_v0, %v4644_v26  ;;  %v9808_v42 = vrot.slane %v4982_v12, 1  ;;  %v9812_v44 = vrot.slane %v4954_v48, 1 }
 0x136   : > { %9797 = vst [vmem:[#allocation49_spill] sm:$0xff] %v5064_v7  ;;  %9803 = vst [vmem:[#allocation51_spill] sm:$0xff] %v5078_v13  ;;  %v5112_v47 = vsel %vm708_vm2, %v9810_v16, %v9809_v10  ;;  %v9813_v13 = vrot.slane %v4767_v9, 1  ;;  %v5135_v9 = vmul.f32 %v4763_v37, %v4632_v19  ;;  %v9817_v10 = vrot.slane %v4747_v29, 7  ;;  %v9823_v37 = vld [vmem:[#allocation7_spill] sm:$0xff]  ;;  %v9824_v29 = vld [vmem:[#allocation12_spill] sm:$0xff] }
 0x137   : > { %9806 = vst [vmem:[#allocation52_spill] sm:$0xff] %v5093_v8  ;;  %v5102_v63 = vsel %vm708_vm2, %v2444_v1, %v9808_v42  ;;  %9811 = vst [vmem:[#allocation54_spill] sm:$0xff] %v5112_v47  ;;  %v5131_v1 = vmul.f32 %v4733_v27, %v4960_v15  ;;  %v9816_v42 = vrot.slane %v4944_v14, 7  ;;  %v5159_v35 = vmul.f32 %v9823_v37, %v5093_v8 }
 0x138   : > { %v5119_v36 = vsel %vm708_vm2, %v9813_v13, %v9812_v44  ;;  %1715 = vrot.lane.b32.xlu1 %v1446_v49, %s4387_s11  ;;  %1034 = vrot.lane.b32.xlu0 %v5013_v50, %s4387_s11  ;;  %9815 = vst [vmem:[#allocation56_spill] sm:$0xff] %v5135_v9  ;;  %v2835_v13 = vrot.slane %v5060_v40, 7  ;;  %v5140_v49 = vmul.f32 %v4739_v17, %v5064_v7  ;;  %v9819_v44 = vrot.slane %v4969_v31, 7 }
 0x139   : > { %9814 = vst [vmem:[#allocation55_spill] sm:$0xff] %v5119_v36  ;;  %v5147_v16 = vsel %vm769_vm3, %v9817_v10, %v9816_v42  ;;  %v9821_v36 = vrot.slane %v9820_v22, 7  ;;  %v5163_v12 = vmul.f32 %v4582_v54, %v5097_v59  ;;  %v5167_v42 = vmul.f32 %v4903_v46, %v9824_v29  ;;  %v9826_v10 = vld [vmem:[#allocation32_spill] sm:$0xff] }
 0x13a   : > { %9818 = vst [vmem:[#allocation57_spill] sm:$0xff] %v5147_v16  ;;  %v2601_v22 = vmul.f32 %v9826_v10, %v5105_v45  ;;  %v9829_v39 = vrot.slane %v4868_v56, 7  ;;  %v9831_v16 = vrot.slane %v4893_v38, 7  ;;  %v9832_v59 = vrot.slane %v4872_v52, 7  ;;  %v9838_v56 = vld [vmem:[#allocation21_spill] sm:$0xff] }
 0x13b   : > { %v5154_v47 = vsel %vm769_vm3, %v9821_v36, %v9819_v44  ;;  %9825 = vst [vmem:[#allocation7_spill] sm:$0xff] %v5167_v42  ;;  %v5173_v36 = vmul.f32 %v4810_v34, %v4641_v23  ;;  %v9828_v44 = vrot.slane %v4881_v32, 7  ;;  %v2636_v43 = vrot.slane %v5049_v61, 1 }
 0x13c   : > { %9822 = vst [vmem:[#allocation23_spill] sm:$0xff] %v5154_v47  ;;  %v5187_v8 = vsel %vm769_vm3, %v9832_v59, %v9831_v16  ;;  %1898 = vrot.lane.b32.xlu1 %v1837_v6, %s4386_s13  ;;  %1701 = vrot.lane.b32.xlu0 %v5027_v33, %s4387_s11  ;;  %v9834_v59 = vrot.slane %v5089_v58, 7  ;;  %v9836_v6 = vld [vmem:[#allocation29_spill] sm:$0xff]  ;;  %v5218_v52 = vmul.f32 %v4914_v11, %v4656_v30 }
 0x13d   : > { %9827 = vst [vmem:[#allocation12_spill] sm:$0xff] %v5173_v36  ;;  %v5180_v47 = vsel %vm769_vm3, %v9829_v39, %v9828_v44  ;;  %9833 = vst [vmem:[#allocation59_spill] sm:$0xff] %v5187_v8  ;;  %v5197_v39 = vmul.f32 %v9826_v10, %v5135_v9  ;;  %v5223_v44 = vmul.f32 %v9823_v37, %v5167_v42  ;;  %v9843_v42 = vrot.slane %v4897_v3, 1 }
 0x13e   : > { %9830 = vst [vmem:[#allocation58_spill] sm:$0xff] %v5180_v47  ;;  %v5203_v16 = vsel %vm769_vm3, %v2835_v13, %v9834_v59  ;;  %9837 = vst [vmem:[#allocation29_spill] sm:$0xff] %v5210_v4  ;;  %v5214_v47 = vmul.f32 %v9838_v56, %v4641_v23  ;;  %v2639_v59 = vrot.slane %v2601_v22, 1  ;;  %v5227_v61 = vmul.f32 %v4853_v5, %v5173_v36 }
 0x13f   : > { %9835 = vst [vmem:[#allocation60_spill] sm:$0xff] %v5203_v16  ;;  %9840 = vst [vmem:[#allocation62_spill] sm:$0xff] %v5218_v52  ;;  %v2640_v8 = vrot.slane %v5197_v39, 1  ;;  %v5236_v13 = vmul.f32 %v9838_v56, %v4644_v26  ;;  %v9842_v22 = vrot.slane %v4973_v57, 1  ;;  %v9845_v36 = vrot.slane %v5131_v1, 1 }
 0x140   : > { %9839 = vst [vmem:[#allocation61_spill] sm:$0xff] %v5214_v47  ;;  %824 = vrot.lane.b32.xlu1 %v5013_v50, %s4386_s13  ;;  %1884 = vrot.lane.b32.xlu0 %v5085_v24, %s4386_s13  ;;  %v9846_v50 = vrot.slane %v4954_v48, 1  ;;  %v5254_v39 = vmul.f32 %v4706_v51, %v4889_v41  ;;  %v5258_v56 = vmul.f32 %v4914_v11, %v9824_v29  ;;  %v9849_v3 = vrot.slane %v5036_v62, 7 }
 0x141   : > { %9841 = vst [vmem:[#allocation63_spill] sm:$0xff] %v5236_v13  ;;  %v5243_v34 = vsel %vm708_vm2, %v9843_v42, %v9842_v22  ;;  %v9850_v42 = vrot.slane %v4944_v14, 7  ;;  %v9852_v48 = vrot.slane %v5140_v49, 7  ;;  %v5284_v14 = vmul.f32 %v4706_v51, %v5218_v52 }
 0x142   : > { %9844 = vst [vmem:[#allocation64_spill] sm:$0xff] %v5243_v34  ;;  %v5250_v5 = vsel %vm708_vm2, %v9846_v50, %v9845_v36  ;;  %9848 = vst [vmem:[#allocation66_spill] sm:$0xff] %v5258_v56  ;;  %v9853_v36 = vrot.slane %v4969_v31, 7  ;;  %v5280_v34 = vmul.f32 %v4713_v60, %v5214_v47  ;;  %v5292_v31 = vmul.f32 %v4856_v0, %v4656_v30 }
 0x143   : > { %9847 = vst [vmem:[#allocation65_spill] sm:$0xff] %v5250_v5  ;;  %v5265_v22 = vsel %vm769_vm3, %v9850_v42, %v9849_v3  ;;  %v5276_v5 = vmul.f32 %v9826_v10, %v5210_v4  ;;  %v1604_v3 = vmul.f32 %v4733_v27, %v4986_v2  ;;  %v5288_v42 = vld [vmem:[#allocation2 + $0x60] sm:$0xff]  ;;  %v5304_v41 = vsel %vm708_vm2, %v2639_v59, %v2640_v8 }
 0x144   : > { %9851 = vst [vmem:[#allocation67_spill] sm:$0xff] %v5265_v22  ;;  %v5272_v50 = vsel %vm769_vm3, %v9853_v36, %v9852_v48  ;;  %9855 = vst [vmem:[#allocation69_spill] sm:$0xff] %v5292_v31  ;;  %v9856_v48 = vld [vmem:[#allocation14_spill] sm:$0xff]  ;;  %1493 = vrot.lane.b32.xlu1 %v5027_v33, %s4386_s13  ;;  %2494 = vrot.lane.b32.xlu0 %v5102_v63, %s4386_s13  ;;  %v5315_v52 = vmul.f32 %v4856_v0, %v9824_v29  ;;  %v1647_v10 = vrot.slane %v5284_v14, 1 }
 0x145   : > { %9854 = vst [vmem:[#allocation68_spill] sm:$0xff] %v5272_v50  ;;  %v5296_v36 = vmul.f32 %v4921_v55, %v9856_v48  ;;  %v9858_v50 = vrot.slane %v5053_v28, 1  ;;  %9860 = vst [vmem:[#allocation71_spill] sm:$0xff] %v5304_v41  ;;  %v1995_v48 = vmul.f32 %v4739_v17, %v5236_v13  ;;  %v5324_v33 = vmul.f32 %v4733_v27, %v5258_v56  ;;  %v9864_v41 = vld [vmem:[#allocation38_spill] sm:$0xff] }
 0x146   : > { %9861 = vst [vmem:[#allocation72_spill] sm:$0xff] %v5315_v52  ;;  %v5328_v2 = vmul.f32 %v9864_v41, %v5288_v42  ;;  %v9867_v13 = vrot.slane %v4881_v32, 7  ;;  %v9374_v59 = vrot.slane %v5276_v5, 1  ;;  %v2034_v56 = vrot.slane %v5280_v34, 7 }
 0x147   : > { %9857 = vst [vmem:[#allocation14_spill] sm:$0xff] %v5296_v36  ;;  %v5301_v22 = vsel %vm708_vm2, %v2636_v43, %v9858_v50  ;;  %v9862_v43 = vld [vmem:[#allocation15_spill] sm:$0xff]  ;;  %v1645_v11 = vrot.slane %v1604_v3, 1  ;;  %v5346_v9 = vmul.f32 %v4713_v60, %v5292_v31  ;;  %v5350_v32 = vmul.f32 %v4582_v54, %v5296_v36 }
 0x148   : > { %9859 = vst [vmem:[#allocation70_spill] sm:$0xff] %v5301_v22  ;;  %v5319_v50 = vmul.f32 %v4921_v55, %v9862_v43  ;;  %9865 = vst [vmem:[#allocation73_spill] sm:$0xff] %v5328_v2  ;;  %v9866_v22 = vrot.slane %v5127_v21, 7  ;;  %v1643_v43 = vrot.slane %v5254_v39, 1  ;;  %v5341_v55 = vld [vmem:[#allocation2 + $0x68] sm:$0xff]  ;;  %2092 = vrot.lane.b32.xlu1 %v5085_v24, %s4387_s11  ;;  %2702 = vrot.lane.b32.xlu0 %v5102_v63, %s4387_s11  ;;  %v2036_v34 = vrot.slane %v1995_v48, 7 }
 0x149   : > { %v9870_v14 = vrot.slane %v4893_v38, 7  ;;  %v1649_v24 = vrot.slane %v5324_v33, 1  ;;  %v5372_v63 = vmul.f32 %v4706_v51, %v5328_v2  ;;  %v5376_v48 = vmul.f32 %v5288_v42, %v4903_v46 }
 0x14a   : > { %9863 = vst [vmem:[#allocation15_spill] sm:$0xff] %v5319_v50  ;;  %v5335_v47 = vsel %vm769_vm3, %v9867_v13, %v9866_v22  ;;  %v1997_v13 = vmul.f32 %v4739_v17, %v5315_v52  ;;  %v5360_v39 = vmul.f32 %v9823_v37, %v5319_v50  ;;  %v9869_v22 = vrot.slane %v5159_v35, 7 }
 0x14b   : > { %9868 = vst [vmem:[#allocation74_spill] sm:$0xff] %v5335_v47  ;;  %9872 = vst [vmem:[#allocation76_spill] sm:$0xff] %v5376_v48  ;;  %v5380_v0 = vmul.f32 %v9864_v41, %v5341_v55  ;;  %v5384_v38 = vmul.f32 %v5341_v55, %v4903_v46  ;;  %v9876_v33 = vrot.slane %v5053_v28, 1  ;;  %v9879_v47 = vld [vmem:[#allocation4_spill] sm:$0xff]  ;;  %v2038_v2 = vrot.slane %v5346_v9, 7 }
 0x14c   : > { %v5367_v3 = vsel %vm769_vm3, %v9870_v14, %v9869_v22  ;;  %v9875_v22 = vrot.slane %v5227_v61, 1  ;;  %v5400_v50 = vmul.f32 %v9879_v47, %v9824_v29  ;;  %v9881_v52 = vrot.slane %v4973_v57, 1  ;;  %1132 = vrot.lane.b32.xlu1 %v4641_v23, %s4386_s13  ;;  %2885 = vrot.lane.b32.xlu0 %v5203_v16, %s4386_s13 }
 0x14d   : > { %9871 = vst [vmem:[#allocation75_spill] sm:$0xff] %v5367_v3  ;;  %9873 = vst [vmem:[#allocation77_spill] sm:$0xff] %v5380_v0  ;;  %v5396_v3 = vsel %vm708_vm2, %v2640_v8, %v9374_v59  ;;  %v2040_v8 = vrot.slane %v1997_v13, 7  ;;  %v9885_v57 = vrot.slane %v5036_v62, 7  ;;  %v5432_v36 = vmul.f32 %v4733_v27, %v5380_v0 }
 0x14e   : > { %9874 = vst [vmem:[#allocation78_spill] sm:$0xff] %v5384_v38  ;;  %v5391_v14 = vsel %vm708_vm2, %v9876_v33, %v9875_v22  ;;  %9878 = vst [vmem:[#allocation80_spill] sm:$0xff] %v5396_v3  ;;  %v5407_v28 = vsel %vm708_vm2, %v9881_v52, %v1643_v43  ;;  %v9883_v22 = vrot.slane %v5131_v1, 1  ;;  %v9378_v59 = vrot.slane %v5400_v50, 1  ;;  %v9897_v3 = vld [vmem:[#allocation25_spill] sm:$0xff] }
 0x14f   : > { %9877 = vst [vmem:[#allocation79_spill] sm:$0xff] %v5391_v14  ;;  %9880 = vst [vmem:[#allocation4_spill] sm:$0xff] %v5400_v50  ;;  %v5423_v52 = vsel %vm769_vm3, %v9885_v57, %v2034_v56  ;;  %v9887_v13 = vrot.slane %v5140_v49, 7  ;;  %v5441_v62 = vmul.f32 %v4739_v17, %v5384_v38  ;;  %v9889_v57 = vrot.slane %v5210_v4, 1 }
 0x150   : > { %9882 = vst [vmem:[#allocation81_spill] sm:$0xff] %v5407_v28  ;;  %v5412_v33 = vsel %vm708_vm2, %v9883_v22, %v1645_v11  ;;  %9886 = vst [vmem:[#allocation83_spill] sm:$0xff] %v5423_v52  ;;  %v5428_v22 = vmul.f32 %v4713_v60, %v5376_v48  ;;  %v5451_v16 = vsel %vm708_vm2, %v1643_v43, %v1647_v10  ;;  %v9893_v49 = vrot.slane %v4960_v15, 1 }
 0x151   : > { %9884 = vst [vmem:[#allocation82_spill] sm:$0xff] %v5412_v33  ;;  %v5437_v9 = vsel %vm769_vm3, %v9887_v13, %v2036_v34  ;;  %v5448_v1 = vsel %vm708_vm2, %v9889_v57, %v9378_v59  ;;  %9891 = vst [vmem:[#allocation86_spill] sm:$0xff] %v5451_v16  ;;  %v5454_v52 = vsel %vm708_vm2, %v1645_v11, %v1649_v24  ;;  %v9894_v13 = vld [vmem:[#allocation33_spill] sm:$0xff]  ;;  %v9896_v28 = vrot.slane %v9836_v6, 7  ;;  %v2796_v11 = vld [vmem:[#allocation2 + $0x28] sm:$0x80] }
 0x152   : > { %9888 = vst [vmem:[#allocation84_spill] sm:$0xff] %v5437_v9  ;;  %9890 = vst [vmem:[#allocation85_spill] sm:$0xff] %v5448_v1  ;;  %v9895_v9 = vrot.slane %v9894_v13, 1  ;;  %v9898_v14 = vrot.slane %v9897_v3, 7  ;;  %v5468_v43 = vsel %vm769_vm3, %v2034_v56, %v2038_v2  ;;  %v5473_v15 = vsel %vm769_vm3, %v2036_v34, %v2040_v8 }
 0x153   : > { %9892 = vst [vmem:[#allocation87_spill] sm:$0xff] %v5454_v52  ;;  %9899 = vst [vmem:[#allocation33_spill] sm:$0xff] %v5468_v43  ;;  %v9905_v56 = vrot.slane %v5159_v35, 7  ;;  %v4154_v13 = vld [vmem:[%s9276_s3 + $0x23] ss:$8 sm:$0x3] }
 0x154   : > { %v1450_v33 = vsel %vm708_vm2, %v9895_v9, %v9893_v49  ;;  %v783_v38 = vsel %vm769_vm3, %v9898_v14, %v9896_v28  ;;  %9900 = vst [vmem:[#allocation25_spill] sm:$0xff] %v5473_v15  ;;  %v9901_v9 = vrot.slane %v5163_v12, 7  ;;  %v9902_v49 = vrot.slane %v5127_v21, 7  ;;  %v488_v15 = vpop.f32.mrb[14].mxu0 }
 0x155   : > { %1509 = vrot.lane.b32.xlu1 %v1450_v33, %s4386_s13  ;;  %840 = vrot.lane.b32.xlu0 %v783_v38, %s4386_s13  ;;  %v9904_v14 = vrot.slane %v5223_v44, 7  ;;  %v9910_v35 = vrot.slane %v5360_v39, 7  ;;  %v9912_v34 = vrot.slane %v5372_v63, 1  ;;  %v9914_v21 = vrot.slane %v5064_v7, 7  ;;  %v9918_v44 = vld [vmem:[#allocation6_spill] sm:$0xff]  ;;  %v490_v0 = vpop.f32.mrb[15].mxu0 }
 0x156   : > { %v5480_v3 = vsel %vm769_vm3, %v9902_v49, %v9901_v9  ;;  %v9907_v9 = vrot.slane %v5350_v32, 7  ;;  %v9908_v49 = vrot.slane %v5163_v12, 7 }
 0x157   : > { %9903 = vst [vmem:[#allocation88_spill] sm:$0xff] %v5480_v3  ;;  %v5487_v28 = vsel %vm769_vm3, %v9905_v56, %v9904_v14  ;;  %v5507_v56 = vsel %vm769_vm3, %v9904_v14, %v9910_v35  ;;  %v5512_v59 = vsel %vm708_vm2, %v1647_v10, %v9912_v34  ;;  %v5528_v35 = vrot.slane %v4154_v13, %v9918_v44  ;;  %v5608_v3 = vld [vmem:[#allocation2 + $0x10] sm:$0xff] }
 0x158   : > { %9906 = vst [vmem:[#allocation89_spill] sm:$0xff] %v5487_v28  ;;  %v5500_v57 = vsel %vm769_vm3, %v9908_v49, %v9907_v9  ;;  %9911 = vst [vmem:[#allocation91_spill] sm:$0xff] %v5507_v56  ;;  %v9915_v28 = vrot.slane %v4907_v53, 7  ;;  %v5520_v9 = vmul.f32 %v2796_v11, %v4501_v20  ;;  %v9916_v49 = vld [vmem:[#allocation5_spill] sm:$0xff]  ;;  %v5532_v10 = vmul.f32 %v4722_v18, %v4641_v23  ;;  %v9922_v20 = vld [vmem:[#allocation3_spill] sm:$0xff] }
 0x159   : > { %9909 = vst [vmem:[#allocation90_spill] sm:$0xff] %v5500_v57  ;;  %9913 = vst [vmem:[#allocation92_spill] sm:$0xff] %v5512_v59  ;;  %v5523_v57 = vrot.slane %v4154_v13, %v9916_v49  ;;  %1050 = vrot.lane.b32.xlu0 %v783_v38, %s4387_s11  ;;  %v5536_v53 = vmul.f32 %v4514_v25, %v4632_v19  ;;  %v5539_v11 = vadd.s32 56, %v9922_v20  ;;  %v9925_v38 = vrot.slane %v5428_v22, 7  ;;  %v5575_v20 = vpop.permute.xlu0 %4236  ;;  %v9936_v59 = vld [vmem:[#allocation56_spill] sm:$0xff]  ;;  %v9944_v56 = vld [vmem:[#allocation30_spill] sm:$0xff] }
 0x15a   : > { %v1841_v12 = vsel %vm769_vm3, %v9915_v28, %v9914_v21  ;;  %9919 = vst [vmem:[#allocation94_spill] sm:$0xff] %v5528_v35  ;;  %9920 = vst [vmem:[#allocation95_spill] sm:$0xff] %v5532_v10  ;;  %v9923_v28 = vrot.slane %v5432_v36, 1  ;;  %v9927_v21 = vrot.slane %v5441_v62, 7  ;;  %v2992_v19 = vmul.f32 %v5528_v35, %v5520_v9 }
 0x15b   : > { %9917 = vst [vmem:[#allocation93_spill] sm:$0xff] %v5523_v57  ;;  %2108 = vrot.lane.b32.xlu1 %v1841_v12, %s4387_s11  ;;  %9921 = vst [vmem:[#allocation96_spill] sm:$0xff] %v5536_v53  ;;  %v5549_v13 = vsel %vm769_vm3, %v2038_v2, %v9925_v38  ;;  %v2991_v25 = vmul.f32 %v5523_v57, %v5060_v40  ;;  %v5568_v2 = vmul.f32 %v5523_v57, %v5532_v10 }
 0x15c   : > { %v5544_v34 = vsel %vm708_vm2, %v1649_v24, %v9923_v28  ;;  %9926 = vst [vmem:[#allocation97_spill] sm:$0xff] %v5549_v13  ;;  %v5554_v14 = vsel %vm769_vm3, %v2040_v8, %v9927_v21  ;;  %v2993_v24 = vmul.f32 %v5523_v57, %v5089_v58  ;;  %v5572_v8 = vmul.f32 %v5528_v35, %v5536_v53 }
 0x15d   : > { %9924 = vst [vmem:[#allocation3_spill] sm:$0xff] %v5544_v34  ;;  %9928 = vst [vmem:[#allocation98_spill] sm:$0xff] %v5554_v14  ;;  %1270 = vrot.lane.b32.xlu0 %v4641_v23, %s4387_s11  ;;  %v579_v40 = vand.u32 7, %v5539_v11  ;;  %v3027_v28 = vrot.slane %v2991_v25, 7  ;;  %v3030_v38 = vrot.slane %v2992_v19, 7  ;;  %v5584_v34 = vmul.f32 %v4722_v18, %v4644_v26  ;;  %v821_v18 = vpop.permute.xlu0 %820 }
 0x15e   : > { %v3028_v21 = vrot.slane %v2993_v24, 7  ;;  %v3031_v13 = vrot.slane %v5572_v8, 7  ;;  %v5588_v11 = vmul.f32 %v9879_v47, %v4656_v30  ;;  %v2447_v19 = vrot.slane %v5105_v45, 1  ;;  %9937 = vst [vmem:[#allocation103_spill] sm:$0xff] %v5608_v3 }
 0x15f   : > { %1286 = vrot.lane.b32.xlu1 %v4644_v26, %s4387_s11  ;;  %9929 = vst [vmem:[#allocation99_spill] sm:$0xff] %v5584_v34  ;;  %vm5590_vm15 = vcmp.ge.s32.totalorder %v579_v40, 1  ;;  %v9933_v24 = vlaneseq  ;;  %v9945_v25 = vrot.slane %v9936_v59, 1  ;;  %vm653_vm4 = vcmp.le.s32.totalorder %v579_v40, 6 }
 0x160   : > { %9930 = vst [vmem:[#allocation100_spill] sm:$0xff] %v5588_v11  ;;  %v5599_v14 = vsel %vm769_vm3, %v3027_v28, %v3028_v21  ;;  %v5602_v8 = vsel %vm769_vm3, %v3030_v38, %v3031_v13  ;;  %v4127_v45 = vsel %vm5590_vm15, 1.0, %v5608_v3  ;;  %v9942_v38 = vrot.slane %v5568_v2, 7 }
 0x161   : > { %1717 = vrot.lane.b32.xlu0 %v1450_v33, %s4387_s11  ;;  %v5596_v33 = vand.u32 127, %v9933_v24  ;;  %9934 = vst [vmem:[#allocation101_spill] sm:$0xff] %v5599_v14  ;;  %9935 = vst [vmem:[#allocation102_spill] sm:$0xff] %v5602_v8  ;;  %v9938_v24 = vld [vmem:[#allocation18_spill] sm:$0xff]  ;;  %v2606_v52 = vmul.f32 %v9944_v56, %v5588_v11  ;;  %v5637_v1 = vrot.slane %v4127_v45, 1  ;;  %v9952_v11 = vld [vmem:[#allocation11_spill] sm:$0xff] }
 0x162   : > { %v9939_v28 = vand.u32 7, %v9938_v24  ;;  %v5622_v43 = vsel %vm769_vm3, %v3028_v21, %v9942_v38  ;;  %v2449_v24 = vsel %vm708_vm2, %v2447_v19, %v9945_v25  ;;  %v9949_v38 = vld [vmem:[#allocation32_spill] sm:$0xff]  ;;  %v4160_v19 = vld [vmem:[%s9276_s3 + $0x31] ss:$8 sm:$0x3]  ;;  %v491_v31 = vadd.f32 %v490_v0, %v9952_v11 }
 0x163   : > { %1272 = vrot.lane.b32.xlu1 %v4656_v30, %s4387_s11  ;;  %9943 = vst [vmem:[#allocation18_spill] sm:$0xff] %v5622_v43  ;;  %9948 = vst [vmem:[#allocation105_spill] sm:$0xff] %v5637_v1  ;;  %v2607_v43 = vmul.f32 %v9949_v38, %v5400_v50  ;;  %vm854_vm1 = vcmp.lt.s32.totalorder %v5596_v33, 32  ;;  %v871_v45 = vld [vmem:[%s9276_s3] ss:$8 sm:$0x3]  ;;  %v5662_v46 = vrot.slane %v4160_v19, %v9916_v49 }
 0x164   : > { %vm5615_vm0 = vcmp.le.s32.totalorder %v9939_v28, 6  ;;  %v9946_v28 = vld [vmem:[#allocation36_spill] sm:$0xff]  ;;  %v9951_v50 = vld [vmem:[#allocation10_spill] sm:$0xff]  ;;  %v2646_v48 = vrot.slane %v2606_v52, 1  ;;  %v5681_v11 = vrot.slane %v871_v45, %v9916_v49  ;;  %516 = vst [vmem:[#allocation2 + $0x98] sm:$0xff] %v491_v31  ;;  %vm1062_vm5 = vcmp.lt.s32.totalorder %v5596_v33, 96 }
 0x165   : > { %1900 = vrot.lane.b32.xlu0 %v1841_v12, %s4386_s13  ;;  %v5626_v12 = vmul.f32 %v5528_v35, %v5584_v34  ;;  %v5635_v16 = vmul.f32 %v9946_v28, %v5288_v42  ;;  %v4134_v21 = vsel %vm5615_vm0, 1.0, %v5608_v3  ;;  %v5646_v8 = vmul.f32 %v9946_v28, %v5341_v55  ;;  %v837_v28 = vpop.permute.xlu0 %836  ;;  %9953 = vst [vmem:[#allocation10_spill] sm:$0xff] %v5662_v46  ;;  %v9954_v34 = vld [vmem:[#allocation26_spill] sm:$0xff] }
 0x166   : > { %v489_v14 = vadd.f32 %v488_v15, %v9951_v50  ;;  %v1392_v7 = vrot.slane %v4134_v21, 7  ;;  %v9955_v59 = vrot.slane %v9954_v34, 1  ;;  %v2648_v52 = vrot.slane %v2607_v43, 1  ;;  %9959 = vst [vmem:[#allocation108_spill] sm:$0xff] %v5681_v11  ;;  %v5693_v43 = vld [vmem:[%s9277_s4] sm:$0x3] }
 0x167   : > { %2191 = vrot.lane.b32.xlu1 %v4656_v30, %s4386_s13  ;;  %9947 = vst [vmem:[#allocation104_spill] sm:$0xff] %v5635_v16  ;;  %9950 = vst [vmem:[#allocation106_spill] sm:$0xff] %v5646_v8  ;;  %v5672_v25 = vmul.f32 %v9944_v56, %v5635_v16  ;;  %v5676_v50 = vmul.f32 %v9949_v38, %v5646_v8  ;;  %v863_v0 = vsel %vm854_vm1, %v837_v28, %v821_v18  ;;  %v9961_v34 = vld [vmem:[#allocation48_spill] sm:$0xff]  ;;  %v9966_v16 = vld [vmem:[#allocation43_spill] sm:$0xff] }
 0x168   : > { %v5668_v4 = vsel %vm708_vm2, %v9955_v59, %v5637_v1  ;;  %515 = vst [vmem:[#allocation2 + $0x90] sm:$0xff] %v489_v14  ;;  %v5688_v59 = vrot.slane %v4160_v19, %v9918_v44  ;;  %v9962_v21 = vrot.slane %v5626_v12, 7  ;;  %v9964_v8 = vrot.slane %v5227_v61, 1  ;;  %v9968_v56 = vld [vmem:[#allocation27_spill] sm:$0xff] }
 0x169   : > { %2510 = vrot.lane.b32.xlu0 %v2449_v24, %s4386_s13  ;;  %9956 = vst [vmem:[#allocation11_spill] sm:$0xff] %v5668_v4  ;;  %9957 = vst [vmem:[#allocation26_spill] sm:$0xff] %v5672_v25  ;;  %v2838_v19 = vrot.slane %v5520_v9, 7  ;;  %v5709_v38 = vmul.f32 %v5668_v4, %v9966_v16  ;;  %v9969_v41 = vrot.slane %v9968_v56, 7  ;;  %v4135_v14 = vsel %vm653_vm4, 1.0, %v5608_v3  ;;  %v5734_v56 = vpop.permute.xlu0 %1030 }
 0x16a   : > { %9958 = vst [vmem:[#allocation107_spill] sm:$0xff] %v5676_v50  ;;  %9960 = vst [vmem:[#allocation109_spill] sm:$0xff] %v5688_v59  ;;  %v5699_v15 = vsel %vm769_vm3, %v3031_v13, %v9962_v21  ;;  %v5704_v31 = vsel %vm708_vm2, %v9964_v8, %v2646_v48  ;;  %v5717_v13 = vrot.slane %v4135_v14, 7  ;;  %v9972_v61 = vrot.slane %v5276_v5, 1  ;;  %v9975_v5 = vld [vmem:[#allocation44_spill] sm:$0xff] }
 0x16b   : > { %2323 = vrot.lane.b32.xlu1 %v4656_v30, %s4387_s11  ;;  %9963 = vst [vmem:[#allocation110_spill] sm:$0xff] %v5699_v15  ;;  %9965 = vst [vmem:[#allocation111_spill] sm:$0xff] %v5704_v31  ;;  %v5714_v40 = vsel %vm769_vm3, %v9969_v41, %v1392_v7  ;;  %v9404_v9 = vrot.slane %v5672_v25, 1  ;;  %v5728_v31 = vrot.slane %v5693_v43, %v9916_v49  ;;  %v698_v21 = vld [vmem:[#allocation2 + $0x80] sm:$0x7f] }
 0x16c   : > { %9967 = vst [vmem:[#allocation112_spill] sm:$0xff] %v5709_v38  ;;  %9970 = vst [vmem:[#allocation27_spill] sm:$0xff] %v5714_v40  ;;  %v5722_v8 = vsel %vm708_vm2, %v9972_v61, %v2648_v52  ;;  %v5732_v41 = vsel %vm854_vm1, %v821_v18, %v837_v28  ;;  %v5741_v14 = vmul.f32 %v5668_v4, %v9975_v5  ;;  %v9979_v28 = vrot.slane %v5676_v50, 1  ;;  %v699_v3 = vld [vmem:[#allocation2 + $0x88] sm:$0x7f] }
 0x16d   : > { %2189 = vrot.lane.b32.xlu0 %v4641_v23, %s4386_s13  ;;  %9971 = vst [vmem:[#allocation113_spill] sm:$0xff] %v5717_v13  ;;  %9973 = vst [vmem:[#allocation114_spill] sm:$0xff] %v5722_v8  ;;  %v5744_v61 = vrot.slane %v871_v45, %v9918_v44  ;;  %v5750_v18 = vsel %vm708_vm2, %v2646_v48, %v9404_v9  ;;  %v5762_v15 = vmul.f32 %v5714_v40, %v9966_v16 }
 0x16e   : > { %9974 = vst [vmem:[#allocation115_spill] sm:$0xff] %v5734_v56  ;;  %9976 = vst [vmem:[#allocation116_spill] sm:$0xff] %v5741_v14  ;;  %v5755_v8 = vsel %vm708_vm2, %v2648_v52, %v9979_v28  ;;  %v5766_v45 = vmul.f32 %v5714_v40, %v9975_v5  ;;  %v5770_v48 = vsel %vm769_vm3, %v1392_v7, %v5717_v13  ;;  %v9984_v9 = vrot.slane %v9961_v34, 7  ;;  %v9985_v52 = vld [vmem:[#allocation28_spill] sm:$0xff]  ;;  %v5791_v7 = vpop.permute.xlu1 %4241  ;;  %v3335_v34 = vld [vmem:[#allocation2 + $0x30] sm:$0xfe] }
 0x16f   : > { %1150 = vrot.lane.b32.xlu1 %v9824_v29, %s4386_s13  ;;  %9977 = vst [vmem:[#allocation117_spill] sm:$0xff] %v5744_v61  ;;  %9978 = vst [vmem:[#allocation118_spill] sm:$0xff] %v5750_v18  ;;  %v9986_v28 = vrot.slane %v9985_v52, 7  ;;  %v5785_v25 = vmul.f32 %v4582_v54, %v5709_v38  ;;  %v9993_v52 = vld [vmem:[#allocation21_spill] sm:$0xff]  ;;  %v10007_v56 = vld [vmem:[#allocation31_spill] sm:$0xff] }
 0x170   : > { %9980 = vst [vmem:[#allocation119_spill] sm:$0xff] %v5755_v8  ;;  %9981 = vst [vmem:[#allocation120_spill] sm:$0xff] %v5762_v15  ;;  %v9987_v8 = vrot.slane %v5536_v53, 7  ;;  %v9997_v38 = vld [vmem:[#allocation45_spill] sm:$0xff]  ;;  %v5820_v53 = vpop.permute.xlu0 %1046 }
 0x171   : > { %2718 = vrot.lane.b32.xlu0 %v2449_v24, %s4387_s11  ;;  %v5758_v24 = vmul.f32 %v5681_v11, %v863_v0  ;;  %9982 = vst [vmem:[#allocation121_spill] sm:$0xff] %v5766_v45  ;;  %9983 = vst [vmem:[#allocation122_spill] sm:$0xff] %v5770_v48  ;;  %v785_v0 = vsel %vm769_vm3, %v9986_v28, %v9984_v9  ;;  %v9989_v11 = vld [vmem:[#allocation12_spill] sm:$0xff]  ;;  %v5795_v9 = vmul.f32 %v9823_v37, %v5741_v14 }
 0x172   : > { %v5780_v18 = vsel %vm769_vm3, %v2838_v19, %v9987_v8  ;;  %9990 = vst [vmem:[#allocation123_spill] sm:$0xff] %v5791_v7  ;;  %v9991_v19 = vld [vmem:[#allocation37_spill] sm:$0xff]  ;;  %v5803_v28 = vmul.f32 %v9993_v52, %v4656_v30  ;;  %v5814_v13 = vmul.f32 %v5770_v48, %v9997_v38  ;;  %v5818_v14 = vmul.f32 %v9993_v52, %v9824_v29 }
 0x173   : > { %2205 = vrot.lane.b32.xlu1 %v9824_v29, %s4386_s13  ;;  %9988 = vst [vmem:[#allocation28_spill] sm:$0xff] %v5780_v18  ;;  %v5799_v8 = vmul.f32 %v9991_v19, %v9966_v16  ;;  %v5807_v50 = vmul.f32 %v9991_v19, %v9975_v5  ;;  %10000 = vst [vmem:[#allocation128_spill] sm:$0xff] %v5820_v53  ;;  %v5824_v30 = vmul.f32 %v4706_v51, %v5762_v15  ;;  %v10005_v52 = vld [vmem:[#allocation41_spill] sm:$0xff] }
 0x174   : > { %9994 = vst [vmem:[#allocation21_spill] sm:$0xff] %v5803_v28  ;;  %9998 = vst [vmem:[#allocation45_spill] sm:$0xff] %v5814_v13  ;;  %v5828_v19 = vmul.f32 %v4733_v27, %v5766_v45  ;;  %v5835_v5 = vmul.f32 %v5637_v1, %v699_v3  ;;  %v10006_v16 = vrot.slane %v10005_v52, 1  ;;  %v990_v15 = vrot.slane %v5785_v25, 7 }
 0x175   : > { %2321 = vrot.lane.b32.xlu0 %v4641_v23, %s4387_s11  ;;  %9992 = vst [vmem:[#allocation124_spill] sm:$0xff] %v5799_v8  ;;  %9995 = vst [vmem:[#allocation125_spill] sm:$0xff] %v5807_v50  ;;  %v5810_v23 = vmul.f32 %v5637_v1, %v698_v21  ;;  %v10001_v21 = vld [vmem:[#allocation46_spill] sm:$0xff]  ;;  %v5847_v45 = vmul.f32 %v5288_v42, %v10007_v56  ;;  %v992_v3 = vrot.slane %v5795_v9, 7  ;;  %v3337_v42 = vld [vmem:[#allocation2 + $0x40] sm:$0xff] }
 0x176   : > { %9999 = vst [vmem:[#allocation127_spill] sm:$0xff] %v5818_v14  ;;  %v5832_v40 = vmul.f32 %v5770_v48, %v10001_v21  ;;  %10003 = vst [vmem:[#allocation129_spill] sm:$0xff] %v5835_v5  ;;  %v5851_v48 = vmul.f32 %v5341_v55, %v10007_v56  ;;  %v5863_v25 = vmul.f32 %v5523_v57, %v5803_v28  ;;  %v3336_v55 = vld [vmem:[#allocation2 + $0x38] sm:$0xfe]  ;;  %v3339_v1 = vld [vmem:[#allocation2 + $0x50] sm:$0xff]  ;;  %v1657_v53 = vrot.slane %v5828_v19, 1 }
 0x177   : > { %2337 = vrot.lane.b32.xlu1 %v9824_v29, %s4387_s11  ;;  %9996 = vst [vmem:[#allocation126_spill] sm:$0xff] %v5810_v23  ;;  %v10004_v29 = vrot.slane %v9989_v11, 1  ;;  %10008 = vst [vmem:[#allocation41_spill] sm:$0xff] %v5847_v45  ;;  %v5870_v56 = vmul.f32 %v4739_v17, %v5807_v50  ;;  %v944_v9 = vmul.f32 %v4582_v54, %v5810_v23  ;;  %v5884_v11 = vpop.permute.xlu1 %1128  ;;  %v1655_v50 = vrot.slane %v5824_v30, 1 }
 0x178   : > { %10002 = vst [vmem:[#allocation46_spill] sm:$0xff] %v5832_v40  ;;  %10009 = vst [vmem:[#allocation31_spill] sm:$0xff] %v5851_v48  ;;  %v5880_v28 = vmul.f32 %v5528_v35, %v5818_v14  ;;  %v5890_v54 = vmul.f32 %v4733_v27, %v5832_v40  ;;  %v5896_v14 = vmul.f32 %v5523_v57, %v5847_v45  ;;  %v10020_v45 = vld [vmem:[#allocation24_spill] sm:$0xff]  ;;  %v3037_v40 = vrot.slane %v5863_v25, 7 }
 0x179   : > { %v5842_v7 = vsel %vm708_vm2, %v10006_v16, %v10004_v29  ;;  %2901 = vrot.lane.b32.xlu0 %v5780_v18, %s4386_s13  ;;  %v5859_v16 = vmul.f32 %v4713_v60, %v5799_v8  ;;  %v10010_v29 = vld [vmem:[#allocation13_spill] sm:$0xff]  ;;  %v5876_v18 = vmul.f32 %v4706_v51, %v5814_v13  ;;  %v3338_v8 = vld [vmem:[#allocation2 + $0x48] sm:$0xff]  ;;  %10014 = vst [vmem:[#allocation132_spill] sm:$0xff] %v5884_v11  ;;  %v10027_v25 = vrot.slane %v5350_v32, 7 }
 0x17a   : > { %v5866_v52 = vmul.f32 %v3335_v34, %v10010_v29  ;;  %v5882_v34 = vpop.permute.xlu0 %1266  ;;  %10015 = vst [vmem:[#allocation133_spill] sm:$0xff] %v5890_v54  ;;  %v945_v13 = vmul.f32 %v9823_v37, %v5835_v5  ;;  %v5900_v23 = vmul.f32 %v5528_v35, %v5851_v48  ;;  %v5906_v19 = vmul.f32 %v3336_v55, %v10010_v29  ;;  %v3340_v5 = vld [vmem:[#allocation2 + $0x58] sm:$0xff] }
 0x17b   : > { %826 = vrot.lane.b32.xlu1 %v785_v0, %s4386_s13  ;;  %10012 = vst [vmem:[#allocation130_spill] sm:$0xff] %v5876_v18  ;;  %10013 = vst [vmem:[#allocation131_spill] sm:$0xff] %v5882_v34  ;;  %v10016_v34 = vld [vmem:[#allocation22_spill] sm:$0xff]  ;;  %v994_v55 = vrot.slane %v944_v9, 7  ;;  %v5927_v37 = vpop.permute.xlu1 %1282  ;;  %v5943_v29 = vsel %vm769_vm3, %v10027_v25, %v990_v15  ;;  %v10031_v32 = vrot.slane %v5859_v16, 7  ;;  %v5971_v25 = vmul.f32 %v5668_v4, %v9997_v38 }
 0x17c   : > { %10011 = vst [vmem:[#allocation13_spill] sm:$0xff] %v5866_v52  ;;  %v5903_v51 = vmul.f32 %v3337_v42, %v10016_v34  ;;  %10018 = vst [vmem:[#allocation134_spill] sm:$0xff] %v5906_v19  ;;  %v5914_v30 = vmul.f32 %v5662_v46, %v5866_v52  ;;  %v5917_v48 = vmul.f32 %v3338_v8, %v10016_v34  ;;  %v996_v11 = vrot.slane %v945_v13, 7 }
 0x17d   : > { %1148 = vrot.lane.b32.xlu0 %v4644_v26, %s4386_s13  ;;  %v5920_v42 = vmul.f32 %v3339_v1, %v10020_v45  ;;  %10022 = vst [vmem:[#allocation136_spill] sm:$0xff] %v5927_v37  ;;  %v10023_v8 = vrot.slane %v5372_v63, 1  ;;  %v10025_v34 = vrot.slane %v5432_v36, 1  ;;  %10028 = vst [vmem:[#allocation139_spill] sm:$0xff] %v5943_v29  ;;  %v10029_v37 = vrot.slane %v5360_v39, 7 }
 0x17e   : > { %10017 = vst [vmem:[#allocation22_spill] sm:$0xff] %v5903_v51  ;;  %10019 = vst [vmem:[#allocation135_spill] sm:$0xff] %v5917_v48  ;;  %v5925_v27 = vpop.permute.xlu0 %2185  ;;  %v3039_v63 = vrot.slane %v5880_v28, 7  ;;  %v3547_v36 = vmul.f32 %v5662_v46, %v5903_v51  ;;  %v10032_v39 = vrot.slane %v5428_v22, 7  ;;  %v5966_v28 = vmul.f32 %v3340_v5, %v10020_v45 }
 0x17f   : > { %1036 = vrot.lane.b32.xlu1 %v785_v0, %s4387_s11  ;;  %10021 = vst [vmem:[#allocation24_spill] sm:$0xff] %v5920_v42  ;;  %v5933_v1 = vsel %vm708_vm2, %v10023_v8, %v1655_v50  ;;  %v5938_v9 = vsel %vm708_vm2, %v10025_v34, %v1657_v53  ;;  %v3341_v0 = vld [vmem:[#allocation2 + $0x60] sm:$0xff]  ;;  %v5948_v13 = vsel %vm769_vm3, %v10029_v37, %v992_v3  ;;  %10035 = vst [vmem:[#allocation143_spill] sm:$0xff] %v5971_v25  ;;  %v5988_v45 = vpop.permute.xlu1 %1268 }
 0x180   : > { %10024 = vst [vmem:[#allocation137_spill] sm:$0xff] %v5933_v1  ;;  %10026 = vst [vmem:[#allocation138_spill] sm:$0xff] %v5938_v9  ;;  %v5963_v37 = vsel %vm769_vm3, %v10032_v39, %v10031_v32  ;;  %v10036_v8 = vrot.slane %v5870_v56, 7  ;;  %v10037_v52 = vrot.slane %v5441_v62, 7  ;;  %v5981_v22 = vsel %vm769_vm3, %v990_v15, %v994_v55  ;;  %v10075_v9 = vld [vmem:[#allocation115_spill] sm:$0xff] }
 0x181   : > { %10030 = vst [vmem:[#allocation140_spill] sm:$0xff] %v5948_v13  ;;  %2203 = vrot.lane.b32.xlu0 %v4644_v26, %s4386_s13  ;;  %10033 = vst [vmem:[#allocation141_spill] sm:$0xff] %v5963_v37  ;;  %v5984_v32 = vmul.f32 %v3341_v0, %v9879_v47  ;;  %v5992_v39 = vmul.f32 %v5668_v4, %v10001_v21  ;;  %v5995_v34 = vsel %vm769_vm3, %v992_v3, %v996_v11  ;;  %v3342_v0 = vld [vmem:[#allocation2 + $0x68] sm:$0xff]  ;;  %v10120_v4 = vld [vmem:[#allocation99_spill] sm:$0xff] }
 0x182   : > { %10034 = vst [vmem:[#allocation142_spill] sm:$0xff] %v5966_v28  ;;  %v5978_v13 = vsel %vm769_vm3, %v10037_v52, %v10036_v8  ;;  %10039 = vst [vmem:[#allocation145_spill] sm:$0xff] %v5981_v22  ;;  %v5986_v5 = vpop.permute.xlu0 %2317  ;;  %v10045_v62 = vrot.slane %v5876_v18, 1  ;;  %v10047_v15 = vrot.slane %v5890_v54, 1  ;;  %v10049_v22 = vrot.slane %v5568_v2, 7  ;;  %v10164_v18 = vld [vmem:[#allocation37_spill] sm:$0xff] }
 0x183   : > { %2496 = vrot.lane.b32.xlu1 %v5842_v7, %s4386_s13  ;;  %10038 = vst [vmem:[#allocation144_spill] sm:$0xff] %v5978_v13  ;;  %10040 = vst [vmem:[#allocation146_spill] sm:$0xff] %v5984_v32  ;;  %v10051_v11 = vrot.slane %v5626_v12, 7  ;;  %v3548_v2 = vmul.f32 %v5688_v59, %v5917_v48  ;;  %v10055_v12 = vrot.slane %v5900_v23, 7  ;;  %v3581_v8 = vrot.slane %v5914_v30, 1 }
 0x184   : > { %10041 = vst [vmem:[#allocation147_spill] sm:$0xff] %v5986_v5  ;;  %10042 = vst [vmem:[#allocation148_spill] sm:$0xff] %v5988_v45  ;;  %v6000_v52 = vsel %vm708_vm2, %v1655_v50, %v10045_v62  ;;  %v6005_v55 = vsel %vm708_vm2, %v1657_v53, %v10047_v15  ;;  %v6011_v13 = vsel %vm769_vm3, %v10049_v22, %v3037_v40  ;;  %v10053_v50 = vrot.slane %v5896_v14, 7  ;;  %v4137_v30 = vld [vmem:[%s9276_s3 + $0x2] ss:$8 sm:$0x3] }
 0x185   : > { %10043 = vst [vmem:[#allocation149_spill] sm:$0xff] %v5992_v39  ;;  %10044 = vst [vmem:[#allocation150_spill] sm:$0xff] %v5995_v34  ;;  %v6016_v3 = vsel %vm769_vm3, %v10051_v11, %v3039_v63  ;;  %2335 = vrot.lane.b32.xlu0 %v4644_v26, %s4387_s11  ;;  %v3546_v53 = vmul.f32 %v5688_v59, %v5906_v19  ;;  %v6035_v22 = vsel %vm769_vm3, %v3039_v63, %v10055_v12  ;;  %v10094_v19 = vld [vmem:[#allocation38_spill] sm:$0xff] }
 0x186   : > { %10046 = vst [vmem:[#allocation151_spill] sm:$0xff] %v6000_v52  ;;  %10048 = vst [vmem:[#allocation152_spill] sm:$0xff] %v6005_v55  ;;  %v6021_v62 = vsel %vm769_vm3, %v3037_v40, %v10053_v50  ;;  %v3549_v40 = vmul.f32 %v5662_v46, %v5920_v42  ;;  %v6045_v26 = vmul.f32 %v5662_v46, %v5984_v32  ;;  %v6050_v11 = vpop.permute.xlu0 %1144  ;;  %v6052_v50 = vpop.permute.xlu1 %2187  ;;  %v10065_v32 = vld [vmem:[#allocation52_spill] sm:$0xff] }
 0x187   : > { %10050 = vst [vmem:[#allocation153_spill] sm:$0xff] %v6011_v13  ;;  %10052 = vst [vmem:[#allocation154_spill] sm:$0xff] %v6016_v3  ;;  %2704 = vrot.lane.b32.xlu1 %v5842_v7, %s4387_s11  ;;  %v6041_v7 = vmul.f32 %v5688_v59, %v5966_v28  ;;  %v6048_v15 = vmul.f32 %v3342_v0, %v9879_v47  ;;  %v6056_v63 = vmul.f32 %v4713_v60, %v5971_v25  ;;  %v10093_v28 = vld [vmem:[#allocation43_spill] sm:$0xff]  ;;  %v10105_v25 = vld [vmem:[#allocation29_spill] sm:$0xff] }
 0x188   : > { %10054 = vst [vmem:[#allocation155_spill] sm:$0xff] %v6021_v62  ;;  %10056 = vst [vmem:[#allocation156_spill] sm:$0xff] %v6035_v22  ;;  %v6060_v12 = vmul.f32 %v4739_v17, %v5992_v39  ;;  %v3582_v22 = vrot.slane %v3547_v36, 1  ;;  %v4239_v62 = vunpack.i.h.bf16 %v5575_v20  ;;  %v6066_v47 = vrot.slane %v5693_v43, %v9918_v44  ;;  %v4332_v43 = vld [vmem:[#allocation2 + $0x50] sm:$0xff] }
 0x189   : > { %10057 = vst [vmem:[#allocation157_spill] sm:$0xff] %v6048_v15  ;;  %10058 = vst [vmem:[#allocation158_spill] sm:$0xff] %v6052_v50  ;;  %v10062_v0 = vrot.slane %v5532_v10, 7  ;;  %v10063_v3 = vrot.slane %v5089_v58, 7  ;;  %v884_v55 = vmul.f32 %v5744_v61, %v5732_v41  ;;  %1134 = vrot.lane.b32.xlu0 %v4332_v43, %s4386_s13  ;;  %v3584_v36 = vrot.slane %v3546_v53, 1 }
 0x18a   : > { %10059 = vst [vmem:[#allocation159_spill] sm:$0xff] %v6056_v63  ;;  %10060 = vst [vmem:[#allocation160_spill] sm:$0xff] %v6060_v12  ;;  %v6085_v58 = vsel %vm708_vm2, %v3581_v8, %v3582_v22  ;;  %v6091_v41 = vmul.f32 %v5688_v59, %v6048_v15  ;;  %v3587_v34 = vrot.slane %v3549_v40, 1  ;;  %v3589_v52 = vrot.slane %v6041_v7, 1  ;;  %v6094_v37 = vpop.permute.xlu0 %2199  ;;  %v6096_v29 = vpop.permute.xlu1 %2319 }
 0x18b   : > { %10061 = vst [vmem:[#allocation161_spill] sm:$0xff] %v6066_v47  ;;  %v6073_v13 = vsel %vm769_vm3, %v10063_v3, %v10062_v0  ;;  %10066 = vst [vmem:[#allocation163_spill] sm:$0xff] %v6085_v58  ;;  %v3585_v3 = vrot.slane %v3548_v2, 1  ;;  %v899_v0 = vadd.f32 %v5758_v24, %v5728_v31  ;;  %v6105_v2 = vrot.slane %v4137_v30, %v9916_v49  ;;  %v4143_v60 = vld [vmem:[%s9276_s3 + $0x10] ss:$8 sm:$0x3] }
 0x18c   : > { %10064 = vst [vmem:[#allocation162_spill] sm:$0xff] %v6073_v13  ;;  %2887 = vrot.lane.b32.xlu1 %v6073_v13, %s4386_s13  ;;  %10067 = vst [vmem:[#allocation164_spill] sm:$0xff] %v6096_v29  ;;  %v10070_v40 = vrot.slane %v10065_v32, 7  ;;  %v10071_v7 = vrot.slane %v9836_v6, 7  ;;  %v6113_v15 = vsel %vm708_vm2, %v3582_v22, %v3587_v34  ;;  %v4238_v24 = vunpack.i.l.bf16 %v5575_v20  ;;  %v4333_v22 = vld [vmem:[#allocation2 + $0x58] sm:$0xff] }
 0x18d   : > { %v6101_v53 = vsel %vm708_vm2, %v3584_v36, %v3585_v3  ;;  %10069 = vst [vmem:[#allocation166_spill] sm:$0xff] %v6105_v2  ;;  %10072 = vst [vmem:[#allocation167_spill] sm:$0xff] %v6113_v15  ;;  %v6116_v43 = vsel %vm708_vm2, %v3585_v3, %v3589_v52  ;;  %v4138_v36 = vld [vmem:[%s9276_s3 + $0x3] ss:$8 sm:$0x3]  ;;  %v900_v8 = vadd.f32 %v884_v55, %v6066_v47  ;;  %1288 = vrot.lane.b32.xlu0 %v4333_v22, %s4387_s11 }
 0x18e   : > { %10068 = vst [vmem:[#allocation165_spill] sm:$0xff] %v6101_v53  ;;  %v787_v58 = vsel %vm769_vm3, %v10071_v7, %v10070_v40  ;;  %10073 = vst [vmem:[#allocation168_spill] sm:$0xff] %v6116_v43  ;;  %v10074_v53 = vld [vmem:[#allocation128_spill] sm:$0xff]  ;;  %v10076_v3 = vrot.slane %v6056_v63, 7  ;;  %v10077_v40 = vrot.slane %v5859_v16, 7  ;;  %v6137_v20 = vrot.slane %v4137_v30, %v9918_v44  ;;  %v6157_v30 = vpop.permute.xlu1 %1146  ;;  %v10131_v63 = vld [vmem:[#allocation35_spill] sm:$0xff] }
 0x18f   : > { %v1063_v6 = vsel %vm1062_vm5, %v10075_v9, %v10074_v53  ;;  %v10080_v55 = vrot.slane %v6060_v12, 7  ;;  %v10081_v43 = vrot.slane %v5870_v56, 7  ;;  %v10083_v1 = vrot.slane %v6045_v26, 1  ;;  %10086 = vst [vmem:[#allocation172_spill] sm:$0xff] %v6157_v30 }
 0x190   : > { %842 = vrot.lane.b32.xlu1 %v787_v58, %s4386_s13  ;;  %v6134_v7 = vsel %vm769_vm3, %v10077_v40, %v10076_v3  ;;  %10079 = vst [vmem:[#allocation115_spill] sm:$0xff] %v6137_v20  ;;  %v1071_v16 = vsel %vm1062_vm5, %v10074_v53, %v10075_v9  ;;  %v6155_v3 = vpop.permute.xlu0 %2331  ;;  %v6161_v56 = vrot.slane %v4138_v36, %v9916_v49  ;;  %v10090_v53 = vld [vmem:[#allocation9_spill] sm:$0xff]  ;;  %v10091_v40 = vld [vmem:[#allocation39_spill] sm:$0xff]  ;;  %v10103_v51 = vrot.slane %v6091_v41, 1 }
 0x191   : > { %10078 = vst [vmem:[#allocation128_spill] sm:$0xff] %v6134_v7  ;;  %v6144_v15 = vsel %vm769_vm3, %v10081_v43, %v10080_v55  ;;  %v6149_v22 = vsel %vm708_vm2, %v3587_v34, %v10083_v1  ;;  %10085 = vst [vmem:[#allocation171_spill] sm:$0xff] %v6155_v3  ;;  %v6164_v43 = vrot.slane %v4138_v36, %v9918_v44  ;;  %v10089_v55 = vld [vmem:[#allocation8_spill] sm:$0xff]  ;;  %1495 = vrot.lane.b32.xlu0 %v10091_v40, %s4386_s13 }
 0x192   : > { %10082 = vst [vmem:[#allocation169_spill] sm:$0xff] %v6144_v15  ;;  %10084 = vst [vmem:[#allocation170_spill] sm:$0xff] %v6149_v22  ;;  %v1014_v1 = vadd.f32 %v10089_v55, %v899_v0  ;;  %v1092_v34 = vmul.f32 %v6105_v2, %v1063_v6  ;;  %v1158_v22 = vsel %vm854_vm1, %v4238_v24, %v4239_v62  ;;  %v4139_v36 = vld [vmem:[%s9276_s3 + $0x4] ss:$8 sm:$0x3]  ;;  %v10106_v45 = vrot.slane %v10105_v25, 1 }
 0x193   : > { %10087 = vst [vmem:[#allocation173_spill] sm:$0xff] %v6161_v56  ;;  %10088 = vst [vmem:[#allocation174_spill] sm:$0xff] %v6164_v43  ;;  %v1166_v9 = vsel %vm854_vm1, %v4239_v62, %v4238_v24  ;;  %v1015_v15 = vadd.f32 %v10090_v53, %v900_v8  ;;  %v1093_v0 = vmul.f32 %v6137_v20, %v1071_v16  ;;  %v10092_v6 = vld [vmem:[#allocation123_spill] sm:$0xff]  ;;  %v6191_v24 = vpop.permute.xlu1 %2201  ;;  %v10098_v53 = vld [vmem:[#allocation44_spill] sm:$0xff] }
 0x194   : > { %1052 = vrot.lane.b32.xlu1 %v787_v58, %s4387_s11  ;;  %v4244_v55 = vunpack.i.h.bf16 %v10092_v6  ;;  %v4243_v7 = vunpack.i.l.bf16 %v10092_v6  ;;  %v6184_v62 = vmul.f32 %v10094_v19, %v10093_v28  ;;  %v4140_v58 = vld [vmem:[%s9276_s3 + $0x5] ss:$8 sm:$0x3]  ;;  %v6189_v8 = vpop.permute.xlu0 %1130  ;;  %10097 = vst [vmem:[#allocation39_spill] sm:$0xff] %v6191_v24  ;;  %v6195_v42 = vmul.f32 %v10094_v19, %v10098_v53 }
 0x195   : > { %10096 = vst [vmem:[#allocation9_spill] sm:$0xff] %v6189_v8  ;;  %v10100_v16 = vld [vmem:[#allocation27_spill] sm:$0xff]  ;;  %v6208_v10 = vsel %vm708_vm2, %v3589_v52, %v10103_v51  ;;  %v1187_v13 = vmul.f32 %v6161_v56, %v1166_v9  ;;  %v1108_v39 = vadd.f32 %v1092_v34, %v1014_v1  ;;  %v10107_v8 = vld [vmem:[#allocation56_spill] sm:$0xff]  ;;  %v6217_v50 = vrot.slane %v4139_v36, %v9916_v49  ;;  %v4148_v52 = vld [vmem:[%s9276_s3 + $0x15] ss:$8 sm:$0x3] }
 0x196   : > { %10095 = vst [vmem:[#allocation8_spill] sm:$0xff] %v6184_v62  ;;  %10099 = vst [vmem:[#allocation123_spill] sm:$0xff] %v6195_v42  ;;  %v6199_v48 = vmul.f32 %v10100_v16, %v9997_v38  ;;  %v6203_v6 = vmul.f32 %v10100_v16, %v10001_v21  ;;  %v10108_v30 = vrot.slane %v10107_v8, 1  ;;  %v6220_v24 = vrot.slane %v4139_v36, %v9918_v44  ;;  %v10111_v16 = vld [vmem:[#allocation61_spill] sm:$0xff]  ;;  %v10115_v36 = vld [vmem:[#allocation30_spill] sm:$0xff] }
 0x197   : > { %10104 = vst [vmem:[#allocation44_spill] sm:$0xff] %v6208_v10  ;;  %10109 = vst [vmem:[#allocation29_spill] sm:$0xff] %v6217_v50  ;;  %v1188_v25 = vmul.f32 %v6164_v43, %v1158_v22  ;;  %v1109_v1 = vadd.f32 %v1093_v0, %v1015_v15  ;;  %1703 = vrot.lane.b32.xlu0 %v10091_v40, %s4387_s11  ;;  %v6237_v9 = vpop.permute.xlu1 %2333  ;;  %v2610_v8 = vmul.f32 %v10115_v36, %v6184_v62  ;;  %v10116_v51 = vld [vmem:[#allocation32_spill] sm:$0xff]  ;;  %v10119_v40 = vld [vmem:[#allocation103_spill] sm:$0xff] }
 0x198   : > { %10101 = vst [vmem:[#allocation43_spill] sm:$0xff] %v6199_v48  ;;  %10102 = vst [vmem:[#allocation38_spill] sm:$0xff] %v6203_v6  ;;  %v2453_v29 = vsel %vm708_vm2, %v10108_v30, %v10106_v45  ;;  %v1296_v45 = vsel %vm1062_vm5, %v4243_v7, %v4244_v55  ;;  %v6231_v30 = vrot.slane %v4140_v58, %v9916_v49  ;;  %v6235_v34 = vpop.permute.xlu0 %1284  ;;  %v10162_v54 = vrot.slane %v10111_v16, 7 }
 0x199   : > { %10110 = vst [vmem:[#allocation56_spill] sm:$0xff] %v6220_v24  ;;  %2512 = vrot.lane.b32.xlu1 %v2453_v29, %s4386_s13  ;;  %10113 = vst [vmem:[#allocation175_spill] sm:$0xff] %v6235_v34  ;;  %v2611_v22 = vmul.f32 %v10116_v51, %v6195_v42  ;;  %v6245_v15 = vmul.f32 %v10115_v36, %v6199_v48  ;;  %v6249_v0 = vmul.f32 %v10116_v51, %v6203_v6  ;;  %v10124_v48 = vld [vmem:[#allocation40_spill] sm:$0xff] }
 0x19a   : > { %10112 = vst [vmem:[#allocation61_spill] sm:$0xff] %v6231_v30  ;;  %10114 = vst [vmem:[#allocation176_spill] sm:$0xff] %v6237_v9  ;;  %v1232_v10 = vmul.f32 %v10119_v40, %v6217_v50  ;;  %v1203_v34 = vadd.f32 %v1187_v13, %v1108_v39  ;;  %v1233_v62 = vmul.f32 %v10119_v40, %v6220_v24  ;;  %v10123_v6 = vrot.slane %v10111_v16, 7  ;;  %v10126_v9 = vld [vmem:[#allocation62_spill] sm:$0xff] }
 0x19b   : > { %10117 = vst [vmem:[#allocation177_spill] sm:$0xff] %v6245_v15  ;;  %10118 = vst [vmem:[#allocation178_spill] sm:$0xff] %v6249_v0  ;;  %v6257_v12 = vrot.slane %v4148_v52, %v9916_v49  ;;  %v6260_v42 = vrot.slane %v4140_v58, %v9918_v44  ;;  %v10125_v51 = vrot.slane %v10124_v48, 7  ;;  %v1204_v13 = vadd.f32 %v1188_v25, %v1109_v1  ;;  %v6273_v58 = vpop.permute.xlu1 %1032 }
 0x19c   : > { %v1304_v39 = vsel %vm1062_vm5, %v4244_v55, %v4243_v7  ;;  %v1325_v40 = vmul.f32 %v6231_v30, %v1296_v45  ;;  %v6275_v5 = vpop.permute.xlu0 %822  ;;  %v2656_v3 = vrot.slane %v2611_v22, 1  ;;  %v4147_v7 = vld [vmem:[%s9276_s3 + $0x14] ss:$8 sm:$0x3]  ;;  %v10127_v55 = vrot.slane %v10120_v4, 7 }
 0x19d   : > { %10121 = vst [vmem:[#allocation103_spill] sm:$0xff] %v6257_v12  ;;  %10122 = vst [vmem:[#allocation179_spill] sm:$0xff] %v6260_v42  ;;  %2720 = vrot.lane.b32.xlu1 %v2453_v29, %s4387_s11  ;;  %v1843_v36 = vsel %vm769_vm3, %v10125_v51, %v10123_v6  ;;  %v2654_v29 = vrot.slane %v2610_v8, 1  ;;  %v10128_v51 = vld [vmem:[#allocation96_spill] sm:$0xff]  ;;  %v1248_v45 = vadd.f32 %v1232_v10, %v1203_v34  ;;  %v10137_v10 = vld [vmem:[#allocation107_spill] sm:$0xff] }
 0x19e   : > { %1886 = vrot.lane.b32.xlu0 %v1843_v36, %s4386_s13  ;;  %v10129_v25 = vrot.slane %v10128_v51, 7  ;;  %v6291_v8 = vmul.f32 %v10131_v63, %v10093_v28  ;;  %v6295_v22 = vmul.f32 %v10131_v63, %v10098_v53  ;;  %v4141_v6 = vld [vmem:[%s9276_s3 + $0x6] ss:$8 sm:$0x3]  ;;  %v10134_v51 = vld [vmem:[#allocation26_spill] sm:$0xff]  ;;  %v10138_v34 = vrot.slane %v10137_v10, 1 }
 0x19f   : > { %v10135_v48 = vrot.slane %v10134_v51, 1  ;;  %v10140_v63 = vrot.slane %v6245_v15, 1  ;;  %v6329_v51 = vrot.slane %v4148_v52, %v9918_v44  ;;  %v1326_v10 = vmul.f32 %v6260_v42, %v1304_v39 }
 0x1a0   : > { %v6287_v1 = vsel %vm769_vm3, %v10129_v25, %v10127_v55  ;;  %10132 = vst [vmem:[#allocation96_spill] sm:$0xff] %v6291_v8  ;;  %10133 = vst [vmem:[#allocation35_spill] sm:$0xff] %v6295_v22  ;;  %v6310_v28 = vsel %vm708_vm2, %v10138_v34, %v2656_v3  ;;  %v10142_v25 = vrot.slane %v6249_v0, 1  ;;  %v6333_v34 = vld [vmem:[#allocation2 + $0x28] sm:$0xff]  ;;  %v1492_v52 = vpop.permute.xlu0 %1491  ;;  %v10155_v0 = vld [vmem:[#allocation53_spill] sm:$0xff]  ;;  %v1341_v39 = vadd.f32 %v1325_v40, %v1248_v45 }
 0x1a1   : > { %10130 = vst [vmem:[#allocation40_spill] sm:$0xff] %v6287_v1  ;;  %2903 = vrot.lane.b32.xlu1 %v6287_v1, %s4386_s13  ;;  %v6305_v55 = vsel %vm708_vm2, %v10135_v48, %v2654_v29  ;;  %10139 = vst [vmem:[#allocation107_spill] sm:$0xff] %v6310_v28  ;;  %v6315_v53 = vsel %vm708_vm2, %v2654_v29, %v10140_v63  ;;  %v6322_v1 = vld [vmem:[#allocation2 + $0x20] sm:$0xff]  ;;  %v1249_v29 = vadd.f32 %v1233_v62, %v1204_v13  ;;  %v4146_v62 = vld [vmem:[%s9276_s3 + $0x13] ss:$8 sm:$0x3] }
 0x1a2   : > { %10136 = vst [vmem:[#allocation26_spill] sm:$0xff] %v6305_v55  ;;  %10141 = vst [vmem:[#allocation180_spill] sm:$0xff] %v6315_v53  ;;  %v6320_v4 = vsel %vm708_vm2, %v2656_v3, %v10142_v25  ;;  %v6326_v48 = vmul.f32 %v6322_v1, %v6217_v50  ;;  %2094 = vrot.lane.b32.xlu0 %v1843_v36, %s4387_s11  ;;  %v6337_v3 = vmul.f32 %v6333_v34, %v6220_v24  ;;  %v10149_v53 = vld [vmem:[#allocation69_spill] sm:$0xff]  ;;  %v10151_v13 = vld [vmem:[#allocation34_spill] sm:$0xff] }
 0x1a3   : > { %10143 = vst [vmem:[#allocation181_spill] sm:$0xff] %v6320_v4  ;;  %10144 = vst [vmem:[#allocation182_spill] sm:$0xff] %v6322_v1  ;;  %v6340_v63 = vrot.slane %v4147_v7, %v9916_v49  ;;  %v6343_v25 = vrot.slane %v4147_v7, %v9918_v44  ;;  %v6345_v4 = vpop.permute.xlu1 %1699  ;;  %v10150_v36 = vrot.slane %v10126_v9, 1  ;;  %v10152_v28 = vrot.slane %v10151_v13, 1  ;;  %v10154_v7 = vld [vmem:[#allocation63_spill] sm:$0xff]  ;;  %v10159_v45 = vld [vmem:[#allocation66_spill] sm:$0xff] }
 0x1a4   : > { %10145 = vst [vmem:[#allocation183_spill] sm:$0xff] %v6329_v51  ;;  %10146 = vst [vmem:[#allocation184_spill] sm:$0xff] %v6333_v34  ;;  %v6357_v24 = vrot.slane %v4141_v6, %v9916_v49  ;;  %v6363_v17 = vrot.slane %v4141_v6, %v9918_v44  ;;  %v10157_v13 = vld [vmem:[#allocation47_spill] sm:$0xff]  ;;  %v1342_v15 = vadd.f32 %v1326_v10, %v1249_v29  ;;  %v4144_v6 = vld [vmem:[%s9276_s3 + $0x11] ss:$8 sm:$0x3]  ;;  %v6388_v30 = vpop.permute.xlu0 %2090 }
 0x1a5   : > { %10147 = vst [vmem:[#allocation185_spill] sm:$0xff] %v6340_v63  ;;  %10148 = vst [vmem:[#allocation186_spill] sm:$0xff] %v6343_v25  ;;  %v1456_v55 = vsel %vm708_vm2, %v10152_v28, %v10150_v36  ;;  %v6370_v28 = vmul.f32 %v5523_v57, %v6291_v8  ;;  %v6374_v36 = vmul.f32 %v5528_v35, %v6295_v22  ;;  %v10160_v9 = vld [vmem:[#allocation100_spill] sm:$0xff]  ;;  %v10161_v22 = vrot.slane %v10149_v53, 7  ;;  %v10168_v34 = vld [vmem:[#allocation49_spill] sm:$0xff] }
 0x1a6   : > { %10153 = vst [vmem:[#allocation34_spill] sm:$0xff] %v6357_v24  ;;  %1497 = vrot.lane.b32.xlu1 %v1456_v55, %s4386_s13  ;;  %10156 = vst [vmem:[#allocation187_spill] sm:$0xff] %v6363_v17  ;;  %1511 = vrot.lane.b32.xlu0 %v10157_v13, %s4386_s13  ;;  %v6379_v40 = vrot.slane %v4146_v62, %v9916_v49  ;;  %v6396_v29 = vrot.slane %v4146_v62, %v9918_v44  ;;  %v10167_v50 = vrot.slane %v10154_v7, 7 }
 0x1a7   : > { %v6386_v42 = vpop.permute.xlu1 %1882  ;;  %v1847_v10 = vsel %vm769_vm3, %v10162_v54, %v10161_v22  ;;  %v6400_v32 = vmul.f32 %v10164_v18, %v9997_v38  ;;  %v6404_v8 = vmul.f32 %v10164_v18, %v10001_v21  ;;  %v10169_v51 = vrot.slane %v10168_v34, 7  ;;  %v10173_v38 = vld [vmem:[#allocation48_spill] sm:$0xff] }
 0x1a8   : > { %10158 = vst [vmem:[#allocation47_spill] sm:$0xff] %v6379_v40  ;;  %10163 = vst [vmem:[#allocation188_spill] sm:$0xff] %v6396_v29  ;;  %v6412_v16 = vrot.slane %v4143_v60, %v9916_v49  ;;  %v6415_v54 = vrot.slane %v4143_v60, %v9918_v44  ;;  %v10172_v22 = vrot.slane %v10155_v0, 7  ;;  %v10174_v62 = vrot.slane %v10173_v38, 7  ;;  %v10179_v38 = vld [vmem:[#allocation42_spill] sm:$0xff]  ;;  %v10185_v34 = vld [vmem:[#allocation72_spill] sm:$0xff]  ;;  %v1508_v7 = vpop.permute.xlu0 %1507 }
 0x1a9   : > { %10165 = vst [vmem:[#allocation37_spill] sm:$0xff] %v6400_v32  ;;  %10166 = vst [vmem:[#allocation189_spill] sm:$0xff] %v6404_v8  ;;  %v1845_v53 = vsel %vm769_vm3, %v10169_v51, %v10167_v50  ;;  %v6426_v18 = vrot.slane %v4144_v6, %v9916_v49  ;;  %v6434_v60 = vrot.slane %v4144_v6, %v9918_v44  ;;  %v10181_v49 = vrot.slane %v10160_v9, 1  ;;  %v10182_v50 = vld [vmem:[#allocation12_spill] sm:$0xff] }
 0x1aa   : > { %10170 = vst [vmem:[#allocation49_spill] sm:$0xff] %v6412_v16  ;;  %10171 = vst [vmem:[#allocation190_spill] sm:$0xff] %v6415_v54  ;;  %v6422_v1 = vsel %vm769_vm3, %v10174_v62, %v10172_v22  ;;  %1705 = vrot.lane.b32.xlu1 %v1456_v55, %s4387_s11  ;;  %1719 = vrot.lane.b32.xlu0 %v10157_v13, %s4387_s11  ;;  %v10178_v22 = vrot.slane %v10159_v45, 1  ;;  %v10180_v62 = vrot.slane %v10179_v38, 1  ;;  %v10183_v0 = vrot.slane %v10182_v50, 1 }
 0x1ab   : > { %10175 = vst [vmem:[#allocation48_spill] sm:$0xff] %v6426_v18  ;;  %10177 = vst [vmem:[#allocation191_spill] sm:$0xff] %v6434_v60  ;;  %v839_v13 = vpop.permute.xlu1 %838  ;;  %v6453_v6 = vmul.f32 %v5523_v57, %v6400_v32  ;;  %v6457_v38 = vmul.f32 %v5528_v35, %v6404_v8  ;;  %v10186_v45 = vrot.slane %v6370_v28, 7  ;;  %v10187_v50 = vrot.slane %v5896_v14, 7  ;;  %v3346_v57 = vld [vmem:[#allocation2 + $0x88] sm:$0xff] }
 0x1ac   : > { %v6441_v55 = vsel %vm708_vm2, %v10180_v62, %v10178_v22  ;;  %v6448_v51 = vsel %vm708_vm2, %v10183_v0, %v10181_v49  ;;  %v3343_v22 = vld [vmem:[#allocation2 + $0x70] sm:$0xff]  ;;  %v3344_v62 = vld [vmem:[#allocation2 + $0x78] sm:$0xff]  ;;  %v10189_v0 = vrot.slane %v6374_v36, 7  ;;  %v10190_v21 = vrot.slane %v5900_v23, 7  ;;  %v2107_v44 = vpop.permute.xlu0 %2106 }
 0x1ad   : > { %10184 = vst [vmem:[#allocation42_spill] sm:$0xff] %v6448_v51  ;;  %v6464_v49 = vsel %vm769_vm3, %v10187_v50, %v10186_v45  ;;  %v856_v8 = vsel %vm854_vm1, %v6275_v5, %v839_v13  ;;  %v864_v35 = vsel %vm854_vm1, %v839_v13, %v6275_v5  ;;  %v1523_v14 = vsel %vm854_vm1, %v1492_v52, %v1508_v7  ;;  %v10192_v50 = vld [vmem:[#allocation108_spill] sm:$0xff] }
 0x1ae   : > { %10188 = vst [vmem:[#allocation12_spill] sm:$0xff] %v6464_v49  ;;  %v6471_v32 = vsel %vm769_vm3, %v10190_v21, %v10189_v0  ;;  %v1531_v45 = vsel %vm854_vm1, %v1508_v7, %v1492_v52  ;;  %v885_v49 = vmul.f32 %v10192_v50, %v864_v35  ;;  %v886_v23 = vmul.f32 %v5744_v61, %v856_v8  ;;  %v10193_v5 = vld [vmem:[#allocation132_spill] sm:$0xff] }
 0x1af   : > { %10191 = vst [vmem:[#allocation72_spill] sm:$0xff] %v6471_v32  ;;  %v1552_v21 = vmul.f32 %v6357_v24, %v1531_v45  ;;  %v1553_v0 = vmul.f32 %v6363_v17, %v1523_v14  ;;  %1888 = vrot.lane.b32.xlu1 %v1847_v10, %s4386_s13  ;;  %v3345_v32 = vld [vmem:[#allocation2 + $0x80] sm:$0xff]  ;;  %v1159_v13 = vsel %vm854_vm1, %v10193_v5, %v6050_v11  ;;  %v10194_v8 = vld [vmem:[#allocation36_spill] sm:$0xff]  ;;  %v1049_v9 = vpop.permute.xlu1 %1048 }
 0x1b0   : > { %v1167_v35 = vsel %vm854_vm1, %v6050_v11, %v10193_v5  ;;  %1902 = vrot.lane.b32.xlu0 %v1845_v53, %s4386_s13  ;;  %v6498_v52 = vmul.f32 %v3343_v22, %v10194_v8  ;;  %v6501_v7 = vmul.f32 %v3344_v62, %v10194_v8  ;;  %v901_v14 = vadd.f32 %v885_v49, %v5728_v31  ;;  %v10199_v49 = vld [vmem:[#allocation50_spill] sm:$0xff] }
 0x1b1   : > { %v902_v45 = vadd.f32 %v886_v23, %v6066_v47  ;;  %v1568_v61 = vadd.f32 %v1552_v21, %v1341_v39  ;;  %v1569_v50 = vadd.f32 %v1553_v0, %v1342_v15  ;;  %v1064_v11 = vsel %vm1062_vm5, %v6273_v58, %v1049_v9  ;;  %v10200_v39 = vld [vmem:[#allocation51_spill] sm:$0xff]  ;;  %v10201_v8 = vld [vmem:[#allocation54_spill] sm:$0xff] }
 0x1b2   : > { %10195 = vst [vmem:[#allocation132_spill] sm:$0xff] %v6498_v52  ;;  %10196 = vst [vmem:[#allocation36_spill] sm:$0xff] %v6501_v7  ;;  %v1072_v22 = vsel %vm1062_vm5, %v1049_v9, %v6273_v58  ;;  %v6512_v5 = vmul.f32 %v3345_v32, %v10094_v19  ;;  %v6515_v62 = vmul.f32 %v3346_v57, %v10094_v19  ;;  %v10202_v58 = vld [vmem:[#allocation55_spill] sm:$0xff]  ;;  %v9546_v47 = vrot.slane %v6453_v6, 7 }
 0x1b3   : > { %v1016_v23 = vadd.f32 %v10199_v49, %v901_v14  ;;  %v1017_v15 = vadd.f32 %v10200_v39, %v902_v45  ;;  %v1094_v21 = vmul.f32 %v6105_v2, %v1064_v11  ;;  %v1095_v0 = vmul.f32 %v6137_v20, %v1072_v22  ;;  %2096 = vrot.lane.b32.xlu1 %v1847_v10, %s4387_s11  ;;  %v1716_v49 = vpop.permute.xlu1 %1715  ;;  %v6529_v22 = vpop.permute.xlu0 %1034  ;;  %v3347_v20 = vld [vmem:[#allocation2 + $0x90] sm:$0xff] }
 0x1b4   : > { %10197 = vst [vmem:[#allocation192_spill] sm:$0xff] %v6512_v5  ;;  %10198 = vst [vmem:[#allocation193_spill] sm:$0xff] %v6515_v62  ;;  %2110 = vrot.lane.b32.xlu0 %v1845_v53, %s4387_s11  ;;  %v1683_v9 = vadd.f32 %v10201_v8, %v1568_v61  ;;  %v1684_v32 = vadd.f32 %v10202_v58, %v1569_v50  ;;  %v9543_v57 = vrot.slane %v6457_v38, 7  ;;  %v10205_v58 = vrot.slane %v6374_v36, 7 }
 0x1b5   : > { %v1189_v19 = vmul.f32 %v6161_v56, %v1167_v35  ;;  %v1190_v14 = vmul.f32 %v6164_v43, %v1159_v13  ;;  %v1110_v45 = vadd.f32 %v1094_v21, %v1016_v23  ;;  %v1111_v11 = vadd.f32 %v1095_v0, %v1017_v15  ;;  %v6543_v15 = vld [vmem:[#allocation2 + $0x60] sm:$0xff]  ;;  %v10285_v56 = vld [vmem:[#allocation160_spill] sm:$0xff] }
 0x1b6   : > { %v1731_v53 = vsel %vm1062_vm5, %v6345_v4, %v1716_v49  ;;  %v1739_v61 = vsel %vm1062_vm5, %v1716_v49, %v6345_v4  ;;  %v3553_v10 = vmul.f32 %v5662_v46, %v6498_v52  ;;  %v3554_v50 = vmul.f32 %v5688_v59, %v6501_v7 }
 0x1b7   : > { %v1205_v13 = vadd.f32 %v1189_v19, %v1110_v45  ;;  %v1206_v35 = vadd.f32 %v1190_v14, %v1111_v11  ;;  %v1760_v23 = vmul.f32 %v6412_v16, %v1731_v53  ;;  %v1761_v39 = vmul.f32 %v6415_v54, %v1739_v61  ;;  %1136 = vrot.lane.b32.xlu1 %v6543_v15, %s4386_s13  ;;  %v1899_v11 = vpop.permute.xlu1 %1898 }
 0x1b8   : > { %828 = vrot.lane.b32.xlu0 %v6422_v1, %s4386_s13  ;;  %v6551_v4 = vmul.f32 %v5662_v46, %v6512_v5  ;;  %v6555_v21 = vmul.f32 %v5688_v59, %v6515_v62  ;;  %v10203_v0 = vrot.slane %v6370_v28, 7  ;;  %v6569_v19 = vsel %vm769_vm3, %v10205_v58, %v9543_v57  ;;  %v6577_v28 = vpop.permute.xlu0 %1701  ;;  %v10240_v62 = vld [vmem:[#allocation179_spill] sm:$0xff] }
 0x1b9   : > { %10206 = vst [vmem:[#allocation51_spill] sm:$0xff] %v6569_v19  ;;  %v2122_v14 = vsel %vm1062_vm5, %v6388_v30, %v2107_v44  ;;  %v2130_v45 = vsel %vm1062_vm5, %v2107_v44, %v6388_v30  ;;  %v6580_v49 = vadd.f32 %v6326_v48, %v1205_v13  ;;  %v6583_v53 = vadd.f32 %v6337_v3, %v1206_v35  ;;  %v1371_v3 = vld [vmem:[#allocation2 + $0x90] sm:$0x1]  ;;  %v1372_v13 = vld [vmem:[#allocation2 + $0x98] sm:$0x1] }
 0x1ba   : > { %v6562_v8 = vsel %vm769_vm3, %v10203_v0, %v9546_v47  ;;  %v1914_v36 = vsel %vm854_vm1, %v6386_v42, %v1899_v11  ;;  %v1922_v61 = vsel %vm854_vm1, %v1899_v11, %v6386_v42  ;;  %v3595_v0 = vrot.slane %v3553_v10, 1  ;;  %v10222_v47 = vld [vmem:[#allocation16_spill] sm:$0xff] }
 0x1bb   : > { %10204 = vst [vmem:[#allocation50_spill] sm:$0xff] %v6562_v8  ;;  %v3597_v58 = vrot.slane %v3554_v50, 1  ;;  %v1776_v44 = vadd.f32 %v1760_v23, %v1683_v9  ;;  %v1777_v30 = vadd.f32 %v1761_v39, %v1684_v32  ;;  %v1943_v57 = vmul.f32 %v6426_v18, %v1922_v61  ;;  %1513 = vrot.lane.b32.xlu1 %v6441_v55, %s4386_s13 }
 0x1bc   : > { %v1944_v48 = vmul.f32 %v6434_v60, %v1914_v36  ;;  %1038 = vrot.lane.b32.xlu0 %v6422_v1, %s4387_s11  ;;  %v10207_v35 = vrot.slane %v6045_v26, 1  ;;  %v10209_v9 = vrot.slane %v6091_v41, 1  ;;  %v9545_v10 = vrot.slane %v6551_v4, 1  ;;  %v6617_v41 = vpop.permute.xlu1 %824  ;;  %v6619_v11 = vpop.permute.xlu0 %1884  ;;  %v10211_v36 = vld [vmem:[#allocation113_spill] sm:$0xff] }
 0x1bd   : > { %v9544_v50 = vrot.slane %v6555_v21, 1  ;;  %v2213_v23 = vsel %vm854_vm1, %v5925_v27, %v6094_v37  ;;  %v2220_v26 = vsel %vm854_vm1, %v6094_v37, %v5925_v27  ;;  %v1959_v1 = vadd.f32 %v1943_v57, %v1776_v44  ;;  %v10216_v44 = vld [vmem:[#allocation57_spill] sm:$0xff] }
 0x1be   : > { %v6600_v42 = vsel %vm708_vm2, %v10207_v35, %v3595_v0  ;;  %v6605_v32 = vsel %vm708_vm2, %v10209_v9, %v3597_v58  ;;  %v1960_v39 = vadd.f32 %v1944_v48, %v1777_v30  ;;  %v6622_v61 = vmul.f32 %v10211_v36, %v1371_v3  ;;  %v10217_v48 = vld [vmem:[#allocation23_spill] sm:$0xff] }
 0x1bf   : > { %10208 = vst [vmem:[#allocation54_spill] sm:$0xff] %v6600_v42  ;;  %10210 = vst [vmem:[#allocation55_spill] sm:$0xff] %v6605_v32  ;;  %v6625_v35 = vmul.f32 %v10211_v36, %v1372_v13  ;;  %v6630_v9 = vsel %vm708_vm2, %v3595_v0, %v9545_v10  ;;  %v6635_v27 = vsel %vm708_vm2, %v3597_v58, %v9544_v50  ;;  %1721 = vrot.lane.b32.xlu1 %v6441_v55, %s4387_s11 }
 0x1c0   : > { %10212 = vst [vmem:[#allocation194_spill] sm:$0xff] %v6622_v61  ;;  %10214 = vst [vmem:[#allocation196_spill] sm:$0xff] %v6630_v9  ;;  %v2151_v37 = vmul.f32 %v6379_v40, %v2122_v14  ;;  %v2152_v57 = vmul.f32 %v6396_v29, %v2130_v45  ;;  %v2074_v30 = vadd.f32 %v10216_v44, %v1959_v1  ;;  %2498 = vrot.lane.b32.xlu0 %v6448_v51, %s4386_s13  ;;  %v1494_v10 = vpop.permute.xlu1 %1493  ;;  %v6647_v14 = vpop.permute.xlu0 %2494  ;;  %v10218_v45 = vld [vmem:[#allocation182_spill] sm:$0xff]  ;;  %v10220_v44 = vld [vmem:[#allocation63_spill] sm:$0xff] }
 0x1c1   : > { %10213 = vst [vmem:[#allocation195_spill] sm:$0xff] %v6625_v35  ;;  %10215 = vst [vmem:[#allocation197_spill] sm:$0xff] %v6635_v27  ;;  %v2075_v3 = vadd.f32 %v10217_v48, %v1960_v39  ;;  %v2240_v0 = vmul.f32 %v6340_v63, %v2220_v26  ;;  %v2241_v13 = vmul.f32 %v6343_v25, %v2213_v23  ;;  %v10219_v39 = vrot.slane %v10185_v34, 7  ;;  %v10223_v26 = vld [vmem:[#allocation19_spill] sm:$0xff]  ;;  %v10256_v51 = vld [vmem:[#allocation5_spill] sm:$0xff] }
 0x1c2   : > { %v2167_v58 = vadd.f32 %v2151_v37, %v2074_v30  ;;  %v2285_v1 = vmul.f32 %v10218_v45, %v6257_v12  ;;  %v10221_v48 = vrot.slane %v10220_v44, 7  ;;  %v1613_v27 = vmul.f32 %v10222_v47, %v6622_v61  ;;  %v10224_v37 = vld [vmem:[#allocation183_spill] sm:$0xff]  ;;  %v10228_v45 = vld [vmem:[#allocation52_spill] sm:$0xff] }
 0x1c3   : > { %v2168_v50 = vadd.f32 %v2152_v57, %v2075_v3  ;;  %v1614_v23 = vmul.f32 %v10223_v26, %v6625_v35  ;;  %v10225_v57 = vld [vmem:[#allocation184_spill] sm:$0xff]  ;;  %v10226_v3 = vld [vmem:[#allocation7_spill] sm:$0xff]  ;;  %v10229_v32 = vrot.slane %v10228_v45, 7  ;;  %v10259_v35 = vld [vmem:[#allocation62_spill] sm:$0xff] }
 0x1c4   : > { %v1849_v55 = vsel %vm769_vm3, %v10221_v48, %v10219_v39  ;;  %v2286_v30 = vmul.f32 %v10225_v57, %v10224_v37  ;;  %v10227_v9 = vrot.slane %v10226_v3, 7  ;;  %v2256_v44 = vadd.f32 %v2240_v0, %v2167_v58  ;;  %v6669_v39 = vpop.permute.xlu1 %2092  ;;  %v6671_v47 = vpop.permute.xlu0 %2702 }
 0x1c5   : > { %1904 = vrot.lane.b32.xlu1 %v1849_v55, %s4386_s13  ;;  %v2257_v19 = vadd.f32 %v2241_v13, %v2168_v50  ;;  %v1663_v57 = vrot.slane %v1613_v27, 1  ;;  %v1665_v8 = vrot.slane %v1614_v23, 1  ;;  %v10231_v50 = vld [vmem:[#allocation136_spill] sm:$0xff]  ;;  %v10233_v27 = vld [vmem:[#allocation130_spill] sm:$0xff] }
 0x1c6   : > { %v791_v42 = vsel %vm769_vm3, %v10229_v32, %v10227_v9  ;;  %v6673_v48 = vadd.f32 %v2285_v1, %v2256_v44  ;;  %v10232_v9 = vld [vmem:[#allocation131_spill] sm:$0xff]  ;;  %v10234_v13 = vrot.slane %v10233_v27, 1  ;;  %v4337_v23 = vld [vmem:[#allocation2 + $0x68] sm:$0xff] }
 0x1c7   : > { %844 = vrot.lane.b32.xlu0 %v791_v42, %s4386_s13  ;;  %v6675_v26 = vadd.f32 %v2286_v30, %v2257_v19  ;;  %v1297_v0 = vsel %vm1062_vm5, %v10232_v9, %v10231_v50  ;;  %v1305_v19 = vsel %vm1062_vm5, %v10231_v50, %v10232_v9  ;;  %v10239_v30 = vld [vmem:[#allocation61_spill] sm:$0xff] }
 0x1c8   : > { %v6679_v45 = vpop.permute.xlu1 %1132  ;;  %v6681_v32 = vpop.permute.xlu0 %2885  ;;  %v6694_v58 = vsel %vm708_vm2, %v10234_v13, %v1663_v57  ;;  %v1327_v44 = vmul.f32 %v10239_v30, %v1297_v0  ;;  %v1328_v50 = vmul.f32 %v10240_v62, %v1305_v19  ;;  %v6716_v0 = vld [vmem:[#allocation2 + $0x70] sm:$0xff]  ;;  %v10263_v62 = vld [vmem:[#allocation6_spill] sm:$0xff] }
 0x1c9   : > { %2112 = vrot.lane.b32.xlu1 %v1849_v55, %s4387_s11  ;;  %10230 = vst [vmem:[#allocation57_spill] sm:$0xff] %v6679_v45  ;;  %10235 = vst [vmem:[#allocation23_spill] sm:$0xff] %v6694_v58  ;;  %v10250_v58 = vld [vmem:[#allocation73_spill] sm:$0xff] }
 0x1ca   : > { %v1343_v13 = vadd.f32 %v1327_v44, %v6580_v49  ;;  %10241 = vst [vmem:[#allocation63_spill] sm:$0xff] %v6716_v0  ;;  %v10242_v49 = vld [vmem:[#allocation14_spill] sm:$0xff] }
 0x1cb   : > { %1054 = vrot.lane.b32.xlu0 %v791_v42, %s4387_s11  ;;  %v10236_v42 = vld [vmem:[#allocation133_spill] sm:$0xff]  ;;  %v9556_v44 = vrot.slane %v10242_v49, 7 }
 0x1cc   : > { %v10237_v1 = vrot.slane %v10236_v42, 1  ;;  %v1510_v9 = vpop.permute.xlu1 %1509  ;;  %v6706_v27 = vpop.permute.xlu0 %840  ;;  %v1344_v42 = vadd.f32 %v1328_v50, %v6583_v53  ;;  %v6726_v53 = vld [vmem:[#allocation2 + $0x78] sm:$0xff]  ;;  %v10244_v50 = vld [vmem:[#allocation64_spill] sm:$0xff] }
 0x1cd   : > { %1290 = vrot.lane.b32.xlu1 %v4337_v23, %s4387_s11  ;;  %v1524_v57 = vsel %vm854_vm1, %v1494_v10, %v1510_v9  ;;  %10243 = vst [vmem:[#allocation16_spill] sm:$0xff] %v6726_v53 }
 0x1ce   : > { %v6699_v55 = vsel %vm708_vm2, %v10237_v1, %v1665_v8  ;;  %v1532_v8 = vsel %vm854_vm1, %v1510_v9, %v1494_v10 }
 0x1cf   : > { %10238 = vst [vmem:[#allocation182_spill] sm:$0xff] %v6699_v55  ;;  %1274 = vrot.lane.b32.xlu0 %v6543_v15, %s4387_s11  ;;  %v1554_v1 = vmul.f32 %v6357_v24, %v1532_v8  ;;  %v1555_v15 = vmul.f32 %v6363_v17, %v1524_v57  ;;  %v10245_v57 = vld [vmem:[#allocation65_spill] sm:$0xff] }
 0x1d0   : > { %v6721_v7 = vpop.permute.xlu1 %2108  ;;  %v6723_v10 = vpop.permute.xlu0 %1050  ;;  %v1794_v8 = vld [vmem:[#allocation2 + $0x90] sm:$0x7f] }
 0x1d1   : > { %1276 = vrot.lane.b32.xlu1 %v6716_v0, %s4387_s11  ;;  %v1570_v19 = vadd.f32 %v1554_v1, %v1343_v13  ;;  %v1571_v5 = vadd.f32 %v1555_v15, %v1344_v42  ;;  %v1795_v13 = vld [vmem:[#allocation2 + $0x98] sm:$0x7f]  ;;  %v10248_v15 = vld [vmem:[#allocation53_spill] sm:$0xff] }
 0x1d2   : > { %v10249_v52 = vrot.slane %v10248_v15, 7  ;;  %v10254_v15 = vld [vmem:[#allocation104_spill] sm:$0xff]  ;;  %v10261_v17 = vld [vmem:[#allocation17_spill] sm:$0xff] }
 0x1d3   : > { %1152 = vrot.lane.b32.xlu0 %v4337_v23, %s4386_s13  ;;  %v1685_v9 = vadd.f32 %v10244_v50, %v1570_v19  ;;  %v1686_v23 = vadd.f32 %v10245_v57, %v1571_v5  ;;  %v4149_v19 = vld [vmem:[%s9276_s3 + $0x16] ss:$8 sm:$0x3] }
 0x1d4   : > { %v6734_v42 = vpop.permute.xlu1 %1286  ;;  %v6736_v1 = vpop.permute.xlu0 %1270  ;;  %v793_v55 = vsel %vm769_vm3, %v10249_v52, %v9556_v44  ;;  %v10251_v5 = vld [vmem:[#allocation105_spill] sm:$0xff] }
 0x1d5   : > { %1154 = vrot.lane.b32.xlu1 %v6726_v53, %s4386_s13  ;;  %10246 = vst [vmem:[#allocation19_spill] sm:$0xff] %v6734_v42  ;;  %10247 = vst [vmem:[#allocation184_spill] sm:$0xff] %v6736_v1  ;;  %v6749_v50 = vmul.f32 %v1794_v8, %v10251_v5  ;;  %v6752_v57 = vmul.f32 %v1795_v13, %v10251_v5  ;;  %v6760_v1 = vrot.slane %v4149_v19, %v10256_v51 }
 0x1d6   : > { %v10258_v13 = vrot.slane %v10250_v58, 1 }
 0x1d7   : > { %1138 = vrot.lane.b32.xlu0 %v6716_v0, %s4386_s13  ;;  %10252 = vst [vmem:[#allocation7_spill] sm:$0xff] %v6749_v50  ;;  %10253 = vst [vmem:[#allocation52_spill] sm:$0xff] %v6752_v57  ;;  %v2004_v24 = vmul.f32 %v10261_v17, %v6749_v50  ;;  %v10271_v17 = vld [vmem:[#allocation171_spill] sm:$0xff] }
 0x1d8   : > { %v6757_v52 = vpop.permute.xlu1 %1272  ;;  %v1718_v44 = vpop.permute.xlu0 %1717  ;;  %10257 = vst [vmem:[#allocation131_spill] sm:$0xff] %v6760_v1  ;;  %v10272_v50 = vld [vmem:[#allocation147_spill] sm:$0xff] }
 0x1d9   : > { %830 = vrot.lane.b32.xlu1 %v793_v55, %s4386_s13  ;;  %10255 = vst [vmem:[#allocation136_spill] sm:$0xff] %v6757_v52  ;;  %v1732_v42 = vsel %vm1062_vm5, %v6577_v28, %v1718_v44  ;;  %v1740_v8 = vsel %vm1062_vm5, %v1718_v44, %v6577_v28  ;;  %v4150_v52 = vld [vmem:[%s9276_s3 + $0x17] ss:$8 sm:$0x3]  ;;  %v10262_v28 = vld [vmem:[#allocation20_spill] sm:$0xff] }
 0x1da   : > { %v1762_v61 = vmul.f32 %v6412_v16, %v1732_v42  ;;  %v1763_v45 = vmul.f32 %v6415_v54, %v1740_v8  ;;  %v2005_v44 = vmul.f32 %v10262_v28, %v6752_v57  ;;  %v10269_v8 = vld [vmem:[#allocation15_spill] sm:$0xff]  ;;  %v10270_v54 = vld [vmem:[#allocation76_spill] sm:$0xff]  ;;  %v2345_v28 = vsel %vm1062_vm5, %v10272_v50, %v10271_v17 }
 0x1db   : > { %1292 = vrot.lane.b32.xlu0 %v6726_v53, %s4387_s11  ;;  %v10260_v53 = vrot.slane %v10259_v35, 1  ;;  %v6784_v35 = vrot.slane %v4149_v19, %v10263_v62  ;;  %v2352_v19 = vsel %vm1062_vm5, %v10271_v17, %v10272_v50 }
 0x1dc   : > { %v1778_v16 = vadd.f32 %v1762_v61, %v1685_v9  ;;  %v2372_v61 = vmul.f32 %v6760_v1, %v2345_v28  ;;  %v10276_v9 = vrot.slane %v10269_v8, 7 }
 0x1dd   : > { %v1460_v0 = vsel %vm708_vm2, %v10260_v53, %v10258_v13  ;;  %1040 = vrot.lane.b32.xlu1 %v793_v55, %s4387_s11  ;;  %10264 = vst [vmem:[#allocation130_spill] sm:$0xff] %v6784_v35  ;;  %v10265_v53 = vrot.slane %v10254_v15, 1  ;;  %v10266_v13 = vld [vmem:[#allocation100_spill] sm:$0xff]  ;;  %v6804_v15 = vpop.permute.xlu1 %2191  ;;  %v1779_v55 = vadd.f32 %v1763_v45, %v1686_v23  ;;  %v2373_v45 = vmul.f32 %v6784_v35, %v2352_v19  ;;  %v10282_v19 = vld [vmem:[#allocation159_spill] sm:$0xff] }
 0x1de   : > { %v10267_v30 = vrot.slane %v10266_v13, 1  ;;  %10273 = vst [vmem:[#allocation14_spill] sm:$0xff] %v6804_v15  ;;  %v1901_v13 = vpop.permute.xlu0 %1900  ;;  %v2054_v15 = vrot.slane %v2004_v24, 7  ;;  %v10277_v23 = vrot.slane %v10226_v3, 7  ;;  %v10286_v3 = vrot.slane %v10285_v56, 7 }
 0x1df   : > { %1499 = vrot.lane.b32.xlu0 %v1460_v0, %s4386_s13  ;;  %v1915_v57 = vsel %vm854_vm1, %v6619_v11, %v1901_v13  ;;  %v1923_v43 = vsel %vm854_vm1, %v1901_v13, %v6619_v11 }
 0x1e0   : > { %v6792_v42 = vsel %vm708_vm2, %v10267_v30, %v10265_v53  ;;  %v6807_v30 = vrot.slane %v4150_v52, %v10256_v51  ;;  %v6810_v53 = vrot.slane %v4150_v52, %v10263_v62  ;;  %v1945_v50 = vmul.f32 %v6426_v18, %v1923_v43 }
 0x1e1   : > { %10268 = vst [vmem:[#allocation133_spill] sm:$0xff] %v6792_v42  ;;  %v1946_v17 = vmul.f32 %v6434_v60, %v1915_v57  ;;  %2500 = vrot.lane.b32.xlu1 %v6792_v42, %s4386_s13  ;;  %v2056_v52 = vrot.slane %v2005_v44, 7  ;;  %v795_v11 = vsel %vm769_vm3, %v10277_v23, %v10276_v9  ;;  %v10278_v43 = vrot.slane %v10270_v54, 7  ;;  %v10279_v57 = vld [vmem:[#allocation69_spill] sm:$0xff]  ;;  %v6835_v60 = vpop.permute.xlu1 %2323 }
 0x1e2   : > { %10274 = vst [vmem:[#allocation64_spill] sm:$0xff] %v6807_v30  ;;  %10275 = vst [vmem:[#allocation65_spill] sm:$0xff] %v6810_v53  ;;  %v10280_v13 = vrot.slane %v10279_v57, 7  ;;  %v1961_v24 = vadd.f32 %v1945_v50, %v1778_v16  ;;  %v2511_v28 = vpop.permute.xlu0 %2510  ;;  %v10283_v18 = vrot.slane %v10282_v19, 7  ;;  %v2388_v23 = vadd.f32 %v2372_v61, %v6673_v48  ;;  %v10288_v50 = vld [vmem:[#allocation67_spill] sm:$0xff] }
 0x1e3   : > { %1707 = vrot.lane.b32.xlu0 %v1460_v0, %s4387_s11  ;;  %v1962_v44 = vadd.f32 %v1946_v17, %v1779_v55  ;;  %10281 = vst [vmem:[#allocation53_spill] sm:$0xff] %v6835_v60  ;;  %v6845_v9 = vsel %vm769_vm3, %v10286_v3, %v2056_v52  ;;  %v2389_v57 = vadd.f32 %v2373_v45, %v6675_v26  ;;  %v4152_v26 = vld [vmem:[%s9276_s3 + $0x21] ss:$8 sm:$0x3] }
 0x1e4   : > { %v1851_v42 = vsel %vm769_vm3, %v10280_v13, %v10278_v43  ;;  %v6840_v0 = vsel %vm769_vm3, %v10283_v18, %v2054_v15  ;;  %10287 = vst [vmem:[#allocation105_spill] sm:$0xff] %v6845_v9  ;;  %v2526_v16 = vsel %vm854_vm1, %v6647_v14, %v2511_v28  ;;  %v2534_v55 = vsel %vm854_vm1, %v2511_v28, %v6647_v14  ;;  %v10289_v15 = vld [vmem:[#allocation68_spill] sm:$0xff]  ;;  %v2184_v43 = vld [vmem:[#allocation2 + $0x98] sm:$0xff]  ;;  %v2406_v13 = vld [vmem:[#allocation2 + $0xa0] sm:$0x1] }
 0x1e5   : > { %10284 = vst [vmem:[#allocation73_spill] sm:$0xff] %v6840_v0  ;;  %v6856_v18 = vadd.f32 %v10288_v50, %v1961_v24  ;;  %v6859_v56 = vadd.f32 %v10289_v15, %v1962_v44  ;;  %v2555_v17 = vmul.f32 %v6807_v30, %v2534_v55  ;;  %v2556_v48 = vmul.f32 %v6810_v53, %v2526_v16  ;;  %v6868_v61 = vpop.permute.xlu1 %1150  ;;  %v10292_v24 = vld [vmem:[#allocation120_spill] sm:$0xff]  ;;  %v10293_v28 = vld [vmem:[#allocation77_spill] sm:$0xff]  ;;  %v2797_v3 = vld [vmem:[#allocation2 + $0xa0] sm:$0x7f] }
 0x1e6   : > { %846 = vrot.lane.b32.xlu1 %v795_v11, %s4386_s13  ;;  %10290 = vst [vmem:[#allocation62_spill] sm:$0xff] %v6868_v61  ;;  %v6870_v45 = vpop.permute.xlu0 %2189  ;;  %v10294_v16 = vld [vmem:[#allocation70_spill] sm:$0xff]  ;;  %v10295_v50 = vld [vmem:[#allocation71_spill] sm:$0xff]  ;;  %v6882_v9 = vld [vmem:[#allocation2 + $0x90] sm:$0xff]  ;;  %v6908_v53 = vmul.f32 %v2797_v3, %v10251_v5  ;;  %v10313_v3 = vrot.slane %v10293_v28, 1 }
 0x1e7   : > { %1890 = vrot.lane.b32.xlu0 %v1851_v42, %s4386_s13  ;;  %v2571_v52 = vadd.f32 %v2555_v17, %v2388_v23  ;;  %v2572_v14 = vadd.f32 %v2556_v48, %v2389_v57  ;;  %10291 = vst [vmem:[#allocation17_spill] sm:$0xff] %v6870_v45  ;;  %v6878_v23 = vrot.slane %v4152_v26, %v10256_v51  ;;  %v10297_v57 = vld [vmem:[#allocation78_spill] sm:$0xff]  ;;  %v2407_v48 = vld [vmem:[#allocation2 + $0xa8] sm:$0x1]  ;;  %10298 = vst [vmem:[#allocation100_spill] sm:$0xff] %v6882_v9 }
 0x1e8   : > { %v10299_v44 = vld [vmem:[#allocation122_spill] sm:$0xff]  ;;  %v10307_v60 = vld [vmem:[#allocation124_spill] sm:$0xff]  ;;  %10309 = vst [vmem:[#allocation67_spill] sm:$0xff] %v6908_v53 }
 0x1e9   : > { %v2686_v55 = vadd.f32 %v10294_v16, %v2571_v52  ;;  %v2687_v15 = vadd.f32 %v10295_v50, %v2572_v14  ;;  %10296 = vst [vmem:[#allocation20_spill] sm:$0xff] %v6878_v23  ;;  %v6886_v19 = vmul.f32 %v6882_v9, %v10299_v44  ;;  %v6892_v52 = vmul.f32 %v2406_v13, %v10211_v36  ;;  %v10303_v14 = vld [vmem:[#allocation11_spill] sm:$0xff]  ;;  %v2798_v50 = vld [vmem:[#allocation2 + $0xa8] sm:$0x7f]  ;;  %v6898_v17 = vpop.permute.xlu1 %2205  ;;  %v10314_v30 = vld [vmem:[#allocation66_spill] sm:$0xff] }
 0x1ea   : > { %1056 = vrot.lane.b32.xlu1 %v795_v11, %s4387_s11  ;;  %v6889_v11 = vmul.f32 %v2184_v43, %v10299_v44  ;;  %v6896_v16 = vmul.f32 %v6882_v9, %v10303_v14  ;;  %10305 = vst [vmem:[#allocation69_spill] sm:$0xff] %v6898_v17  ;;  %v2719_v0 = vpop.permute.xlu0 %2718  ;;  %v6905_v61 = vmul.f32 %v2184_v43, %v10303_v14  ;;  %v10311_v9 = vrot.slane %v10250_v58, 1 }
 0x1eb   : > { %2098 = vrot.lane.b32.xlu0 %v1851_v42, %s4387_s11  ;;  %10300 = vst [vmem:[#allocation15_spill] sm:$0xff] %v6886_v19  ;;  %10302 = vst [vmem:[#allocation171_spill] sm:$0xff] %v6892_v52  ;;  %v6901_v42 = vrot.slane %v4152_v26, %v10263_v62  ;;  %v2734_v13 = vsel %vm1062_vm5, %v6671_v47, %v2719_v0  ;;  %v2742_v17 = vsel %vm1062_vm5, %v2719_v0, %v6671_v47  ;;  %v4153_v47 = vld [vmem:[%s9276_s3 + $0x22] ss:$8 sm:$0x3] }
 0x1ec   : > { %10301 = vst [vmem:[#allocation76_spill] sm:$0xff] %v6889_v11  ;;  %10304 = vst [vmem:[#allocation147_spill] sm:$0xff] %v6896_v16  ;;  %v10310_v26 = vrot.slane %v10292_v24, 1  ;;  %v6922_v14 = vmul.f32 %v2407_v48, %v10211_v36  ;;  %v10315_v35 = vrot.slane %v10314_v30, 1  ;;  %v10316_v0 = vrot.slane %v10297_v57, 7  ;;  %v10321_v24 = vld [vmem:[#allocation93_spill] sm:$0xff] }
 0x1ed   : > { %10306 = vst [vmem:[#allocation159_spill] sm:$0xff] %v6901_v42  ;;  %10308 = vst [vmem:[#allocation160_spill] sm:$0xff] %v6905_v61  ;;  %v10317_v58 = vrot.slane %v10185_v34, 7  ;;  %v6939_v48 = vmul.f32 %v2798_v50, %v10251_v5  ;;  %v3005_v34 = vmul.f32 %v10321_v24, %v6896_v16  ;;  %v2764_v5 = vmul.f32 %v6901_v42, %v2742_v17  ;;  %v6954_v50 = vpop.permute.xlu1 %2337 }
 0x1ee   : > { %v1464_v45 = vsel %vm708_vm2, %v10311_v9, %v10310_v26  ;;  %10312 = vst [vmem:[#allocation68_spill] sm:$0xff] %v6922_v14  ;;  %v1462_v1 = vsel %vm708_vm2, %v10315_v35, %v10313_v3  ;;  %v10319_v26 = vld [vmem:[#allocation30_spill] sm:$0xff]  ;;  %v10320_v35 = vld [vmem:[#allocation32_spill] sm:$0xff]  ;;  %10322 = vst [vmem:[#allocation70_spill] sm:$0xff] %v6954_v50  ;;  %v6966_v16 = vrot.slane %v4153_v47, %v10263_v62  ;;  %v10328_v17 = vrot.slane %v10270_v54, 7 }
 0x1ef   : > { %1501 = vrot.lane.b32.xlu1 %v1464_v45, %s4386_s13  ;;  %v1853_v9 = vsel %vm769_vm3, %v10317_v58, %v10316_v0  ;;  %10318 = vst [vmem:[#allocation77_spill] sm:$0xff] %v6939_v48  ;;  %1515 = vrot.lane.b32.xlu0 %v1462_v1, %s4386_s13  ;;  %v2614_v30 = vmul.f32 %v10319_v26, %v6886_v19  ;;  %v6956_v58 = vpop.permute.xlu0 %2321  ;;  %v10324_v19 = vld [vmem:[#allocation94_spill] sm:$0xff]  ;;  %v4341_v62 = vld [vmem:[#allocation2 + $0x10] sm:$0xff] }
 0x1f0   : > { %v6946_v3 = vmul.f32 %v10320_v35, %v6889_v11  ;;  %v2616_v36 = vmul.f32 %v10319_v26, %v6892_v52  ;;  %v2763_v0 = vmul.f32 %v6878_v23, %v2734_v13  ;;  %10323 = vst [vmem:[#allocation71_spill] sm:$0xff] %v6956_v58  ;;  %v3006_v2 = vmul.f32 %v10324_v19, %v6905_v61 }
 0x1f1   : > { %v3007_v11 = vmul.f32 %v10321_v24, %v6908_v53  ;;  %v6963_v26 = vrot.slane %v4153_v47, %v10256_v51  ;;  %10326 = vst [vmem:[#allocation122_spill] sm:$0xff] %v6966_v16  ;;  %v10327_v13 = vrot.slane %v10307_v60, 7  ;;  %v2617_v50 = vmul.f32 %v10320_v35, %v6922_v14  ;;  %v10329_v53 = vld [vmem:[#allocation27_spill] sm:$0xff] }
 0x1f2   : > { %v3008_v24 = vmul.f32 %v10324_v19, %v6939_v48  ;;  %v6979_v61 = vmul.f32 %v3347_v20, %v10329_v53  ;;  %v6982_v47 = vmul.f32 %v2184_v43, %v10329_v53  ;;  %v6985_v51 = vmul.f32 %v4341_v62, %v10299_v44  ;;  %v6989_v19 = vpop.permute.xlu1 %826  ;;  %v10336_v44 = vld [vmem:[#allocation178_spill] sm:$0xff] }
 0x1f3   : > { %10325 = vst [vmem:[#allocation78_spill] sm:$0xff] %v6963_v26  ;;  %v1855_v52 = vsel %vm769_vm3, %v10328_v17, %v10327_v13  ;;  %1709 = vrot.lane.b32.xlu1 %v1464_v45, %s4387_s11  ;;  %1723 = vrot.lane.b32.xlu0 %v1462_v1, %s4387_s11  ;;  %v2662_v54 = vrot.slane %v2614_v30, 1  ;;  %v2664_v35 = vrot.slane %v6946_v3, 1  ;;  %v2666_v13 = vrot.slane %v2616_v36, 1  ;;  %v2902_v20 = vpop.permute.xlu0 %2901  ;;  %v10333_v1 = vld [vmem:[#allocation177_spill] sm:$0xff] }
 0x1f4   : > { %10330 = vst [vmem:[#allocation11_spill] sm:$0xff] %v6979_v61  ;;  %10331 = vst [vmem:[#allocation124_spill] sm:$0xff] %v6982_v47  ;;  %v3053_v45 = vrot.slane %v3005_v34, 7  ;;  %v2779_v17 = vadd.f32 %v2763_v0, %v2686_v55  ;;  %v2780_v14 = vadd.f32 %v2764_v5, %v2687_v15  ;;  %v3055_v48 = vrot.slane %v3006_v2, 7 }
 0x1f5   : > { %10332 = vst [vmem:[#allocation66_spill] sm:$0xff] %v6985_v51  ;;  %v3057_v58 = vrot.slane %v3007_v11, 7  ;;  %v2917_v53 = vsel %vm854_vm1, %v6681_v32, %v2902_v20  ;;  %v2925_v62 = vsel %vm854_vm1, %v2902_v20, %v6681_v32  ;;  %v10334_v43 = vrot.slane %v10333_v1, 1 }
 0x1f6   : > { %v10337_v55 = vrot.slane %v10336_v44, 1  ;;  %v2946_v2 = vmul.f32 %v6963_v26, %v2925_v62  ;;  %v2947_v11 = vmul.f32 %v6966_v16, %v2917_v53  ;;  %v7011_v30 = vsel %vm708_vm2, %v2662_v54, %v2666_v13  ;;  %v7031_v53 = vpop.permute.xlu1 %1036 }
 0x1f7   : > { %v7000_v36 = vsel %vm708_vm2, %v10334_v43, %v2662_v54  ;;  %1892 = vrot.lane.b32.xlu1 %v1855_v52, %s4386_s13  ;;  %10339 = vst [vmem:[#allocation93_spill] sm:$0xff] %v7011_v30  ;;  %v10340_v32 = vrot.slane %v6453_v6, 7  ;;  %1906 = vrot.lane.b32.xlu0 %v1853_v9, %s4386_s13  ;;  %v3557_v34 = vmul.f32 %v5662_v46, %v6979_v61  ;;  %v10342_v5 = vrot.slane %v6457_v38, 7  ;;  %v7033_v62 = vpop.permute.xlu0 %1148  ;;  %v10347_v38 = vld [vmem:[#allocation112_spill] sm:$0xff]  ;;  %v10390_v61 = vld [vmem:[#allocation131_spill] sm:$0xff] }
 0x1f8   : > { %10335 = vst [vmem:[#allocation30_spill] sm:$0xff] %v7000_v36  ;;  %v7005_v15 = vsel %vm708_vm2, %v10337_v55, %v2664_v35  ;;  %v3558_v0 = vmul.f32 %v5688_v59, %v6982_v47  ;;  %v7029_v54 = vsel %vm769_vm3, %v3053_v45, %v3057_v58  ;;  %v2962_v6 = vadd.f32 %v2946_v2, %v2779_v17  ;;  %v10348_v58 = vld [vmem:[#allocation101_spill] sm:$0xff]  ;;  %v4344_v36 = vld [vmem:[#allocation2 + $0x38] sm:$0xff] }
 0x1f9   : > { %10338 = vst [vmem:[#allocation32_spill] sm:$0xff] %v7005_v15  ;;  %v7016_v3 = vsel %vm769_vm3, %v10340_v32, %v3053_v45  ;;  %v7026_v20 = vsel %vm769_vm3, %v10342_v5, %v3055_v48  ;;  %10344 = vst [vmem:[#allocation177_spill] sm:$0xff] %v7029_v54  ;;  %v2963_v13 = vadd.f32 %v2947_v11, %v2780_v14  ;;  %v10350_v14 = vld [vmem:[#allocation102_spill] sm:$0xff]  ;;  %v2668_v55 = vrot.slane %v2617_v50, 1 }
 0x1fa   : > { %10341 = vst [vmem:[#allocation94_spill] sm:$0xff] %v7016_v3  ;;  %10343 = vst [vmem:[#allocation27_spill] sm:$0xff] %v7026_v20  ;;  %v7037_v1 = vmul.f32 %v5662_v46, %v6985_v51  ;;  %v7041_v43 = vmul.f32 %v5688_v59, %v6985_v51  ;;  %v7046_v45 = vadd.f32 %v10348_v58, %v2962_v6  ;;  %v3059_v2 = vrot.slane %v3008_v24, 7  ;;  %v7052_v5 = vpop.permute.xlu1 %2496  ;;  %v10353_v20 = vld [vmem:[#allocation121_spill] sm:$0xff]  ;;  %v10379_v59 = vld [vmem:[#allocation166_spill] sm:$0xff] }
 0x1fb   : > { %2100 = vrot.lane.b32.xlu1 %v1855_v52, %s4387_s11  ;;  %v7049_v17 = vadd.f32 %v10350_v14, %v2963_v13  ;;  %2114 = vrot.lane.b32.xlu0 %v1853_v9, %s4387_s11  ;;  %v3603_v11 = vrot.slane %v3557_v34, 1  ;;  %v3605_v32 = vrot.slane %v3558_v0, 1  ;;  %v7054_v54 = vpop.permute.xlu0 %2203  ;;  %v9623_v52 = vrot.slane %v10353_v20, 1  ;;  %v7065_v9 = vld [vmem:[#allocation2 + $0x80] sm:$0xff]  ;;  %v10389_v51 = vld [vmem:[#allocation45_spill] sm:$0xff] }
 0x1fc   : > { %10345 = vst [vmem:[#allocation178_spill] sm:$0xff] %v7037_v1  ;;  %10346 = vst [vmem:[#allocation198_spill] sm:$0xff] %v7041_v43  ;;  %v9622_v44 = vrot.slane %v7037_v1, 1  ;;  %v9621_v6 = vrot.slane %v7041_v43, 1  ;;  %v7060_v58 = vsel %vm708_vm2, %v2664_v35, %v2668_v55  ;;  %v7063_v13 = vsel %vm769_vm3, %v3055_v48, %v3059_v2  ;;  %v10377_v43 = vld [vmem:[#allocation58_spill] sm:$0xff]  ;;  %v10380_v46 = vld [vmem:[#allocation115_spill] sm:$0xff] }
 0x1fd   : > { %10349 = vst [vmem:[#allocation112_spill] sm:$0xff] %v7046_v45  ;;  %10351 = vst [vmem:[#allocation101_spill] sm:$0xff] %v7049_v17  ;;  %v10356_v50 = vrot.slane %v10347_v38, 7  ;;  %v10357_v24 = vrot.slane %v10242_v49, 7  ;;  %v10358_v0 = vrot.slane %v6551_v4, 1  ;;  %v10360_v48 = vrot.slane %v6555_v21, 1 }
 0x1fe   : > { %10352 = vst [vmem:[#allocation102_spill] sm:$0xff] %v7054_v54  ;;  %10354 = vst [vmem:[#allocation121_spill] sm:$0xff] %v7060_v58  ;;  %v7088_v55 = vsel %vm708_vm2, %v3603_v11, %v9622_v44  ;;  %v7093_v49 = vsel %vm708_vm2, %v3605_v32, %v9621_v6  ;;  %v7095_v2 = vpop.permute.xlu1 %2704  ;;  %v10365_v21 = vrot.slane %v10293_v28, 1  ;;  %v2131_v28 = vsel %vm1062_vm5, %v6721_v7, %v6669_v39  ;;  %v10368_v44 = vld [vmem:[#allocation117_spill] sm:$0xff]  ;;  %v10391_v45 = vld [vmem:[#allocation130_spill] sm:$0xff] }
 0x1ff   : > { %10355 = vst [vmem:[#allocation199_spill] sm:$0xff] %v7063_v13  ;;  %1140 = vrot.lane.b32.xlu1 %v7065_v9, %s4386_s13  ;;  %v797_v34 = vsel %vm769_vm3, %v10357_v24, %v10356_v50  ;;  %v7078_v35 = vsel %vm708_vm2, %v10358_v0, %v3603_v11  ;;  %v7083_v14 = vsel %vm708_vm2, %v10360_v48, %v3605_v32  ;;  %10362 = vst [vmem:[#allocation202_spill] sm:$0xff] %v7088_v55  ;;  %v7097_v4 = vpop.permute.xlu0 %2335  ;;  %v10366_v0 = vld [vmem:[#allocation116_spill] sm:$0xff]  ;;  %v4343_v58 = vld [vmem:[#allocation2 + $0x30] sm:$0xff] }
 0x200   : > { %832 = vrot.lane.b32.xlu0 %v797_v34, %s4386_s13  ;;  %10359 = vst [vmem:[#allocation200_spill] sm:$0xff] %v7078_v35  ;;  %10361 = vst [vmem:[#allocation201_spill] sm:$0xff] %v7083_v14  ;;  %v1466_v50 = vsel %vm708_vm2, %v10365_v21, %v9623_v52  ;;  %v857_v11 = vsel %vm854_vm1, %v6617_v41, %v6706_v27  ;;  %v865_v32 = vsel %vm854_vm1, %v6706_v27, %v6617_v41  ;;  %v10367_v21 = vld [vmem:[#allocation108_spill] sm:$0xff]  ;;  %v10369_v14 = vld [vmem:[#allocation39_spill] sm:$0xff] }
 0x201   : > { %10363 = vst [vmem:[#allocation203_spill] sm:$0xff] %v7093_v49  ;;  %10364 = vst [vmem:[#allocation204_spill] sm:$0xff] %v7097_v4  ;;  %v2123_v24 = vsel %vm1062_vm5, %v6669_v39, %v6721_v7  ;;  %v9624_v48 = vrot.slane %v10366_v0, 7  ;;  %v887_v6 = vmul.f32 %v10367_v21, %v865_v32  ;;  %v888_v41 = vmul.f32 %v10368_v44, %v857_v11  ;;  %v10370_v7 = vld [vmem:[#allocation158_spill] sm:$0xff]  ;;  %v10373_v11 = vld [vmem:[#allocation125_spill] sm:$0xff] }
 0x202   : > { %v2153_v27 = vmul.f32 %v6379_v40, %v2123_v24  ;;  %v2154_v52 = vmul.f32 %v6396_v29, %v2131_v28  ;;  %v7127_v49 = vpop.permute.xlu1 %2887  ;;  %v7135_v39 = vsel %vm854_vm1, %v10370_v7, %v10369_v14  ;;  %v9629_v32 = vrot.slane %v10373_v11, 7  ;;  %v10472_v54 = vld [vmem:[#allocation89_spill] sm:$0xff] }
 0x203   : > { %1517 = vrot.lane.b32.xlu1 %v1466_v50, %s4386_s13  ;;  %v7129_v55 = vpop.permute.xlu0 %1134  ;;  %10371 = vst [vmem:[#allocation116_spill] sm:$0xff] %v7135_v39  ;;  %v10374_v35 = vrot.slane %v10269_v8, 7  ;;  %v1065_v8 = vsel %vm1062_vm5, %v6529_v22, %v6723_v10  ;;  %v2287_v30 = vmul.f32 %v4343_v58, %v6257_v12  ;;  %v2288_v15 = vmul.f32 %v4344_v36, %v10224_v37 }
 0x204   : > { %1042 = vrot.lane.b32.xlu0 %v797_v34, %s4387_s11  ;;  %v7141_v34 = vsel %vm854_vm1, %v10369_v14, %v10370_v7  ;;  %v2169_v24 = vadd.f32 %v2153_v27, %v6856_v18  ;;  %v2170_v28 = vadd.f32 %v2154_v52, %v6859_v56  ;;  %v2243_v7 = vmul.f32 %v6343_v25, %v7135_v39  ;;  %v10375_v27 = vld [vmem:[#allocation161_spill] sm:$0xff] }
 0x205   : > { %10372 = vst [vmem:[#allocation108_spill] sm:$0xff] %v7141_v34  ;;  %v799_v13 = vsel %vm769_vm3, %v10374_v35, %v9624_v48  ;;  %v2242_v14 = vmul.f32 %v6340_v63, %v7141_v34  ;;  %v903_v18 = vadd.f32 %v887_v6, %v5728_v31  ;;  %v904_v56 = vadd.f32 %v888_v41, %v10375_v27  ;;  %v10387_v39 = vld [vmem:[#allocation29_spill] sm:$0xff] }
 0x206   : > { %v843_v52 = vpop.permute.xlu1 %842  ;;  %v1073_v35 = vsel %vm1062_vm5, %v6723_v10, %v6529_v22  ;;  %v10376_v48 = vrot.slane %v10297_v57, 7  ;;  %v2259_v3 = vadd.f32 %v2243_v7, %v2170_v28  ;;  %v10378_v10 = vld [vmem:[#allocation59_spill] sm:$0xff]  ;;  %v1096_v57 = vmul.f32 %v10379_v59, %v1065_v8  ;;  %v10381_v28 = vld [vmem:[#allocation176_spill] sm:$0xff] }
 0x207   : > { %1725 = vrot.lane.b32.xlu1 %v1466_v50, %s4387_s11  ;;  %v7159_v50 = vpop.permute.xlu0 %1288  ;;  %v2258_v41 = vadd.f32 %v2242_v14, %v2169_v24  ;;  %v1018_v22 = vadd.f32 %v10377_v43, %v903_v18  ;;  %v1019_v1 = vadd.f32 %v10378_v10, %v904_v56  ;;  %v10385_v7 = vld [vmem:[#allocation172_spill] sm:$0xff]  ;;  %v10386_v18 = vld [vmem:[#allocation9_spill] sm:$0xff]  ;;  %v1236_v34 = vmul.f32 %v4343_v58, %v10387_v39 }
 0x208   : > { %848 = vrot.lane.b32.xlu0 %v799_v13, %s4386_s13  ;;  %v1857_v6 = vsel %vm769_vm3, %v10376_v48, %v9629_v32  ;;  %v1097_v48 = vmul.f32 %v10380_v46, %v1073_v35  ;;  %v1160_v56 = vsel %vm854_vm1, %v10386_v18, %v10385_v7  ;;  %v1168_v8 = vsel %vm854_vm1, %v10385_v7, %v10386_v18 }
 0x209   : > { %v2303_v35 = vadd.f32 %v2287_v30, %v2258_v41  ;;  %v2304_v10 = vadd.f32 %v2288_v15, %v2259_v3  ;;  %v1112_v7 = vadd.f32 %v1096_v57, %v1018_v22  ;;  %v10392_v30 = vld [vmem:[#allocation173_spill] sm:$0xff]  ;;  %v10393_v3 = vld [vmem:[#allocation174_spill] sm:$0xff] }
 0x20a   : > { %v7182_v32 = vpop.permute.xlu1 %1052  ;;  %v1113_v18 = vadd.f32 %v1097_v48, %v1019_v1  ;;  %v1191_v15 = vmul.f32 %v10392_v30, %v1168_v8  ;;  %v1192_v58 = vmul.f32 %v10393_v3, %v1160_v56  ;;  %v10395_v1 = vld [vmem:[#allocation65_spill] sm:$0xff]  ;;  %v4345_v48 = vld [vmem:[#allocation2 + $0x88] sm:$0xff] }
 0x20b   : > { %1908 = vrot.lane.b32.xlu1 %v1857_v6, %s4386_s13  ;;  %v7184_v24 = vpop.permute.xlu0 %1495  ;;  %v10396_v56 = vld [vmem:[#allocation56_spill] sm:$0xff] }
 0x20c   : > { %1058 = vrot.lane.b32.xlu0 %v799_v13, %s4387_s11  ;;  %v10382_v13 = vld [vmem:[#allocation164_spill] sm:$0xff]  ;;  %v1237_v8 = vmul.f32 %v4344_v36, %v10396_v56 }
 0x20d   : > { %v7190_v14 = vsel %vm1062_vm5, %v10382_v13, %v10381_v28  ;;  %v7196_v43 = vsel %vm1062_vm5, %v10381_v28, %v10382_v13  ;;  %v10388_v28 = vld [vmem:[#allocation126_spill] sm:$0xff] }
 0x20e   : > { %10383 = vst [vmem:[#allocation39_spill] sm:$0xff] %v7190_v14  ;;  %10384 = vst [vmem:[#allocation158_spill] sm:$0xff] %v7196_v43  ;;  %v800_v13 = vrot.slane %v10388_v28, 7  ;;  %v2374_v17 = vmul.f32 %v10390_v61, %v7190_v14  ;;  %v2375_v4 = vmul.f32 %v10391_v45, %v7196_v43  ;;  %v10394_v43 = vld [vmem:[#allocation64_spill] sm:$0xff]  ;;  %v10397_v45 = vrot.slane %v10347_v38, 7 }
 0x20f   : > { %2116 = vrot.lane.b32.xlu1 %v1857_v6, %s4387_s11  ;;  %v2513_v6 = vpop.permute.xlu1 %2512  ;;  %v7224_v28 = vpop.permute.xlu0 %1703  ;;  %v858_v38 = vsel %vm854_vm1, %v6989_v19, %v843_v52 }
 0x210   : > { %1278 = vrot.lane.b32.xlu0 %v7065_v9, %s4387_s11  ;;  %v2527_v9 = vsel %vm854_vm1, %v7052_v5, %v2513_v6  ;;  %v2535_v41 = vsel %vm854_vm1, %v2513_v6, %v7052_v5  ;;  %v2390_v47 = vadd.f32 %v2374_v17, %v2303_v35  ;;  %v2391_v14 = vadd.f32 %v2375_v4, %v2304_v10  ;;  %v10399_v6 = vld [vmem:[#allocation120_spill] sm:$0xff]  ;;  %v10401_v35 = vld [vmem:[#allocation46_spill] sm:$0xff] }
 0x211   : > { %v2557_v22 = vmul.f32 %v10394_v43, %v2535_v41  ;;  %v2558_v57 = vmul.f32 %v10395_v1, %v2527_v9  ;;  %v801_v61 = vsel %vm769_vm3, %v10397_v45, %v800_v13  ;;  %v10398_v5 = vrot.slane %v10389_v51, 1 }
 0x212   : > { %v10400_v17 = vrot.slane %v10399_v6, 1  ;;  %v9638_v10 = vrot.slane %v10401_v35, 1  ;;  %v1207_v9 = vadd.f32 %v1191_v15, %v1112_v7  ;;  %v1208_v41 = vadd.f32 %v1192_v58, %v1113_v18  ;;  %v10403_v15 = vld [vmem:[#allocation80_spill] sm:$0xff] }
 0x213   : > { %1294 = vrot.lane.b32.xlu1 %v4345_v48, %s4387_s11  ;;  %v2573_v1 = vadd.f32 %v2557_v22, %v2390_v47  ;;  %v2574_v43 = vadd.f32 %v2558_v57, %v2391_v14  ;;  %v2721_v36 = vpop.permute.xlu1 %2720  ;;  %v866_v45 = vsel %vm854_vm1, %v843_v52, %v6989_v19  ;;  %v7254_v18 = vpop.permute.xlu0 %1886  ;;  %v10402_v47 = vld [vmem:[#allocation79_spill] sm:$0xff]  ;;  %v10404_v19 = vrot.slane %v10353_v20, 1  ;;  %v10405_v52 = vld [vmem:[#allocation129_spill] sm:$0xff] }
 0x214   : > { %1156 = vrot.lane.b32.xlu0 %v4345_v48, %s4386_s13  ;;  %v7239_v4 = vsel %vm708_vm2, %v10400_v17, %v10398_v5  ;;  %v2735_v13 = vsel %vm1062_vm5, %v7095_v2, %v2721_v36  ;;  %v2743_v7 = vsel %vm1062_vm5, %v2721_v36, %v7095_v2  ;;  %v10406_v48 = vld [vmem:[#allocation175_spill] sm:$0xff]  ;;  %v1252_v36 = vadd.f32 %v1236_v34, %v1207_v9 }
 0x215   : > { %v2688_v14 = vadd.f32 %v10402_v47, %v2573_v1  ;;  %v2689_v58 = vadd.f32 %v10403_v15, %v2574_v43  ;;  %v2765_v22 = vmul.f32 %v6878_v23, %v2735_v13  ;;  %v2766_v57 = vmul.f32 %v6901_v42, %v2743_v7  ;;  %v10407_v43 = vld [vmem:[#allocation148_spill] sm:$0xff] }
 0x216   : > { %v7268_v2 = vsel %vm708_vm2, %v10404_v19, %v9638_v10  ;;  %v802_v1 = vrot.slane %v10405_v52, 7  ;;  %v1298_v5 = vsel %vm1062_vm5, %v10407_v43, %v10406_v48  ;;  %v1306_v6 = vsel %vm1062_vm5, %v10406_v48, %v10407_v43 }
 0x217   : > { %834 = vrot.lane.b32.xlu1 %v801_v61, %s4386_s13  ;;  %v2904_v17 = vpop.permute.xlu1 %2903  ;;  %v1253_v13 = vadd.f32 %v1237_v8, %v1208_v41  ;;  %v889_v20 = vmul.f32 %v10367_v21, %v866_v45  ;;  %v890_v7 = vmul.f32 %v10368_v44, %v858_v38  ;;  %v7287_v19 = vpop.permute.xlu0 %2094  ;;  %v2781_v52 = vadd.f32 %v2765_v22, %v2688_v14  ;;  %v10409_v8 = vld [vmem:[#allocation61_spill] sm:$0xff]  ;;  %v10410_v41 = vld [vmem:[#allocation179_spill] sm:$0xff] }
 0x218   : > { %1503 = vrot.lane.b32.xlu0 %v7239_v4, %s4386_s13  ;;  %v2918_v47 = vsel %vm854_vm1, %v7127_v49, %v2904_v17  ;;  %v2926_v15 = vsel %vm854_vm1, %v2904_v17, %v7127_v49  ;;  %10408 = vst [vmem:[#allocation125_spill] sm:$0xff] %v7287_v19  ;;  %v2782_v10 = vadd.f32 %v2766_v57, %v2689_v58  ;;  %v10411_v14 = vrot.slane %v10366_v0, 7  ;;  %v10412_v0 = vld [vmem:[#allocation18_spill] sm:$0xff] }
 0x219   : > { %v2948_v48 = vmul.f32 %v6963_v26, %v2926_v15  ;;  %v2949_v34 = vmul.f32 %v6966_v16, %v2918_v47  ;;  %v1329_v9 = vmul.f32 %v10409_v8, %v1298_v5  ;;  %v1330_v38 = vmul.f32 %v10410_v41, %v1306_v6  ;;  %v10417_v15 = vld [vmem:[#allocation187_spill] sm:$0xff] }
 0x21a   : > { %v803_v58 = vsel %vm769_vm3, %v10411_v14, %v802_v1  ;;  %v905_v22 = vadd.f32 %v889_v20, %v5728_v31  ;;  %v906_v57 = vadd.f32 %v890_v7, %v10375_v27  ;;  %v10414_v1 = vld [vmem:[#allocation110_spill] sm:$0xff]  ;;  %v10421_v14 = vld [vmem:[#allocation75_spill] sm:$0xff] }
 0x21b   : > { %1044 = vrot.lane.b32.xlu1 %v801_v61, %s4387_s11  ;;  %v2964_v45 = vadd.f32 %v2948_v48, %v2781_v52  ;;  %v2965_v43 = vadd.f32 %v2949_v34, %v2782_v10  ;;  %v7296_v49 = vpop.permute.xlu1 %1497  ;;  %v1345_v61 = vadd.f32 %v1329_v9, %v1252_v36  ;;  %v1346_v17 = vadd.f32 %v1330_v38, %v1253_v13  ;;  %v1512_v5 = vpop.permute.xlu0 %1511  ;;  %v10416_v7 = vld [vmem:[#allocation34_spill] sm:$0xff]  ;;  %v10418_v48 = vld [vmem:[#allocation85_spill] sm:$0xff] }
 0x21c   : > { %1519 = vrot.lane.b32.xlu0 %v7268_v2, %s4386_s13  ;;  %v1525_v6 = vsel %vm854_vm1, %v7184_v24, %v1512_v5  ;;  %v1533_v10 = vsel %vm854_vm1, %v1512_v5, %v7184_v24  ;;  %v1066_v36 = vsel %vm1062_vm5, %v7031_v53, %v7182_v32  ;;  %v1074_v13 = vsel %vm1062_vm5, %v7182_v32, %v7031_v53  ;;  %v10419_v9 = vld [vmem:[#allocation106_spill] sm:$0xff] }
 0x21d   : > { %v7311_v47 = vadd.f32 %v10412_v0, %v2964_v45  ;;  %v7314_v20 = vadd.f32 %v10414_v1, %v2965_v43  ;;  %v1556_v24 = vmul.f32 %v10416_v7, %v1533_v10  ;;  %v1557_v52 = vmul.f32 %v10417_v15, %v1525_v6  ;;  %v10420_v45 = vld [vmem:[#allocation74_spill] sm:$0xff] }
 0x21e   : > { %v9643_v38 = vrot.slane %v10419_v9, 1  ;;  %v1020_v43 = vadd.f32 %v10420_v45, %v905_v22  ;;  %v1021_v5 = vadd.f32 %v10421_v14, %v906_v57  ;;  %v1098_v53 = vmul.f32 %v10379_v59, %v1066_v36  ;;  %v10422_v22 = vld [vmem:[#allocation81_spill] sm:$0xff]  ;;  %v10423_v57 = vld [vmem:[#allocation82_spill] sm:$0xff] }
 0x21f   : > { %850 = vrot.lane.b32.xlu1 %v803_v58, %s4386_s13  ;;  %10413 = vst [vmem:[#allocation161_spill] sm:$0xff] %v7311_v47  ;;  %10415 = vst [vmem:[#allocation58_spill] sm:$0xff] %v7314_v20  ;;  %v7328_v34 = vpop.permute.xlu1 %1705  ;;  %v1572_v0 = vadd.f32 %v1556_v24, %v1345_v61  ;;  %v1573_v1 = vadd.f32 %v1557_v52, %v1346_v17  ;;  %v1720_v16 = vpop.permute.xlu0 %1719  ;;  %v1099_v32 = vmul.f32 %v10380_v46, %v1074_v13  ;;  %v10424_v17 = vld [vmem:[#allocation49_spill] sm:$0xff]  ;;  %v10425_v52 = vld [vmem:[#allocation190_spill] sm:$0xff] }
 0x220   : > { %2514 = vrot.lane.b32.xlu0 %v10418_v48, %s4386_s13  ;;  %v1733_v6 = vsel %vm1062_vm5, %v7224_v28, %v1720_v16  ;;  %v1741_v10 = vsel %vm1062_vm5, %v1720_v16, %v7224_v28  ;;  %v10426_v14 = vld [vmem:[#allocation57_spill] sm:$0xff]  ;;  %v10430_v20 = vld [vmem:[#allocation48_spill] sm:$0xff] }
 0x221   : > { %v1687_v45 = vadd.f32 %v10422_v22, %v1572_v0  ;;  %v1688_v61 = vadd.f32 %v10423_v57, %v1573_v1  ;;  %v1764_v24 = vmul.f32 %v10424_v17, %v1733_v6  ;;  %v1765_v36 = vmul.f32 %v10425_v52, %v1741_v10  ;;  %v10427_v0 = vld [vmem:[#allocation4_spill] sm:$0xff] }
 0x222   : > { %v1161_v16 = vsel %vm854_vm1, %v10426_v14, %v7033_v62  ;;  %v1169_v28 = vsel %vm854_vm1, %v7033_v62, %v10426_v14  ;;  %v10428_v1 = vrot.slane %v10427_v0, 1  ;;  %v1114_v22 = vadd.f32 %v1098_v53, %v1020_v43 }
 0x223   : > { %1060 = vrot.lane.b32.xlu1 %v803_v58, %s4387_s11  ;;  %v7348_v13 = vpop.permute.xlu1 %1888  ;;  %v1903_v58 = vpop.permute.xlu0 %1902  ;;  %v1115_v57 = vadd.f32 %v1099_v32, %v1021_v5  ;;  %v1780_v14 = vadd.f32 %v1764_v24, %v1687_v45  ;;  %v1781_v0 = vadd.f32 %v1765_v36, %v1688_v61  ;;  %v1193_v43 = vmul.f32 %v10392_v30, %v1169_v28  ;;  %v10434_v24 = vld [vmem:[#allocation195_spill] sm:$0xff] }
 0x224   : > { %1711 = vrot.lane.b32.xlu0 %v7239_v4, %s4387_s11  ;;  %v7363_v6 = vsel %vm708_vm2, %v10428_v1, %v9643_v38  ;;  %v10429_v4 = vld [vmem:[#allocation194_spill] sm:$0xff]  ;;  %v1916_v26 = vsel %vm854_vm1, %v7254_v18, %v1903_v58  ;;  %v1924_v62 = vsel %vm854_vm1, %v1903_v58, %v7254_v18  ;;  %v10431_v38 = vld [vmem:[#allocation191_spill] sm:$0xff]  ;;  %v1194_v5 = vmul.f32 %v10393_v3, %v1161_v16  ;;  %v10437_v16 = vld [vmem:[#allocation84_spill] sm:$0xff] }
 0x225   : > { %v1471_v10 = vrot.slane %v10429_v4, 1  ;;  %v1947_v1 = vmul.f32 %v10430_v20, %v1924_v62  ;;  %v1948_v47 = vmul.f32 %v10431_v38, %v1916_v26  ;;  %v10433_v45 = vrot.slane %v10389_v51, 1  ;;  %v7399_v51 = vld [vmem:[#allocation2 + $0x40] sm:$0xff] }
 0x226   : > { %v1473_v36 = vrot.slane %v10434_v24, 1  ;;  %v1209_v26 = vadd.f32 %v1193_v43, %v1114_v22  ;;  %v1210_v4 = vadd.f32 %v1194_v5, %v1115_v57 }
 0x227   : > { %2516 = vrot.lane.b32.xlu1 %v7363_v6, %s4386_s13  ;;  %v7380_v53 = vpop.permute.xlu1 %2096  ;;  %v1963_v32 = vadd.f32 %v1947_v1, %v1780_v14  ;;  %v1964_v18 = vadd.f32 %v1948_v47, %v1781_v0  ;;  %v7382_v58 = vpop.permute.xlu0 %2110  ;;  %v1472_v61 = vsel %vm708_vm2, %v10433_v45, %v1471_v10  ;;  %v7395_v14 = vld [vmem:[#allocation2 + $0x60] sm:$0xff]  ;;  %v1238_v47 = vmul.f32 %v7399_v51, %v10387_v39  ;;  %v7403_v10 = vld [vmem:[#allocation2 + $0x48] sm:$0xff] }
 0x228   : > { %1727 = vrot.lane.b32.xlu0 %v7268_v2, %s4387_s11  ;;  %10432 = vst [vmem:[#allocation59_spill] sm:$0xff] %v7380_v53  ;;  %v10435_v2 = vld [vmem:[#allocation83_spill] sm:$0xff]  ;;  %v1239_v22 = vmul.f32 %v7403_v10, %v10396_v56  ;;  %v10440_v1 = vld [vmem:[#allocation184_spill] sm:$0xff] }
 0x229   : > { %v7390_v28 = vadd.f32 %v10435_v2, %v1963_v32  ;;  %v7393_v62 = vadd.f32 %v10437_v16, %v1964_v18  ;;  %v10439_v0 = vld [vmem:[#allocation19_spill] sm:$0xff]  ;;  %v10441_v18 = vrot.slane %v10401_v35, 1  ;;  %v1254_v24 = vadd.f32 %v1238_v47, %v1209_v26  ;;  %v7423_v16 = vld [vmem:[#allocation2 + $0x68] sm:$0xff] }
 0x22a   : > { %v1299_v43 = vsel %vm1062_vm5, %v10440_v1, %v10439_v0  ;;  %v1307_v5 = vsel %vm1062_vm5, %v10439_v0, %v10440_v1  ;;  %v1255_v2 = vadd.f32 %v1239_v22, %v1210_v4 }
 0x22b   : > { %1505 = vrot.lane.b32.xlu1 %v1472_v61, %s4386_s13  ;;  %10436 = vst [vmem:[#allocation166_spill] sm:$0xff] %v7390_v28  ;;  %10438 = vst [vmem:[#allocation115_spill] sm:$0xff] %v7393_v62  ;;  %v7407_v57 = vpop.permute.xlu1 %1136  ;;  %v7417_v32 = vpop.permute.xlu0 %828  ;;  %v1474_v45 = vsel %vm708_vm2, %v10441_v18, %v1473_v36  ;;  %v1331_v42 = vmul.f32 %v10409_v8, %v1299_v43  ;;  %v1332_v23 = vmul.f32 %v10410_v41, %v1307_v5  ;;  %v10442_v43 = vld [vmem:[#allocation60_spill] sm:$0xff] }
 0x22c   : > { %2193 = vrot.lane.b32.xlu0 %v7395_v14, %s4386_s13  ;;  %v10471_v62 = vld [vmem:[#allocation88_spill] sm:$0xff] }
 0x22d   : > { %v1347_v4 = vadd.f32 %v1331_v42, %v1254_v24  ;;  %v1348_v47 = vadd.f32 %v1332_v23, %v1255_v2  ;;  %v10444_v24 = vld [vmem:[#allocation143_spill] sm:$0xff] }
 0x22e   : > { %v1858_v2 = vrot.slane %v10444_v24, 7 }
 0x22f   : > { %1521 = vrot.lane.b32.xlu1 %v1474_v45, %s4386_s13  ;;  %v1514_v0 = vpop.permute.xlu1 %1513  ;;  %v7435_v26 = vpop.permute.xlu0 %1038 }
 0x230   : > { %2207 = vrot.lane.b32.xlu0 %v7423_v16, %s4386_s13  ;;  %v1526_v35 = vsel %vm854_vm1, %v7296_v49, %v1514_v0  ;;  %v1534_v36 = vsel %vm854_vm1, %v1514_v0, %v7296_v49  ;;  %v10445_v0 = vld [vmem:[#allocation86_spill] sm:$0xff] }
 0x231   : > { %v1558_v22 = vmul.f32 %v10416_v7, %v1534_v36  ;;  %v1559_v1 = vmul.f32 %v10417_v15, %v1526_v35  ;;  %v10446_v35 = vld [vmem:[#allocation87_spill] sm:$0xff] }
 0x233   : > { %1713 = vrot.lane.b32.xlu1 %v1472_v61, %s4387_s11  ;;  %v1574_v5 = vadd.f32 %v1558_v22, %v1347_v4  ;;  %v1575_v18 = vadd.f32 %v1559_v1, %v1348_v47  ;;  %v1722_v25 = vpop.permute.xlu1 %1721  ;;  %v7448_v42 = vpop.permute.xlu0 %2498  ;;  %v10447_v22 = vld [vmem:[#allocation28_spill] sm:$0xff] }
 0x234   : > { %3093 = vrot.lane.b32.xlu0 %v10442_v43, %s4387_s11  ;;  %v1734_v49 = vsel %vm1062_vm5, %v7328_v34, %v1722_v25  ;;  %v1742_v23 = vsel %vm1062_vm5, %v1722_v25, %v7328_v34  ;;  %10443 = vst [vmem:[#allocation176_spill] sm:$0xff] %v7448_v42  ;;  %v10452_v42 = vld [vmem:[#allocation33_spill] sm:$0xff] }
 0x235   : > { %v1689_v61 = vadd.f32 %v10445_v0, %v1574_v5  ;;  %v1690_v36 = vadd.f32 %v10446_v35, %v1575_v18  ;;  %v1766_v4 = vmul.f32 %v10424_v17, %v1734_v49  ;;  %v1767_v47 = vmul.f32 %v10425_v52, %v1742_v23  ;;  %v10449_v49 = vld [vmem:[#allocation149_spill] sm:$0xff] }
 0x236   : > { %v10448_v5 = vrot.slane %v10307_v60, 7 }
 0x237   : > { %1729 = vrot.lane.b32.xlu1 %v1474_v45, %s4387_s11  ;;  %v1905_v1 = vpop.permute.xlu1 %1904  ;;  %v1860_v45 = vrot.slane %v10449_v49, 7  ;;  %v1782_v23 = vadd.f32 %v1766_v4, %v1689_v61  ;;  %v1783_v24 = vadd.f32 %v1767_v47, %v1690_v36  ;;  %v10454_v61 = vld [vmem:[#allocation25_spill] sm:$0xff]  ;;  %v10456_v4 = vld [vmem:[#allocation16_spill] sm:$0xff]  ;;  %v10457_v47 = vrot.slane %v10373_v11, 7  ;;  %v10461_v11 = vld [vmem:[#allocation7_spill] sm:$0xff] }
 0x238   : > { %3109 = vrot.lane.b32.xlu0 %v10447_v22, %s4387_s11  ;;  %v1917_v25 = vsel %vm854_vm1, %v7348_v13, %v1905_v1  ;;  %v1925_v34 = vsel %vm854_vm1, %v1905_v1, %v7348_v13  ;;  %v7467_v18 = vsel %vm769_vm3, %v10448_v5, %v1858_v2  ;;  %v10450_v22 = vld [vmem:[#allocation63_spill] sm:$0xff] }
 0x239   : > { %v845_v43 = vpop.permute.xlu0 %844  ;;  %v1949_v0 = vmul.f32 %v10430_v20, %v1925_v34  ;;  %v1950_v35 = vmul.f32 %v10431_v38, %v1917_v25  ;;  %v7489_v25 = vsel %vm769_vm3, %v10457_v47, %v1860_v45 }
 0x23b   : > { %2195 = vrot.lane.b32.xlu1 %v10450_v22, %s4386_s13  ;;  %v1965_v13 = vadd.f32 %v1949_v0, %v1782_v23  ;;  %v1966_v1 = vadd.f32 %v1950_v35, %v1783_v24  ;;  %v7476_v60 = vpop.permute.xlu1 %2112  ;;  %v10459_v23 = vld [vmem:[#allocation42_spill] sm:$0xff]  ;;  %v1862_v35 = vrot.slane %v10461_v11, 7  ;;  %v10465_v11 = vld [vmem:[#allocation52_spill] sm:$0xff] }
 0x23c   : > { %1894 = vrot.lane.b32.xlu0 %v7467_v18, %s4386_s13  ;;  %10451 = vst [vmem:[#allocation164_spill] sm:$0xff] %v7476_v60 }
 0x23d   : > { %v1055_v5 = vpop.permute.xlu0 %1054  ;;  %v7479_v63 = vadd.f32 %v10452_v42, %v1965_v13  ;;  %v7482_v36 = vadd.f32 %v10454_v61, %v1966_v1  ;;  %v10458_v42 = vld [vmem:[#allocation162_spill] sm:$0xff]  ;;  %v10462_v13 = vld [vmem:[#allocation40_spill] sm:$0xff]  ;;  %v859_v1 = vsel %vm854_vm1, %v7417_v32, %v845_v43  ;;  %v867_v61 = vsel %vm854_vm1, %v845_v43, %v7417_v32 }
 0x23f   : > { %10453 = vst [vmem:[#allocation172_spill] sm:$0xff] %v7479_v63  ;;  %10455 = vst [vmem:[#allocation9_spill] sm:$0xff] %v7482_v36  ;;  %2209 = vrot.lane.b32.xlu1 %v10456_v4, %s4386_s13  ;;  %v7493_v34 = vpop.permute.xlu1 %1290  ;;  %v892_v36 = vmul.f32 %v10368_v44, %v859_v1  ;;  %v1067_v1 = vsel %vm1062_vm5, %v7435_v26, %v1055_v5 }
 0x240   : > { %1910 = vrot.lane.b32.xlu0 %v7489_v25, %s4386_s13 }
 0x241   : > { %v7495_v49 = vpop.permute.xlu0 %1274 }
 0x243   : > { %3095 = vrot.lane.b32.xlu1 %v10458_v42, %s4387_s11  ;;  %v7501_v24 = vpop.permute.xlu1 %1276 }
 0x244   : > { %2706 = vrot.lane.b32.xlu0 %v10459_v23, %s4387_s11  ;;  %10460 = vst [vmem:[#allocation29_spill] sm:$0xff] %v7501_v24  ;;  %v7521_v23 = vsel %vm769_vm3, %v1858_v2, %v1862_v35  ;;  %v891_v24 = vmul.f32 %v10367_v21, %v867_v61  ;;  %v10467_v2 = vld [vmem:[#allocation21_spill] sm:$0xff]  ;;  %v908_v61 = vadd.f32 %v892_v36, %v10375_v27 }
 0x245   : > { %v7503_v0 = vpop.permute.xlu0 %1152  ;;  %v2845_v35 = vrot.slane %v10467_v2, 7  ;;  %v10468_v2 = vld [vmem:[#allocation95_spill] sm:$0xff] }
 0x247   : > { %3111 = vrot.lane.b32.xlu1 %v10462_v13, %s4387_s11  ;;  %v7516_v47 = vpop.permute.xlu1 %1154  ;;  %v1864_v13 = vrot.slane %v10465_v11, 7  ;;  %v907_v11 = vadd.f32 %v891_v24, %v5728_v31  ;;  %v10469_v24 = vrot.slane %v10468_v2, 7  ;;  %v10475_v2 = vld [vmem:[#allocation62_spill] sm:$0xff] }
 0x248   : > { %2722 = vrot.lane.b32.xlu0 %v10418_v48, %s4387_s11  ;;  %10463 = vst [vmem:[#allocation126_spill] sm:$0xff] %v7516_v47  ;;  %v1100_v47 = vmul.f32 %v10379_v59, %v1067_v1  ;;  %v10476_v1 = vld [vmem:[#allocation99_spill] sm:$0xff] }
 0x249   : > { %v7518_v42 = vpop.permute.xlu0 %1138  ;;  %v7533_v43 = vsel %vm769_vm3, %v1860_v45, %v1864_v13  ;;  %v7551_v36 = vsel %vm769_vm3, %v10469_v24, %v2845_v35  ;;  %v1022_v28 = vadd.f32 %v10471_v62, %v907_v11  ;;  %v1162_v24 = vsel %vm854_vm1, %v7129_v55, %v10475_v2 }
 0x24a   : > { %10464 = vst [vmem:[#allocation45_spill] sm:$0xff] %v7518_v42  ;;  %v1023_v42 = vadd.f32 %v10472_v54, %v908_v61  ;;  %v1170_v54 = vsel %vm854_vm1, %v10475_v2, %v7129_v55  ;;  %v1196_v55 = vmul.f32 %v10393_v3, %v1162_v24 }
 0x24b   : > { %1896 = vrot.lane.b32.xlu1 %v7521_v23, %s4386_s13  ;;  %v831_v48 = vpop.permute.xlu1 %830  ;;  %v1116_v11 = vadd.f32 %v1100_v47, %v1022_v28 }
 0x24c   : > { %2325 = vrot.lane.b32.xlu0 %v7395_v14, %s4387_s11  ;;  %v1075_v14 = vsel %vm1062_vm5, %v1055_v5, %v7435_v26  ;;  %v10473_v5 = vld [vmem:[#allocation133_spill] sm:$0xff] }
 0x24d   : > { %v7530_v32 = vpop.permute.xlu0 %1292  ;;  %v1101_v26 = vmul.f32 %v10380_v46, %v1075_v14  ;;  %v10477_v14 = vrot.slane %v10476_v1, 7  ;;  %v7601_v1 = vld [vmem:[#allocation2 + $0x58] sm:$0xff] }
 0x24e   : > { %10466 = vst [vmem:[#allocation173_spill] sm:$0xff] %v7530_v32  ;;  %v10470_v32 = vld [vmem:[#allocation127_spill] sm:$0xff] }
 0x24f   : > { %1912 = vrot.lane.b32.xlu1 %v7533_v43, %s4386_s13  ;;  %v1041_v45 = vpop.permute.xlu1 %1040  ;;  %v9659_v63 = vrot.slane %v10470_v32, 7  ;;  %v1117_v61 = vadd.f32 %v1101_v26, %v1023_v42 }
 0x250   : > { %2339 = vrot.lane.b32.xlu0 %v7423_v16, %s4387_s11 }
 0x251   : > { %v1500_v13 = vpop.permute.xlu0 %1499  ;;  %v1212_v42 = vadd.f32 %v1196_v55, %v1117_v61  ;;  %v10478_v61 = vld [vmem:[#allocation41_spill] sm:$0xff] }
 0x253   : > { %2708 = vrot.lane.b32.xlu1 %v10473_v5, %s4387_s11  ;;  %v7562_v16 = vpop.permute.xlu1 %2500  ;;  %v7581_v5 = vsel %vm769_vm3, %v10477_v14, %v9659_v63 }
 0x254   : > { %2889 = vrot.lane.b32.xlu0 %v7551_v36, %s4386_s13  ;;  %10474 = vst [vmem:[#allocation174_spill] sm:$0xff] %v7562_v16  ;;  %v1195_v16 = vmul.f32 %v10392_v30, %v1170_v54  ;;  %v7597_v54 = vld [vmem:[#allocation2 + $0x50] sm:$0xff] }
 0x255   : > { %v7572_v62 = vpop.permute.xlu0 %1707  ;;  %v1240_v24 = vmul.f32 %v7597_v54, %v10387_v39 }
 0x256   : > { %v1211_v47 = vadd.f32 %v1195_v16, %v1116_v11  ;;  %v1241_v16 = vmul.f32 %v7601_v1, %v10396_v56 }
 0x257   : > { %2724 = vrot.lane.b32.xlu1 %v7363_v6, %s4387_s11 }
 0x258   : > { %2905 = vrot.lane.b32.xlu0 %v7581_v5, %s4386_s13  ;;  %v847_v2 = vpop.permute.xlu1 %846  ;;  %v1256_v55 = vadd.f32 %v1240_v24, %v1211_v47  ;;  %v1257_v14 = vadd.f32 %v1241_v16, %v1212_v42  ;;  %v10484_v47 = vrot.slane %v10478_v61, 7  ;;  %v10486_v24 = vld [vmem:[#allocation104_spill] sm:$0xff] }
 0x259   : > { %v7587_v28 = vpop.permute.xlu0 %1890  ;;  %v860_v6 = vsel %vm854_vm1, %v831_v48, %v847_v2  ;;  %v868_v26 = vsel %vm854_vm1, %v847_v2, %v831_v48  ;;  %v10479_v48 = vld [vmem:[#allocation8_spill] sm:$0xff]  ;;  %v10487_v16 = vrot.slane %v10486_v24, 1 }
 0x25a   : > { %v893_v63 = vmul.f32 %v10367_v21, %v868_v26  ;;  %v894_v53 = vmul.f32 %v10368_v44, %v860_v6  ;;  %v7634_v42 = vsel %vm769_vm3, %v2845_v35, %v10484_v47 }
 0x25b   : > { %2327 = vrot.lane.b32.xlu1 %v10450_v22, %s4387_s11  ;;  %v10480_v22 = vld [vmem:[#allocation136_spill] sm:$0xff] }
 0x25c   : > { %2102 = vrot.lane.b32.xlu0 %v7467_v18, %s4387_s11  ;;  %v1057_v11 = vpop.permute.xlu1 %1056  ;;  %v1300_v18 = vsel %vm1062_vm5, %v10480_v22, %v7159_v50  ;;  %v1308_v2 = vsel %vm1062_vm5, %v7159_v50, %v10480_v22  ;;  %v10482_v50 = vld [vmem:[#allocation31_spill] sm:$0xff]  ;;  %v910_v44 = vadd.f32 %v894_v53, %v10375_v27 }
 0x25d   : > { %v7617_v60 = vpop.permute.xlu0 %2098  ;;  %v1333_v29 = vmul.f32 %v10409_v8, %v1300_v18  ;;  %v1334_v40 = vmul.f32 %v10410_v41, %v1308_v2  ;;  %v10483_v22 = vld [vmem:[#allocation123_spill] sm:$0xff]  ;;  %v1068_v35 = vsel %vm1062_vm5, %v1041_v45, %v1057_v11  ;;  %v1076_v47 = vsel %vm1062_vm5, %v1057_v11, %v1041_v45 }
 0x25e   : > { %10481 = vst [vmem:[#allocation56_spill] sm:$0xff] %v7617_v60  ;;  %v2464_v6 = vrot.slane %v10483_v22, 1  ;;  %v909_v60 = vadd.f32 %v893_v63, %v5728_v31  ;;  %v10491_v45 = vrot.slane %v10419_v9, 1 }
 0x25f   : > { %2341 = vrot.lane.b32.xlu1 %v10456_v4, %s4387_s11  ;;  %v1349_v2 = vadd.f32 %v1333_v29, %v1256_v55  ;;  %v1350_v26 = vadd.f32 %v1334_v40, %v1257_v14  ;;  %v10490_v14 = vrot.slane %v10470_v32, 7  ;;  %v1103_v32 = vmul.f32 %v10380_v46, %v1076_v47 }
 0x260   : > { %2118 = vrot.lane.b32.xlu0 %v7489_v25, %s4387_s11  ;;  %v10485_v25 = vrot.slane %v10479_v48, 1  ;;  %v7671_v11 = vsel %vm708_vm2, %v10491_v45, %v2464_v6 }
 0x261   : > { %v7625_v19 = vpop.permute.xlu1 %1501  ;;  %v1516_v4 = vpop.permute.xlu0 %1515 }
 0x262   : > { %v7641_v18 = vsel %vm708_vm2, %v10487_v16, %v10485_v25  ;;  %v1527_v63 = vsel %vm854_vm1, %v1500_v13, %v1516_v4  ;;  %v1535_v53 = vsel %vm854_vm1, %v1516_v4, %v1500_v13  ;;  %v10489_v13 = vrot.slane %v10482_v50, 7  ;;  %v10492_v4 = vld [vmem:[#allocation90_spill] sm:$0xff]  ;;  %v10493_v16 = vld [vmem:[#allocation91_spill] sm:$0xff] }
 0x263   : > { %10488 = vst [vmem:[#allocation120_spill] sm:$0xff] %v7641_v18  ;;  %2891 = vrot.lane.b32.xlu1 %v7634_v42, %s4386_s13  ;;  %v1560_v25 = vmul.f32 %v10416_v7, %v1535_v53  ;;  %v1561_v29 = vmul.f32 %v10417_v15, %v1527_v63  ;;  %v1024_v24 = vadd.f32 %v10492_v4, %v909_v60  ;;  %v10494_v60 = vld [vmem:[#allocation92_spill] sm:$0xff] }
 0x264   : > { %2502 = vrot.lane.b32.xlu0 %v7641_v18, %s4386_s13  ;;  %v7664_v55 = vsel %vm769_vm3, %v10490_v14, %v10489_v13  ;;  %v1025_v63 = vadd.f32 %v10493_v16, %v910_v44  ;;  %v1102_v50 = vmul.f32 %v10379_v59, %v1068_v35 }
 0x265   : > { %v7657_v40 = vpop.permute.xlu1 %1709  ;;  %v1576_v53 = vadd.f32 %v1560_v25, %v1349_v2  ;;  %v1577_v61 = vadd.f32 %v1561_v29, %v1350_v26  ;;  %v1724_v18 = vpop.permute.xlu0 %1723  ;;  %v10495_v2 = vld [vmem:[#allocation3_spill] sm:$0xff] }
 0x266   : > { %v1735_v13 = vsel %vm1062_vm5, %v7572_v62, %v1724_v18  ;;  %v1743_v9 = vsel %vm1062_vm5, %v1724_v18, %v7572_v62  ;;  %v1163_v62 = vsel %vm854_vm1, %v7407_v57, %v7503_v0  ;;  %v1171_v18 = vsel %vm854_vm1, %v7503_v0, %v7407_v57  ;;  %v10496_v0 = vld [vmem:[#allocation100_spill] sm:$0xff] }
 0x267   : > { %2907 = vrot.lane.b32.xlu1 %v7664_v55, %s4386_s13  ;;  %v1691_v44 = vadd.f32 %v10494_v60, %v1576_v53  ;;  %v1692_v26 = vadd.f32 %v10495_v2, %v1577_v61  ;;  %v1768_v25 = vmul.f32 %v10424_v17, %v1735_v13  ;;  %v1769_v35 = vmul.f32 %v10425_v52, %v1743_v9 }
 0x268   : > { %2518 = vrot.lane.b32.xlu0 %v7671_v11, %s4386_s13  ;;  %v1118_v29 = vadd.f32 %v1102_v50, %v1024_v24  ;;  %v1119_v14 = vadd.f32 %v1103_v32, %v1025_v63  ;;  %v1197_v50 = vmul.f32 %v10392_v30, %v1171_v18  ;;  %v1198_v24 = vmul.f32 %v10393_v3, %v1163_v62  ;;  %v4352_v62 = vld [vmem:[#allocation2 + $0x60] sm:$0xff] }
 0x269   : > { %v7691_v47 = vpop.permute.xlu1 %1892  ;;  %v1907_v61 = vpop.permute.xlu0 %1906  ;;  %v1784_v16 = vadd.f32 %v1768_v25, %v1691_v44  ;;  %v1785_v53 = vadd.f32 %v1769_v35, %v1692_v26  ;;  %v10500_v26 = vld [vmem:[#allocation97_spill] sm:$0xff]  ;;  %v10502_v35 = vld [vmem:[#allocation98_spill] sm:$0xff] }
 0x26a   : > { %v1918_v45 = vsel %vm854_vm1, %v7587_v28, %v1907_v61  ;;  %v1926_v4 = vsel %vm854_vm1, %v1907_v61, %v7587_v28  ;;  %v1213_v44 = vadd.f32 %v1197_v50, %v1118_v29  ;;  %v1214_v2 = vadd.f32 %v1198_v24, %v1119_v14  ;;  %v10504_v14 = vld [vmem:[#allocation22_spill] sm:$0xff] }
 0x26b   : > { %2104 = vrot.lane.b32.xlu1 %v7521_v23, %s4387_s11  ;;  %v1951_v13 = vmul.f32 %v10430_v20, %v1926_v4  ;;  %v1952_v57 = vmul.f32 %v10431_v38, %v1918_v45  ;;  %v10499_v23 = vld [vmem:[#allocation43_spill] sm:$0xff]  ;;  %v1242_v61 = vmul.f32 %v4352_v62, %v10387_v39  ;;  %v4353_v45 = vld [vmem:[#allocation2 + $0x68] sm:$0xff] }
 0x26c   : > { %2197 = vrot.lane.b32.xlu0 %v10496_v0, %s4386_s13  ;;  %v9672_v60 = vrot.slane %v10499_v23, 1  ;;  %v1243_v4 = vmul.f32 %v4353_v45, %v10396_v56  ;;  %v10506_v0 = vld [vmem:[#allocation38_spill] sm:$0xff]  ;;  %v10510_v62 = vld [vmem:[#allocation24_spill] sm:$0xff] }
 0x26d   : > { %v7715_v63 = vpop.permute.xlu1 %2100  ;;  %v1967_v32 = vadd.f32 %v1951_v13, %v1784_v16  ;;  %v1968_v28 = vadd.f32 %v1952_v57, %v1785_v53  ;;  %v7717_v9 = vpop.permute.xlu0 %2114  ;;  %v3390_v16 = vrot.slane %v10504_v14, 1  ;;  %v10505_v13 = vrot.slane %v10479_v48, 1 }
 0x26e   : > { %10497 = vst [vmem:[#allocation46_spill] sm:$0xff] %v7715_v63  ;;  %10498 = vst [vmem:[#allocation79_spill] sm:$0xff] %v7717_v9  ;;  %v9674_v50 = vrot.slane %v10506_v0, 1  ;;  %v1258_v24 = vadd.f32 %v1242_v61, %v1213_v44  ;;  %v7835_v63 = vld [vmem:[#allocation2 + $0x98] sm:$0xff]  ;;  %v10529_v9 = vld [vmem:[#allocation59_spill] sm:$0xff] }
 0x26f   : > { %2120 = vrot.lane.b32.xlu1 %v7533_v43, %s4387_s11  ;;  %v7723_v25 = vadd.f32 %v10500_v26, %v1967_v32  ;;  %v7726_v18 = vadd.f32 %v10502_v35, %v1968_v28  ;;  %v1301_v43 = vsel %vm1062_vm5, %v7495_v49, %v7493_v34  ;;  %v7748_v57 = vsel %vm708_vm2, %v10505_v13, %v9672_v60  ;;  %v10507_v28 = vld [vmem:[#allocation13_spill] sm:$0xff] }
 0x270   : > { %3097 = vrot.lane.b32.xlu0 %v7551_v36, %s4387_s11  ;;  %v1309_v36 = vsel %vm1062_vm5, %v7493_v34, %v7495_v49  ;;  %v1259_v32 = vadd.f32 %v1243_v4, %v1214_v2  ;;  %v3389_v26 = vrot.slane %v10507_v28, 1  ;;  %v7754_v35 = vld [vmem:[#allocation2 + $0x70] sm:$0xff]  ;;  %v10509_v49 = vld [vmem:[#allocation135_spill] sm:$0xff]  ;;  %v1335_v14 = vmul.f32 %v10409_v8, %v1301_v43  ;;  %v10511_v4 = vld [vmem:[#allocation134_spill] sm:$0xff] }
 0x271   : > { %10501 = vst [vmem:[#allocation80_spill] sm:$0xff] %v7723_v25  ;;  %10503 = vst [vmem:[#allocation129_spill] sm:$0xff] %v7726_v18  ;;  %v7732_v29 = vpop.permute.xlu1 %1140  ;;  %v7758_v34 = vmul.f32 %v7754_v35, %v10387_v39  ;;  %v3393_v48 = vrot.slane %v10509_v49, 1  ;;  %v1336_v44 = vmul.f32 %v10410_v41, %v1309_v36  ;;  %v3392_v13 = vrot.slane %v10511_v4, 1  ;;  %v10512_v36 = vld [vmem:[#allocation142_spill] sm:$0xff] }
 0x272   : > { %v833_v53 = vpop.permute.xlu0 %832  ;;  %10508 = vst [vmem:[#allocation175_spill] sm:$0xff] %v7754_v35  ;;  %v7767_v61 = vsel %vm708_vm2, %v3389_v26, %v3390_v16  ;;  %v7781_v43 = vsel %vm708_vm2, %v2464_v6, %v9674_v50  ;;  %v9677_v26 = vrot.slane %v10512_v36, 1  ;;  %v1351_v60 = vadd.f32 %v1335_v14, %v1258_v24 }
 0x273   : > { %2504 = vrot.lane.b32.xlu1 %v7748_v57, %s4386_s13  ;;  %v1352_v4 = vadd.f32 %v1336_v44, %v1259_v32  ;;  %v7797_v22 = vsel %vm708_vm2, %v3392_v13, %v3393_v48  ;;  %v10514_v6 = vrot.slane %v10510_v62, 1  ;;  %v7806_v32 = vmul.f32 %v7399_v51, %v6257_v12  ;;  %v10559_v62 = vld [vmem:[#allocation9_spill] sm:$0xff] }
 0x274   : > { %3113 = vrot.lane.b32.xlu0 %v7581_v5, %s4387_s11  ;;  %v7814_v13 = vmul.f32 %v7597_v54, %v6257_v12  ;;  %v10516_v54 = vld [vmem:[#allocation137_spill] sm:$0xff] }
 0x275   : > { %v1518_v2 = vpop.permute.xlu1 %1517  ;;  %v7802_v24 = vsel %vm708_vm2, %v3390_v16, %v10514_v6 }
 0x276   : > { %v1528_v28 = vsel %vm854_vm1, %v7625_v19, %v1518_v2  ;;  %v1536_v5 = vsel %vm854_vm1, %v1518_v2, %v7625_v19  ;;  %v1043_v49 = vpop.permute.xlu0 %1042  ;;  %v7788_v19 = vld [vmem:[#allocation2 + $0x78] sm:$0xff]  ;;  %10515 = vst [vmem:[#allocation61_spill] sm:$0xff] %v7802_v24 }
 0x277   : > { %v1562_v45 = vmul.f32 %v10416_v7, %v1536_v5  ;;  %v1563_v35 = vmul.f32 %v10417_v15, %v1528_v28  ;;  %2520 = vrot.lane.b32.xlu1 %v7781_v43, %s4386_s13  ;;  %10513 = vst [vmem:[#allocation148_spill] sm:$0xff] %v7788_v19  ;;  %v7792_v2 = vmul.f32 %v7788_v19, %v10396_v56 }
 0x278   : > { %3439 = vrot.lane.b32.xlu0 %v7767_v61, %s4386_s13  ;;  %v7810_v5 = vmul.f32 %v7403_v10, %v10224_v37  ;;  %v7829_v10 = vmul.f32 %v7601_v1, %v10224_v37 }
 0x279   : > { %v1578_v14 = vadd.f32 %v1562_v45, %v1351_v60  ;;  %v1579_v44 = vadd.f32 %v1563_v35, %v1352_v4  ;;  %v1726_v28 = vpop.permute.xlu1 %1725  ;;  %v7825_v60 = vsel %vm708_vm2, %v3393_v48, %v9677_v26  ;;  %v10517_v45 = vld [vmem:[#allocation138_spill] sm:$0xff]  ;;  %v10518_v48 = vld [vmem:[#allocation96_spill] sm:$0xff] }
 0x27a   : > { %v1736_v16 = vsel %vm1062_vm5, %v7657_v40, %v1726_v28  ;;  %v1744_v51 = vsel %vm1062_vm5, %v1726_v28, %v7657_v40  ;;  %v849_v6 = vpop.permute.xlu0 %848 }
 0x27b   : > { %v1693_v35 = vadd.f32 %v10516_v54, %v1578_v14  ;;  %v1694_v4 = vadd.f32 %v10517_v45, %v1579_v44  ;;  %v1770_v50 = vmul.f32 %v10424_v17, %v1736_v16  ;;  %v1771_v19 = vmul.f32 %v10425_v52, %v1744_v51  ;;  %2211 = vrot.lane.b32.xlu1 %v7835_v63, %s4386_s13  ;;  %v10519_v44 = vld [vmem:[#allocation35_spill] sm:$0xff]  ;;  %v10520_v16 = vld [vmem:[#allocation125_spill] sm:$0xff] }
 0x27c   : > { %v861_v40 = vsel %vm854_vm1, %v833_v53, %v849_v6  ;;  %v869_v1 = vsel %vm854_vm1, %v849_v6, %v833_v53  ;;  %3455 = vrot.lane.b32.xlu0 %v7797_v22, %s4386_s13  ;;  %v2124_v51 = vsel %vm1062_vm5, %v10520_v16, %v7382_v58  ;;  %v2132_v54 = vsel %vm1062_vm5, %v7382_v58, %v10520_v16  ;;  %v10521_v53 = vld [vmem:[#allocation117_spill] sm:$0xff] }
 0x27d   : > { %v895_v45 = vmul.f32 %v10367_v21, %v869_v1  ;;  %v896_v6 = vmul.f32 %v10521_v53, %v861_v40  ;;  %v1909_v26 = vpop.permute.xlu1 %1908  ;;  %v1786_v37 = vadd.f32 %v1770_v50, %v1693_v35  ;;  %v1787_v12 = vadd.f32 %v1771_v19, %v1694_v4  ;;  %v10522_v50 = vld [vmem:[#allocation47_spill] sm:$0xff]  ;;  %v10523_v35 = vld [vmem:[#allocation188_spill] sm:$0xff]  ;;  %v4357_v17 = vld [vmem:[#allocation2 + $0x90] sm:$0xff] }
 0x27e   : > { %v1919_v28 = vsel %vm854_vm1, %v7691_v47, %v1909_v26  ;;  %v1927_v14 = vsel %vm854_vm1, %v1909_v26, %v7691_v47  ;;  %v1059_v18 = vpop.permute.xlu0 %1058  ;;  %v2155_v19 = vmul.f32 %v10522_v50, %v2124_v51  ;;  %v2156_v4 = vmul.f32 %v10523_v35, %v2132_v54  ;;  %v10524_v26 = vld [vmem:[#allocation120_spill] sm:$0xff] }
 0x27f   : > { %v911_v25 = vadd.f32 %v895_v45, %v5728_v31  ;;  %v912_v58 = vadd.f32 %v896_v6, %v10375_v27  ;;  %v1953_v1 = vmul.f32 %v10430_v20, %v1927_v14  ;;  %v1954_v40 = vmul.f32 %v10431_v38, %v1919_v28  ;;  %3099 = vrot.lane.b32.xlu1 %v7634_v42, %s4387_s11  ;;  %v10525_v6 = vld [vmem:[#allocation139_spill] sm:$0xff]  ;;  %v10526_v38 = vld [vmem:[#allocation140_spill] sm:$0xff] }
 0x280   : > { %v1069_v16 = vsel %vm1062_vm5, %v1043_v49, %v1059_v18  ;;  %v1077_v47 = vsel %vm1062_vm5, %v1059_v18, %v1043_v49  ;;  %2710 = vrot.lane.b32.xlu0 %v10524_v26, %s4387_s11  ;;  %v10528_v51 = vld [vmem:[#allocation164_spill] sm:$0xff] }
 0x281   : > { %v1969_v45 = vadd.f32 %v1953_v1, %v1786_v37  ;;  %v1970_v14 = vadd.f32 %v1954_v40, %v1787_v12  ;;  %v1026_v28 = vadd.f32 %v10525_v6, %v911_v25  ;;  %v1027_v20 = vadd.f32 %v10526_v38, %v912_v58  ;;  %v7879_v42 = vpop.permute.xlu1 %2116  ;;  %v10531_v25 = vld [vmem:[#allocation126_spill] sm:$0xff]  ;;  %v10532_v38 = vld [vmem:[#allocation45_spill] sm:$0xff] }
 0x282   : > { %10527 = vst [vmem:[#allocation179_spill] sm:$0xff] %v7879_v42  ;;  %v2125_v54 = vsel %vm1062_vm5, %v10529_v9, %v10528_v51  ;;  %v2133_v18 = vsel %vm1062_vm5, %v10528_v51, %v10529_v9  ;;  %v1104_v49 = vmul.f32 %v10379_v59, %v1069_v16  ;;  %v1105_v12 = vmul.f32 %v10380_v46, %v1077_v47  ;;  %v7891_v37 = vpop.permute.xlu0 %1278  ;;  %v10533_v40 = vld [vmem:[#allocation141_spill] sm:$0xff]  ;;  %v10535_v9 = vld [vmem:[#allocation144_spill] sm:$0xff]  ;;  %v10537_v16 = vld [vmem:[#allocation102_spill] sm:$0xff] }
 0x283   : > { %10530 = vst [vmem:[#allocation18_spill] sm:$0xff] %v7891_v37  ;;  %v1164_v58 = vsel %vm854_vm1, %v10532_v38, %v10531_v25  ;;  %v1172_v1 = vsel %vm854_vm1, %v10531_v25, %v10532_v38  ;;  %v7902_v26 = vadd.f32 %v10533_v40, %v1969_v45  ;;  %v7905_v6 = vadd.f32 %v10535_v9, %v1970_v14  ;;  %v10538_v47 = vld [vmem:[#allocation17_spill] sm:$0xff]  ;;  %v10541_v14 = vld [vmem:[#allocation166_spill] sm:$0xff] }
 0x284   : > { %3115 = vrot.lane.b32.xlu1 %v7664_v55, %s4387_s11  ;;  %v7913_v51 = vsel %vm854_vm1, %v10538_v47, %v10537_v16  ;;  %v7919_v25 = vsel %vm854_vm1, %v10537_v16, %v10538_v47  ;;  %v1120_v45 = vadd.f32 %v1104_v49, %v1026_v28  ;;  %v1121_v38 = vadd.f32 %v1105_v12, %v1027_v20  ;;  %v10542_v55 = vld [vmem:[#allocation115_spill] sm:$0xff]  ;;  %v10544_v20 = vld [vmem:[#allocation37_spill] sm:$0xff] }
 0x285   : > { %10534 = vst [vmem:[#allocation110_spill] sm:$0xff] %v7902_v26  ;;  %10536 = vst [vmem:[#allocation34_spill] sm:$0xff] %v7905_v6  ;;  %2726 = vrot.lane.b32.xlu0 %v7671_v11, %s4387_s11  ;;  %v2171_v40 = vadd.f32 %v2155_v19, %v10541_v14  ;;  %v2172_v9 = vadd.f32 %v2156_v4, %v10542_v55  ;;  %v2157_v6 = vmul.f32 %v10522_v50, %v2125_v54  ;;  %v7927_v42 = vpop.permute.xlu1 %1294  ;;  %v10545_v49 = vld [vmem:[#allocation15_spill] sm:$0xff]  ;;  %v10546_v19 = vld [vmem:[#allocation185_spill] sm:$0xff] }
 0x286   : > { %10539 = vst [vmem:[#allocation187_spill] sm:$0xff] %v7913_v51  ;;  %10540 = vst [vmem:[#allocation85_spill] sm:$0xff] %v7919_v25  ;;  %v2158_v26 = vmul.f32 %v10523_v35, %v2133_v18  ;;  %v1199_v52 = vmul.f32 %v10392_v30, %v1172_v1  ;;  %v1200_v16 = vmul.f32 %v10393_v3, %v1164_v58  ;;  %v7931_v47 = vpop.permute.xlu0 %1156  ;;  %v10547_v4 = vld [vmem:[#allocation186_spill] sm:$0xff]  ;;  %v10548_v18 = vrot.slane %v10518_v48, 7  ;;  %v10549_v1 = vld [vmem:[#allocation41_spill] sm:$0xff] }
 0x287   : > { %10543 = vst [vmem:[#allocation106_spill] sm:$0xff] %v7927_v42  ;;  %v2244_v12 = vmul.f32 %v10546_v19, %v7919_v25  ;;  %v2245_v54 = vmul.f32 %v10547_v4, %v7913_v51  ;;  %v10550_v14 = vrot.slane %v10549_v1, 7  ;;  %v10551_v55 = vrot.slane %v10519_v44, 7  ;;  %v10552_v28 = vld [vmem:[#allocation31_spill] sm:$0xff]  ;;  %v10554_v25 = vld [vmem:[#allocation69_spill] sm:$0xff]  ;;  %v10555_v50 = vld [vmem:[#allocation14_spill] sm:$0xff] }
 0x288   : > { %3441 = vrot.lane.b32.xlu1 %v7802_v24, %s4386_s13  ;;  %v10553_v11 = vrot.slane %v10552_v28, 7  ;;  %v7959_v51 = vsel %vm854_vm1, %v10555_v50, %v10554_v25  ;;  %v7965_v1 = vsel %vm854_vm1, %v10554_v25, %v10555_v50  ;;  %v2174_v24 = vadd.f32 %v2158_v26, %v10559_v62 }
 0x289   : > { %v7946_v58 = vsel %vm769_vm3, %v10550_v14, %v10548_v18  ;;  %10556 = vst [vmem:[#allocation74_spill] sm:$0xff] %v7959_v51  ;;  %10557 = vst [vmem:[#allocation75_spill] sm:$0xff] %v7965_v1  ;;  %v1215_v18 = vadd.f32 %v1199_v52, %v1120_v45  ;;  %v1216_v14 = vadd.f32 %v1200_v16, %v1121_v38  ;;  %2329 = vrot.lane.b32.xlu0 %v4357_v17, %s4387_s11  ;;  %v835_v0 = vpop.permute.xlu1 %834  ;;  %v10564_v45 = vld [vmem:[#allocation189_spill] sm:$0xff]  ;;  %v10565_v38 = vld [vmem:[#allocation76_spill] sm:$0xff] }
 0x28a   : > { %v7953_v35 = vsel %vm769_vm3, %v10553_v11, %v10551_v55  ;;  %v2260_v28 = vadd.f32 %v2244_v12, %v2171_v40  ;;  %v2261_v11 = vadd.f32 %v2245_v54, %v2172_v9  ;;  %v10558_v55 = vld [vmem:[#allocation172_spill] sm:$0xff]  ;;  %v1504_v44 = vpop.permute.xlu0 %1503  ;;  %v10560_v37 = vrot.slane %v10544_v20, 7  ;;  %v10566_v40 = vld [vmem:[#allocation173_spill] sm:$0xff]  ;;  %v10569_v16 = vld [vmem:[#allocation71_spill] sm:$0xff] }
 0x28b   : > { %v2173_v36 = vadd.f32 %v2157_v6, %v10558_v55  ;;  %v10561_v42 = vrot.slane %v10518_v48, 7  ;;  %v10562_v52 = vrot.slane %v10545_v49, 1  ;;  %v10563_v25 = vrot.slane %v10499_v23, 1  ;;  %v10568_v9 = vld [vmem:[#allocation204_spill] sm:$0xff] }
 0x28c   : > { %v2246_v26 = vmul.f32 %v10546_v19, %v7965_v1  ;;  %v2247_v48 = vmul.f32 %v10547_v4, %v7959_v51  ;;  %3457 = vrot.lane.b32.xlu1 %v7825_v60, %s4386_s13  ;;  %v8004_v12 = vsel %vm1062_vm5, %v10569_v16, %v10568_v9  ;;  %v8010_v54 = vsel %vm1062_vm5, %v10568_v9, %v10569_v16  ;;  %v10572_v51 = vld [vmem:[#allocation70_spill] sm:$0xff]  ;;  %v10573_v1 = vld [vmem:[#allocation53_spill] sm:$0xff] }
 0x28d   : > { %v7975_v50 = vsel %vm769_vm3, %v10561_v42, %v10560_v37  ;;  %v7982_v17 = vsel %vm708_vm2, %v10563_v25, %v10562_v52  ;;  %v10567_v42 = vld [vmem:[#allocation29_spill] sm:$0xff]  ;;  %10570 = vst [vmem:[#allocation81_spill] sm:$0xff] %v8004_v12  ;;  %10571 = vst [vmem:[#allocation82_spill] sm:$0xff] %v8010_v54  ;;  %2893 = vrot.lane.b32.xlu0 %v7946_v58, %s4386_s13  ;;  %v1260_v55 = vadd.f32 %v7758_v34, %v1215_v18  ;;  %v10577_v18 = vld [vmem:[#allocation130_spill] sm:$0xff] }
 0x28e   : > { %v1302_v37 = vsel %vm1062_vm5, %v10567_v42, %v10566_v40  ;;  %v1310_v23 = vsel %vm1062_vm5, %v10566_v40, %v10567_v42  ;;  %v1261_v52 = vadd.f32 %v7792_v2, %v1216_v14  ;;  %v2262_v25 = vadd.f32 %v2246_v26, %v2173_v36  ;;  %v1045_v42 = vpop.permute.xlu1 %1044 }
 0x28f   : > { %v2263_v40 = vadd.f32 %v2247_v48, %v2174_v24  ;;  %v2305_v62 = vadd.f32 %v7806_v32, %v2260_v28  ;;  %v2306_v6 = vadd.f32 %v7810_v5, %v2261_v11  ;;  %v8022_v9 = vsel %vm1062_vm5, %v10573_v1, %v10572_v51  ;;  %v1520_v24 = vpop.permute.xlu0 %1519  ;;  %v10576_v32 = vld [vmem:[#allocation131_spill] sm:$0xff] }
 0x290   : > { %10574 = vst [vmem:[#allocation57_spill] sm:$0xff] %v8022_v9  ;;  %v8028_v34 = vsel %vm1062_vm5, %v10572_v51, %v10573_v1  ;;  %v1337_v36 = vmul.f32 %v10409_v8, %v1302_v37  ;;  %v1338_v2 = vmul.f32 %v10410_v41, %v1310_v23  ;;  %v2376_v5 = vmul.f32 %v10576_v32, %v8004_v12 }
 0x291   : > { %10575 = vst [vmem:[#allocation4_spill] sm:$0xff] %v8028_v34  ;;  %v2377_v14 = vmul.f32 %v10577_v18, %v8010_v54  ;;  %v1529_v28 = vsel %vm854_vm1, %v1504_v44, %v1520_v24  ;;  %v1537_v11 = vsel %vm854_vm1, %v1520_v24, %v1504_v44  ;;  %2712 = vrot.lane.b32.xlu1 %v7748_v57, %s4387_s11 }
 0x292   : > { %v1353_v51 = vadd.f32 %v1337_v36, %v1260_v55  ;;  %v1354_v1 = vadd.f32 %v1338_v2, %v1261_v52  ;;  %v1564_v26 = vmul.f32 %v10416_v7, %v1537_v11  ;;  %v1565_v48 = vmul.f32 %v10417_v15, %v1529_v28  ;;  %2909 = vrot.lane.b32.xlu0 %v7953_v35, %s4386_s13  ;;  %v851_v37 = vpop.permute.xlu1 %850  ;;  %v10578_v28 = vld [vmem:[#allocation176_spill] sm:$0xff] }
 0x293   : > { %v2392_v23 = vadd.f32 %v2376_v5, %v2305_v62  ;;  %v2393_v16 = vadd.f32 %v2377_v14, %v2306_v6  ;;  %v2307_v54 = vadd.f32 %v7814_v13, %v2262_v25  ;;  %v2308_v12 = vadd.f32 %v7829_v10, %v2263_v40  ;;  %v2515_v52 = vpop.permute.xlu0 %2514  ;;  %v10579_v10 = vld [vmem:[#allocation64_spill] sm:$0xff]  ;;  %v10580_v25 = vld [vmem:[#allocation65_spill] sm:$0xff] }
 0x294   : > { %v1580_v44 = vadd.f32 %v1564_v26, %v1353_v51  ;;  %v1581_v24 = vadd.f32 %v1565_v48, %v1354_v1  ;;  %v862_v57 = vsel %vm854_vm1, %v835_v0, %v851_v37  ;;  %v870_v55 = vsel %vm854_vm1, %v851_v37, %v835_v0  ;;  %v10582_v40 = vld [vmem:[#allocation152_spill] sm:$0xff] }
 0x295   : > { %v897_v36 = vmul.f32 %v10367_v21, %v870_v55  ;;  %v898_v2 = vmul.f32 %v10521_v53, %v862_v57  ;;  %v2528_v6 = vsel %vm854_vm1, %v10578_v28, %v2515_v52  ;;  %v2536_v13 = vsel %vm854_vm1, %v2515_v52, %v10578_v28  ;;  %2728 = vrot.lane.b32.xlu1 %v7781_v43, %s4387_s11  ;;  %v10581_v21 = vld [vmem:[#allocation151_spill] sm:$0xff]  ;;  %v10586_v55 = vld [vmem:[#allocation150_spill] sm:$0xff] }
 0x296   : > { %v2559_v62 = vmul.f32 %v10579_v10, %v2536_v13  ;;  %v2560_v0 = vmul.f32 %v10580_v25, %v2528_v6  ;;  %3647 = vrot.lane.b32.xlu0 %v7767_v61, %s4387_s11  ;;  %v8067_v53 = vadd.f32 %v10581_v21, %v1580_v44  ;;  %v8070_v5 = vadd.f32 %v10582_v40, %v1581_v24  ;;  %v1061_v51 = vpop.permute.xlu1 %1060  ;;  %v10585_v24 = vld [vmem:[#allocation145_spill] sm:$0xff]  ;;  %v10589_v21 = vld [vmem:[#allocation174_spill] sm:$0xff] }
 0x297   : > { %v8076_v14 = vsel %vm854_vm1, %v7732_v29, %v7931_v47  ;;  %v8082_v43 = vsel %vm854_vm1, %v7931_v47, %v7732_v29  ;;  %v913_v61 = vadd.f32 %v897_v36, %v5728_v31  ;;  %v914_v11 = vadd.f32 %v898_v2, %v10375_v27  ;;  %v8090_v44 = vpop.permute.xlu0 %1711  ;;  %v4283_v27 = vld [vmem:[%s9278_s5 + $0x40] sm:$0xff]   ;;  %v4285_v36 = vld [vmem:[%s9278_s5 + $0x48] sm:$0xff]  }
 0x298   : > { %10583 = vst [vmem:[#allocation194_spill] sm:$0xff] %v8076_v14  ;;  %10584 = vst [vmem:[#allocation195_spill] sm:$0xff] %v8082_v43  ;;  %v2575_v1 = vadd.f32 %v2559_v62, %v2392_v23  ;;  %v2576_v26 = vadd.f32 %v2560_v0, %v2393_v16  ;;  %v1070_v48 = vsel %vm1062_vm5, %v1045_v42, %v1061_v51  ;;  %4183 = vmatprep.subr.bf16.mxu1 %v4283_v27 }
 0x299   : > { %v1078_v37 = vsel %vm1062_vm5, %v1061_v51, %v1045_v42  ;;  %v1028_v57 = vadd.f32 %v10585_v24, %v913_v61  ;;  %v1029_v29 = vadd.f32 %v10586_v55, %v914_v11  ;;  %v1106_v47 = vmul.f32 %v10379_v59, %v1070_v48  ;;  %2343 = vrot.lane.b32.xlu1 %v7835_v63, %s4387_s11  ;;  %v4284_v42 = vld [vmem:[%s9278_s5] sm:$0xff]   ;;  %v10588_v63 = vld [vmem:[#allocation114_spill] sm:$0xff] }
 0x29a   : > { %v1107_v31 = vmul.f32 %v10380_v46, %v1078_v37  ;;  %v2378_v23 = vmul.f32 %v10576_v32, %v8022_v9  ;;  %v2379_v16 = vmul.f32 %v10577_v18, %v8028_v34  ;;  %3663 = vrot.lane.b32.xlu0 %v7797_v22, %s4387_s11  ;;  %v10587_v46 = vld [vmem:[#allocation111_spill] sm:$0xff]  ;;  %v8114_v52 = vadd.f32 %v10588_v63, %v2576_v26  ;;  %v2517_v62 = vpop.permute.xlu1 %2516  ;;  %v10600_v63 = vld [vmem:[#allocation38_spill] sm:$0xff] }
 0x29b   : > { %v8111_v59 = vadd.f32 %v10587_v46, %v2575_v1  ;;  %v1201_v2 = vmul.f32 %v10392_v30, %v8082_v43  ;;  %v1202_v28 = vmul.f32 %v10393_v3, %v8076_v14  ;;  %v1122_v6 = vadd.f32 %v1106_v47, %v1028_v57  ;;  %v8129_v11 = vpop.permute.xlu0 %1727  ;;  %4184 = vmatpush3.bf16.msra.mxu1 %v4284_v42  ;;  %v4286_v30 = vld [vmem:[%s9278_s5 + $0x8] sm:$0xff]   ;;  %v8140_v37 = vld [vmem:[#allocation2 + $0x80] sm:$0xff]  ;;  %v10593_v47 = vld [vmem:[#allocation18_spill] sm:$0xff] }
 0x29c   : > { %v1123_v13 = vadd.f32 %v1107_v31, %v1029_v29  ;;  %v2394_v22 = vadd.f32 %v2378_v23, %v2307_v54  ;;  %v2395_v0 = vadd.f32 %v2379_v16, %v2308_v12  ;;  %v2529_v40 = vsel %vm854_vm1, %v10589_v21, %v2517_v62  ;;  %4185 = vmatprep.subr.bf16.mxu1 %v4285_v36  ;;  %v8144_v57 = vld [vmem:[#allocation2 + $0x88] sm:$0xff]  ;;  %v10592_v29 = vld [vmem:[#allocation106_spill] sm:$0xff]  ;;  %v10597_v23 = vld [vmem:[#allocation35_spill] sm:$0xff] }
 0x29d   : > { %v2537_v61 = vsel %vm854_vm1, %v2517_v62, %v10589_v21  ;;  %v1217_v3 = vadd.f32 %v1201_v2, %v1122_v6  ;;  %v2562_v12 = vmul.f32 %v10580_v25, %v2529_v40  ;;  %2895 = vrot.lane.b32.xlu1 %v7975_v50, %s4386_s13  ;;  %10590 = vst [vmem:[#allocation83_spill] sm:$0xff] %v8140_v37  ;;  %10591 = vst [vmem:[#allocation84_spill] sm:$0xff] %v8144_v57  ;;  %v10649_v43 = vld [vmem:[#allocation58_spill] sm:$0xff] }
 0x29e   : > { %v1218_v51 = vadd.f32 %v1202_v28, %v1123_v13  ;;  %v2561_v54 = vmul.f32 %v10579_v10, %v2537_v61  ;;  %2506 = vrot.lane.b32.xlu0 %v7982_v17, %s4386_s13  ;;  %v1506_v48 = vpop.permute.xlu1 %1505  ;;  %v1246_v24 = vmul.f32 %v8140_v37, %v10387_v39  ;;  %v1247_v55 = vmul.f32 %v8144_v57, %v10396_v56  ;;  %v10602_v13 = vld [vmem:[#allocation118_spill] sm:$0xff] }
 0x29f   : > { %v2578_v26 = vadd.f32 %v2562_v12, %v2395_v0  ;;  %v8152_v31 = vsel %vm1062_vm5, %v10593_v47, %v10592_v29  ;;  %v8158_v27 = vsel %vm1062_vm5, %v10592_v29, %v10593_v47  ;;  %v8160_v42 = vpop.permute.xlu0 %2193  ;;  %v10596_v39 = vrot.slane %v10564_v45, 7  ;;  %4186 = vmatpush3.bf16.msra.mxu1 %v4286_v30  ;;  %v4287_v30 = vld [vmem:[%s9278_s5 + $0x50] sm:$0xff]  }
 0x2a0   : > { %v2577_v1 = vadd.f32 %v2561_v54, %v2394_v22  ;;  %10594 = vst [vmem:[#allocation19_spill] sm:$0xff] %v8152_v31  ;;  %10595 = vst [vmem:[#allocation184_spill] sm:$0xff] %v8158_v27  ;;  %v10598_v16 = vrot.slane %v10597_v23, 7  ;;  %v10599_v46 = vrot.slane %v10565_v38, 1  ;;  %v10601_v36 = vrot.slane %v10600_v63, 1  ;;  %v10603_v22 = vld [vmem:[#allocation119_spill] sm:$0xff]  ;;  %4187 = vmatprep.subr.bf16.mxu1 %v4287_v30 }
 0x2a1   : > { %v1262_v28 = vadd.f32 %v1246_v24, %v1217_v3  ;;  %v1263_v6 = vadd.f32 %v1247_v55, %v1218_v51  ;;  %v8182_v0 = vadd.f32 %v10603_v22, %v2578_v26  ;;  %v1339_v21 = vmul.f32 %v10409_v8, %v8152_v31  ;;  %v4288_v8 = vld [vmem:[%s9278_s5 + $0x10] sm:$0xff]   ;;  %v4289_v55 = vld [vmem:[%s9278_s5 + $0x58] sm:$0xff]   ;;  %v10613_v30 = vld [vmem:[#allocation68_spill] sm:$0xff] }
 0x2a2   : > { %v8167_v56 = vsel %vm769_vm3, %v10598_v16, %v10596_v39  ;;  %v8174_v2 = vsel %vm708_vm2, %v10601_v36, %v10599_v46  ;;  %v8179_v62 = vadd.f32 %v10602_v13, %v2577_v1  ;;  %v1340_v40 = vmul.f32 %v10410_v41, %v8158_v27  ;;  %v1522_v61 = vpop.permute.xlu1 %1521  ;;  %v10604_v24 = vld [vmem:[#allocation61_spill] sm:$0xff]  ;;  %v10605_v39 = vld [vmem:[#allocation171_spill] sm:$0xff]  ;;  %v4290_v16 = vld [vmem:[%s9278_s5 + $0x18] sm:$0xff]  }
 0x2a3   : > { %2911 = vrot.lane.b32.xlu1 %v8167_v56, %s4386_s13  ;;  %2522 = vrot.lane.b32.xlu0 %v8174_v2, %s4386_s13  ;;  %v1530_v3 = vsel %vm854_vm1, %v1506_v48, %v1522_v61  ;;  %v1538_v51 = vsel %vm854_vm1, %v1522_v61, %v1506_v48  ;;  %v8197_v54 = vpop.permute.xlu0 %2207  ;;  %v1355_v12 = vadd.f32 %v1339_v21, %v1262_v28  ;;  %v2474_v23 = vrot.slane %v10605_v39, 1  ;;  %v10607_v63 = vld [vmem:[#allocation182_spill] sm:$0xff]  ;;  %v10609_v13 = vld [vmem:[#allocation5_spill] sm:$0xff]  ;;  %v10630_v27 = vld [vmem:[#allocation48_spill] sm:$0xff] }
 0x2a4   : > { %v1356_v1 = vadd.f32 %v1340_v40, %v1263_v6  ;;  %v1566_v41 = vmul.f32 %v10416_v7, %v1538_v51  ;;  %v1567_v26 = vmul.f32 %v10417_v15, %v1530_v3  ;;  %v4155_v7 = vld [vmem:[%s9276_s3 + $0x24] ss:$8 sm:$0x3]  ;;  %4188 = vmatpush3.bf16.msra.mxu1 %v4288_v8  ;;  %v10608_v28 = vld [vmem:[#allocation146_spill] sm:$0xff]  ;;  %v2476_v3 = vrot.slane %v10613_v30, 1 }
 0x2a5   : > { %v9702_v6 = vrot.slane %v10608_v28, 1  ;;  %4189 = vmatprep.subr.bf16.mxu1 %v4289_v55  ;;  %v8232_v22 = vrot.slane %v4155_v7, %v10609_v13  ;;  %v10611_v21 = vld [vmem:[#allocation6_spill] sm:$0xff]  ;;  %v10614_v8 = vrot.slane %v10545_v49, 1  ;;  %v10615_v49 = vld [vmem:[#allocation24_spill] sm:$0xff]  ;;  %v10617_v55 = vld [vmem:[#allocation157_spill] sm:$0xff] }
 0x2a6   : > { %v1582_v48 = vadd.f32 %v1566_v41, %v1355_v12  ;;  %v1583_v29 = vadd.f32 %v1567_v26, %v1356_v1  ;;  %v8211_v47 = vpop.permute.xlu1 %1713  ;;  %v8235_v40 = vrot.slane %v4155_v7, %v10611_v21  ;;  %v10616_v26 = vrot.slane %v10615_v49, 1  ;;  %v10619_v30 = vld [vmem:[#allocation112_spill] sm:$0xff] }
 0x2a7   : > { %3649 = vrot.lane.b32.xlu1 %v10604_v24, %s4387_s11  ;;  %3101 = vrot.lane.b32.xlu0 %v7946_v58, %s4387_s11  ;;  %v3094_v15 = vpop.permute.xlu0 %3093  ;;  %v10606_v58 = vld [vmem:[#allocation23_spill] sm:$0xff]  ;;  %10610 = vst [vmem:[#allocation60_spill] sm:$0xff] %v8232_v22  ;;  %v8246_v12 = vsel %vm708_vm2, %v10614_v8, %v2474_v23  ;;  %v10618_v23 = vrot.slane %v10565_v38, 1 }
 0x2a8   : > { %v8223_v46 = vadd.f32 %v10606_v58, %v1582_v48  ;;  %v8226_v36 = vadd.f32 %v10607_v63, %v1583_v29  ;;  %10612 = vst [vmem:[#allocation143_spill] sm:$0xff] %v8235_v40  ;;  %4190 = vmatpush3.bf16.msra.mxu1 %v4290_v16  ;;  %v8262_v24 = vsel %vm708_vm2, %v10616_v26, %v9702_v6  ;;  %v3401_v48 = vrot.slane %v10617_v55, 1  ;;  %v4293_v29 = vld [vmem:[%s9278_s5 + $0x68] sm:$0xff]   ;;  %v10624_v26 = vld [vmem:[#allocation190_spill] sm:$0xff] }
 0x2a9   : > { %v8277_v16 = vsel %vm708_vm2, %v10618_v23, %v2476_v3  ;;  %v1737_v58 = vsel %vm1062_vm5, %v8090_v44, %v8129_v11  ;;  %v1745_v63 = vsel %vm1062_vm5, %v8129_v11, %v8090_v44  ;;  %v4294_v3 = vld [vmem:[%s9278_s5 + $0x28] sm:$0xff]   ;;  %v10623_v44 = vld [vmem:[#allocation49_spill] sm:$0xff] }
 0x2aa   : > { %v8240_v61 = vpop.permute.xlu1 %1729  ;;  %v1772_v11 = vmul.f32 %v10623_v44, %v1737_v58  ;;  %v4296_v23 = vld [vmem:[%s9278_s5 + $0x30] sm:$0xff]   ;;  %v10626_v58 = vld [vmem:[#allocation147_spill] sm:$0xff]  ;;  %v10629_v6 = vld [vmem:[#allocation56_spill] sm:$0xff] }
 0x2ab   : > { %3665 = vrot.lane.b32.xlu1 %v7825_v60, %s4387_s11  ;;  %3117 = vrot.lane.b32.xlu0 %v7953_v35, %s4387_s11  ;;  %v4291_v60 = vld [vmem:[%s9278_s5 + $0x60] sm:$0xff]   ;;  %v3110_v51 = vpop.permute.xlu0 %3109 }
 0x2ac   : > { %v4292_v35 = vld [vmem:[%s9278_s5 + $0x20] sm:$0xff]   ;;  %v3125_v1 = vsel %vm1062_vm5, %v3094_v15, %v3110_v51  ;;  %v3133_v41 = vsel %vm1062_vm5, %v3110_v51, %v3094_v15  ;;  %4191 = vmatprep.subr.bf16.mxu1 %v4291_v60  ;;  %v10620_v60 = vld [vmem:[#allocation101_spill] sm:$0xff] }
 0x2ad   : > { %v3154_v7 = vmul.f32 %v8232_v22, %v3125_v1  ;;  %v3155_v15 = vmul.f32 %v8235_v40, %v3133_v41  ;;  %4192 = vmatpush3.bf16.msra.mxu1 %v4292_v35  ;;  %v10621_v1 = vld [vmem:[#allocation142_spill] sm:$0xff]  ;;  %v1773_v35 = vmul.f32 %v10624_v26, %v1745_v63  ;;  %v10627_v63 = vld [vmem:[#allocation36_spill] sm:$0xff] }
 0x2ae   : > { %v8272_v39 = vpop.permute.xlu1 %2195  ;;  %v10622_v41 = vrot.slane %v10621_v1, 1  ;;  %4193 = vmatprep.subr.bf16.mxu1 %v4293_v29  ;;  %v10625_v29 = vld [vmem:[#allocation132_spill] sm:$0xff]  ;;  %v1788_v1 = vadd.f32 %v1772_v11, %v8067_v53 }
 0x2af   : > { %2508 = vrot.lane.b32.xlu1 %v8246_v12, %s4386_s13  ;;  %3443 = vrot.lane.b32.xlu0 %v8262_v24, %s4386_s13  ;;  %v8288_v51 = vadd.f32 %v3154_v7, %v10619_v30  ;;  %v8291_v8 = vadd.f32 %v3155_v15, %v10620_v60  ;;  %v1895_v38 = vpop.permute.xlu0 %1894  ;;  %v4295_v7 = vld [vmem:[%s9278_s5 + $0x70] sm:$0xff]   ;;  %v4297_v60 = vld [vmem:[%s9278_s5 + $0x78] sm:$0xff]   ;;  %v1789_v30 = vadd.f32 %v1773_v35, %v8070_v5  ;;  %v10632_v53 = vrot.slane %v10625_v29, 1 }
 0x2b0   : > { %v8301_v49 = vsel %vm708_vm2, %v10622_v41, %v3401_v48  ;;  %v10628_v41 = vld [vmem:[#allocation79_spill] sm:$0xff]  ;;  %v10633_v5 = vrot.slane %v10608_v28, 1 }
 0x2b1   : > { %4194 = vmatpush3.bf16.msra.mxu1 %v4294_v3  ;;  %v2126_v34 = vsel %vm1062_vm5, %v10629_v6, %v10628_v41  ;;  %v2134_v3 = vsel %vm1062_vm5, %v10628_v41, %v10629_v6  ;;  %v10631_v6 = vld [vmem:[#allocation191_spill] sm:$0xff] }
 0x2b2   : > { %v8307_v55 = vpop.permute.xlu1 %2209  ;;  %4195 = vmatprep.subr.bf16.mxu1 %v4295_v7  ;;  %v8351_v11 = vsel %vm708_vm2, %v10633_v5, %v10632_v53  ;;  %v10635_v7 = vld [vmem:[#allocation47_spill] sm:$0xff]  ;;  %v10643_v53 = vld [vmem:[#allocation169_spill] sm:$0xff] }
 0x2b3   : > { %2524 = vrot.lane.b32.xlu1 %v8277_v16, %s4386_s13  ;;  %3459 = vrot.lane.b32.xlu0 %v8301_v49, %s4386_s13  ;;  %v1911_v15 = vpop.permute.xlu0 %1910 }
 0x2b4   : > { %v1920_v9 = vsel %vm854_vm1, %v1895_v38, %v1911_v15 }
 0x2b5   : > { %v1956_v41 = vmul.f32 %v10631_v6, %v1920_v9  ;;  %4196 = vmatpush3.bf16.msra.mxu1 %v4296_v23  ;;  %v10634_v9 = vrot.slane %v10627_v63, 1  ;;  %v2159_v23 = vmul.f32 %v10635_v7, %v2126_v34  ;;  %v8374_v34 = vsel %vm854_vm1, %v8160_v42, %v8197_v54 }
 0x2b6   : > { %v3096_v57 = vpop.permute.xlu1 %3095  ;;  %4197 = vmatprep.subr.bf16.mxu1 %v4297_v60  ;;  %10640 = vst [vmem:[#allocation86_spill] sm:$0xff] %v8374_v34  ;;  %v1738_v60 = vsel %vm1062_vm5, %v8211_v47, %v8240_v61 }
 0x2b7   : > { %3103 = vrot.lane.b32.xlu1 %v7975_v50, %s4387_s11  ;;  %v1928_v50 = vsel %vm854_vm1, %v1911_v15, %v1895_v38  ;;  %2714 = vrot.lane.b32.xlu0 %v7982_v17, %s4387_s11  ;;  %v2707_v37 = vpop.permute.xlu0 %2706  ;;  %v4298_v17 = vld [vmem:[%s9278_s5 + $0x38] sm:$0xff]   ;;  %v1972_v15 = vadd.f32 %v1956_v41, %v1789_v30  ;;  %v8356_v35 = vsel %vm708_vm2, %v3401_v48, %v10634_v9  ;;  %v10638_v30 = vrot.slane %v10544_v20, 7  ;;  %v10642_v20 = vld [vmem:[#allocation128_spill] sm:$0xff]  ;;  %v10647_v41 = vld [vmem:[#allocation129_spill] sm:$0xff] }
 0x2b8   : > { %v1955_v31 = vmul.f32 %v10630_v27, %v1928_v50  ;;  %v10636_v50 = vld [vmem:[#allocation188_spill] sm:$0xff]  ;;  %v1746_v9 = vsel %vm1062_vm5, %v8240_v61, %v8211_v47 }
 0x2b9   : > { %v8386_v5 = vadd.f32 %v10643_v53, %v1972_v15  ;;  %4198 = vmatpush3.bf16.msra.mxu1 %v4298_v17  ;;  %v10644_v61 = vld [vmem:[#allocation20_spill] sm:$0xff] }
 0x2ba   : > { %v1971_v38 = vadd.f32 %v1955_v31, %v1788_v1  ;;  %v2160_v31 = vmul.f32 %v10636_v50, %v2134_v3  ;;  %v10639_v1 = vld [vmem:[#allocation160_spill] sm:$0xff]  ;;  %v3112_v48 = vpop.permute.xlu1 %3111 }
 0x2bb   : > { %3119 = vrot.lane.b32.xlu1 %v8167_v56, %s4387_s11  ;;  %2730 = vrot.lane.b32.xlu0 %v8174_v2, %s4387_s11  ;;  %v10637_v56 = vrot.slane %v10626_v58, 7  ;;  %v8380_v2 = vsel %vm854_vm1, %v8197_v54, %v8160_v42  ;;  %v3126_v42 = vsel %vm1062_vm5, %v3096_v57, %v3112_v48  ;;  %v3134_v54 = vsel %vm1062_vm5, %v3112_v48, %v3096_v57  ;;  %v10645_v48 = vld [vmem:[#allocation159_spill] sm:$0xff] }
 0x2bc   : > { %10641 = vst [vmem:[#allocation87_spill] sm:$0xff] %v8380_v2  ;;  %v8383_v3 = vadd.f32 %v10642_v20, %v1971_v38  ;;  %v2723_v38 = vpop.permute.xlu0 %2722  ;;  %v3156_v15 = vmul.f32 %v8232_v22, %v3126_v42  ;;  %v2248_v47 = vmul.f32 %v10546_v19, %v8380_v2  ;;  %v2249_v57 = vmul.f32 %v10547_v4, %v8374_v34  ;;  %v10646_v42 = vld [vmem:[#allocation80_spill] sm:$0xff] }
 0x2bd   : > { %v8367_v28 = vsel %vm769_vm3, %v10638_v30, %v10637_v56  ;;  %v3157_v56 = vmul.f32 %v8235_v40, %v3134_v54  ;;  %v2736_v30 = vsel %vm1062_vm5, %v2707_v37, %v2723_v38  ;;  %v2744_v20 = vsel %vm1062_vm5, %v2723_v38, %v2707_v37  ;;  %v10648_v38 = vld [vmem:[#allocation161_spill] sm:$0xff] }
 0x2be   : > { %v2767_v17 = vmul.f32 %v10644_v61, %v2736_v30  ;;  %v2768_v53 = vmul.f32 %v10645_v48, %v2744_v20  ;;  %v2175_v54 = vadd.f32 %v2159_v23, %v10646_v42  ;;  %v2176_v37 = vadd.f32 %v2160_v31, %v10647_v41  ;;  %v1897_v2 = vpop.permute.xlu1 %1896 }
 0x2bf   : > { %3445 = vrot.lane.b32.xlu1 %v8351_v11, %s4386_s13  ;;  %2897 = vrot.lane.b32.xlu0 %v8367_v28, %s4386_s13  ;;  %v8419_v14 = vadd.f32 %v3156_v15, %v10648_v38  ;;  %v8422_v40 = vadd.f32 %v3157_v56, %v10649_v43  ;;  %v1774_v34 = vmul.f32 %v10623_v44, %v1738_v60  ;;  %v10650_v31 = vrot.slane %v10639_v1, 7  ;;  %v8447_v15 = vld [vmem:[#allocation2 + $0x68] sm:$0xff]  ;;  %v10653_v56 = vld [vmem:[#allocation183_spill] sm:$0xff] }
 0x2c0   : > { %v1775_v30 = vmul.f32 %v10624_v26, %v1746_v9  ;;  %v8427_v20 = vadd.f32 %v2767_v17, %v8111_v59  ;;  %v8430_v22 = vadd.f32 %v2768_v53, %v8114_v52  ;;  %v2326_v23 = vpop.permute.xlu0 %2325  ;;  %v10651_v43 = vrot.slane %v10564_v45, 7  ;;  %v8443_v26 = vld [vmem:[#allocation2 + $0x60] sm:$0xff] }
 0x2c1   : > { %v2264_v44 = vadd.f32 %v2248_v47, %v2175_v54  ;;  %v2265_v60 = vadd.f32 %v2249_v57, %v2176_v37  ;;  %v10652_v52 = vld [vmem:[#allocation103_spill] sm:$0xff]  ;;  %v2294_v17 = vmul.f32 %v8447_v15, %v10653_v56  ;;  %v1790_v45 = vadd.f32 %v1774_v34, %v8223_v46 }
 0x2c2   : > { %v8439_v41 = vsel %vm769_vm3, %v10651_v43, %v10650_v31  ;;  %v1913_v59 = vpop.permute.xlu1 %1912  ;;  %v2293_v9 = vmul.f32 %v8443_v26, %v10652_v52  ;;  %v1791_v53 = vadd.f32 %v1775_v30, %v8226_v36  ;;  %v10656_v43 = vld [vmem:[#allocation67_spill] sm:$0xff] }
 0x2c3   : > { %3461 = vrot.lane.b32.xlu1 %v8356_v35, %s4386_s13  ;;  %2913 = vrot.lane.b32.xlu0 %v8439_v41, %s4386_s13  ;;  %v1921_v47 = vsel %vm854_vm1, %v1897_v2, %v1913_v59  ;;  %v1929_v57 = vsel %vm854_vm1, %v1913_v59, %v1897_v2  ;;  %v2310_v34 = vadd.f32 %v2294_v17, %v2265_v60  ;;  %v10657_v59 = vld [vmem:[#allocation179_spill] sm:$0xff] }
 0x2c4   : > { %v2340_v42 = vpop.permute.xlu0 %2339  ;;  %v1957_v54 = vmul.f32 %v10630_v27, %v1929_v57  ;;  %v1958_v37 = vmul.f32 %v10631_v6, %v1921_v47  ;;  %v2309_v36 = vadd.f32 %v2293_v9, %v2264_v44  ;;  %v10658_v47 = vld [vmem:[#allocation46_spill] sm:$0xff]  ;;  %v8492_v17 = vsel %vm854_vm1, %v8272_v39, %v8307_v55 }
 0x2c5   : > { %v8461_v38 = vsel %vm1062_vm5, %v2326_v23, %v2340_v42  ;;  %v8465_v46 = vsel %vm1062_vm5, %v2340_v42, %v2326_v23  ;;  %v2865_v23 = vrot.slane %v10656_v43, 7  ;;  %v2135_v44 = vsel %vm1062_vm5, %v10657_v59, %v10658_v47  ;;  %10659 = vst [vmem:[#allocation63_spill] sm:$0xff] %v8492_v17  ;;  %v10662_v42 = vld [vmem:[#allocation105_spill] sm:$0xff] }
 0x2c6   : > { %10654 = vst [vmem:[#allocation28_spill] sm:$0xff] %v8461_v38  ;;  %10655 = vst [vmem:[#allocation149_spill] sm:$0xff] %v8465_v46  ;;  %v2380_v2 = vmul.f32 %v10576_v32, %v8461_v38  ;;  %v2381_v27 = vmul.f32 %v10577_v18, %v8465_v46  ;;  %v1973_v6 = vadd.f32 %v1957_v54, %v1790_v45  ;;  %v2709_v31 = vpop.permute.xlu1 %2708  ;;  %v10670_v46 = vld [vmem:[#allocation192_spill] sm:$0xff] }
 0x2c7   : > { %2716 = vrot.lane.b32.xlu1 %v8246_v12, %s4387_s11  ;;  %3651 = vrot.lane.b32.xlu0 %v8262_v24, %s4387_s11  ;;  %v1974_v30 = vadd.f32 %v1958_v37, %v1791_v53  ;;  %v2127_v12 = vsel %vm1062_vm5, %v10658_v47, %v10657_v59  ;;  %v8498_v45 = vsel %vm854_vm1, %v8307_v55, %v8272_v39  ;;  %v10661_v53 = vld [vmem:[#allocation73_spill] sm:$0xff]  ;;  %v10663_v39 = vrot.slane %v10626_v58, 7 }
 0x2c8   : > { %v8484_v60 = vadd.f32 %v2380_v2, %v2309_v36  ;;  %v8486_v9 = vadd.f32 %v2381_v27, %v2310_v34  ;;  %v2890_v24 = vpop.permute.xlu0 %2889  ;;  %10660 = vst [vmem:[#allocation33_spill] sm:$0xff] %v8498_v45  ;;  %v8503_v57 = vadd.f32 %v10661_v53, %v1973_v6  ;;  %v2161_v37 = vmul.f32 %v10635_v7, %v2127_v12  ;;  %v10665_v12 = vld [vmem:[#allocation78_spill] sm:$0xff] }
 0x2c9   : > { %v8506_v54 = vadd.f32 %v10662_v42, %v1974_v30  ;;  %v2162_v36 = vmul.f32 %v10636_v50, %v2135_v44  ;;  %v8515_v55 = vsel %vm769_vm3, %v10663_v39, %v2865_v23  ;;  %v2250_v27 = vmul.f32 %v10546_v19, %v8498_v45  ;;  %v10666_v53 = vld [vmem:[#allocation122_spill] sm:$0xff] }
 0x2ca   : > { %v2725_v34 = vpop.permute.xlu1 %2724  ;;  %v2251_v6 = vmul.f32 %v10547_v4, %v8492_v17  ;;  %v10668_v39 = vld [vmem:[#allocation34_spill] sm:$0xff] }
 0x2cb   : > { %2732 = vrot.lane.b32.xlu1 %v8277_v16, %s4387_s11  ;;  %3667 = vrot.lane.b32.xlu0 %v8301_v49, %s4387_s11  ;;  %v10664_v16 = vld [vmem:[#allocation77_spill] sm:$0xff]  ;;  %v2737_v49 = vsel %vm1062_vm5, %v2709_v31, %v2725_v34  ;;  %v2745_v30 = vsel %vm1062_vm5, %v2725_v34, %v2709_v31  ;;  %v10667_v31 = vld [vmem:[#allocation110_spill] sm:$0xff] }
 0x2cc   : > { %v2867_v2 = vrot.slane %v10664_v16, 7  ;;  %v2906_v43 = vpop.permute.xlu0 %2905  ;;  %v2769_v58 = vmul.f32 %v10644_v61, %v2737_v49  ;;  %v2770_v23 = vmul.f32 %v10645_v48, %v2745_v30  ;;  %v2177_v34 = vadd.f32 %v2161_v37, %v10667_v31 }
 0x2cd   : > { %v2919_v59 = vsel %vm854_vm1, %v2890_v24, %v2906_v43  ;;  %v2927_v47 = vsel %vm854_vm1, %v2906_v43, %v2890_v24  ;;  %v2178_v16 = vadd.f32 %v2162_v36, %v10668_v39 }
 0x2ce   : > { %v2950_v44 = vmul.f32 %v10665_v12, %v2927_v47  ;;  %v2951_v42 = vmul.f32 %v10666_v53, %v2919_v59  ;;  %v2785_v49 = vadd.f32 %v2769_v58, %v8179_v62  ;;  %v2786_v30 = vadd.f32 %v2770_v23, %v8182_v0  ;;  %v2328_v17 = vpop.permute.xlu1 %2327  ;;  %v10671_v62 = vld [vmem:[#allocation153_spill] sm:$0xff] }
 0x2cf   : > { %2899 = vrot.lane.b32.xlu1 %v8515_v55, %s4386_s13  ;;  %3105 = vrot.lane.b32.xlu0 %v8367_v28, %s4387_s11  ;;  %v10669_v47 = vrot.slane %v10639_v1, 7  ;;  %v3407_v28 = vrot.slane %v10670_v46, 1  ;;  %v2266_v38 = vadd.f32 %v2250_v27, %v2177_v34  ;;  %v2267_v37 = vadd.f32 %v2251_v6, %v2178_v16 }
 0x2d0   : > { %v2966_v24 = vadd.f32 %v2950_v44, %v8427_v20  ;;  %v2967_v43 = vadd.f32 %v2951_v42, %v8430_v22  ;;  %v2103_v45 = vpop.permute.xlu0 %2102  ;;  %v10672_v20 = vld [vmem:[#allocation154_spill] sm:$0xff]  ;;  %v10673_v22 = vld [vmem:[#allocation175_spill] sm:$0xff]  ;;  %v10677_v23 = vrot.slane %v10625_v29, 1  ;;  %v10678_v42 = vld [vmem:[#allocation193_spill] sm:$0xff] }
 0x2d1   : > { %v2868_v59 = vsel %vm769_vm3, %v10669_v47, %v2867_v2  ;;  %v2295_v1 = vmul.f32 %v10673_v22, %v10652_v52  ;;  %v10674_v2 = vld [vmem:[#allocation148_spill] sm:$0xff]  ;;  %v3409_v31 = vrot.slane %v10678_v42, 1 }
 0x2d2   : > { %v8552_v0 = vadd.f32 %v10671_v62, %v2966_v24  ;;  %v8555_v36 = vadd.f32 %v10672_v20, %v2967_v43  ;;  %v2296_v58 = vmul.f32 %v10674_v2, %v10653_v56  ;;  %v2342_v46 = vpop.permute.xlu1 %2341  ;;  %v8572_v44 = vsel %vm708_vm2, %v10677_v23, %v3407_v28  ;;  %v4362_v2 = vld [vmem:[#allocation2 + $0x10] sm:$0xff] }
 0x2d3   : > { %2915 = vrot.lane.b32.xlu1 %v2868_v59, %s4386_s13  ;;  %3121 = vrot.lane.b32.xlu0 %v8439_v41, %s4387_s11  ;;  %v8563_v27 = vsel %vm1062_vm5, %v2328_v17, %v2342_v46  ;;  %v8567_v41 = vsel %vm1062_vm5, %v2342_v46, %v2328_v17  ;;  %v2311_v34 = vadd.f32 %v2295_v1, %v2266_v38 }
 0x2d4   : > { %10675 = vst [vmem:[#allocation25_spill] sm:$0xff] %v8563_v27  ;;  %10676 = vst [vmem:[#allocation16_spill] sm:$0xff] %v8567_v41  ;;  %v2119_v6 = vpop.permute.xlu0 %2118  ;;  %v2312_v39 = vadd.f32 %v2296_v58, %v2267_v37  ;;  %v2382_v16 = vmul.f32 %v10576_v32, %v8563_v27  ;;  %v2383_v24 = vmul.f32 %v10577_v18, %v8567_v41  ;;  %v3352_v41 = vld [vmem:[#allocation2 + $0xb8] sm:$0x1] }
 0x2d5   : > { %v2128_v17 = vsel %vm1062_vm5, %v2103_v45, %v2119_v6  ;;  %v2136_v29 = vsel %vm1062_vm5, %v2119_v6, %v2103_v45  ;;  %v10681_v45 = vrot.slane %v10627_v63, 1  ;;  %v8608_v58 = vpack.i.bf16 %v4362_v2, %v4362_v2  ;;  %v10683_v2 = vld [vmem:[#allocation124_spill] sm:$0xff] }
 0x2d6   : > { %v8587_v38 = vadd.f32 %v2382_v16, %v2311_v34  ;;  %v8589_v43 = vadd.f32 %v2383_v24, %v2312_v39  ;;  %v2163_v47 = vmul.f32 %v10635_v7, %v2128_v17  ;;  %v2164_v37 = vmul.f32 %v10636_v50, %v2136_v29  ;;  %v2892_v62 = vpop.permute.xlu1 %2891 }
 0x2d7   : > { %3653 = vrot.lane.b32.xlu1 %v8351_v11, %s4387_s11  ;;  %3447 = vrot.lane.b32.xlu0 %v8572_v44, %s4386_s13  ;;  %v8604_v1 = vsel %vm708_vm2, %v10681_v45, %v3409_v31 }
 0x2d8   : > { %v2503_v20 = vpop.permute.xlu0 %2502  ;;  %v8594_v11 = vadd.f32 %v2163_v47, %v8383_v3  ;;  %v8597_v22 = vadd.f32 %v2164_v37, %v8386_v5  ;;  %v4156_v37 = vld [vmem:[%s9276_s3 + $0x25] ss:$8 sm:$0x3] }
 0x2da   : > { %10679 = vst [vmem:[#allocation162_spill] sm:$0xff] %v8594_v11  ;;  %10680 = vst [vmem:[#allocation42_spill] sm:$0xff] %v8597_v22  ;;  %v2908_v46 = vpop.permute.xlu1 %2907 }
 0x2db   : > { %3669 = vrot.lane.b32.xlu1 %v8356_v35, %s4387_s11  ;;  %3463 = vrot.lane.b32.xlu0 %v8604_v1, %s4386_s13  ;;  %v2920_v3 = vsel %vm854_vm1, %v2892_v62, %v2908_v46  ;;  %v2928_v5 = vsel %vm854_vm1, %v2908_v46, %v2892_v62  ;;  %v10682_v35 = vld [vmem:[#allocation11_spill] sm:$0xff]  ;;  %v3413_v46 = vrot.slane %v10683_v2, 1 }
 0x2dc   : > { %v2519_v6 = vpop.permute.xlu0 %2518  ;;  %v3411_v23 = vrot.slane %v10682_v35, 1  ;;  %v2952_v63 = vmul.f32 %v10665_v12, %v2928_v5  ;;  %v2953_v42 = vmul.f32 %v10666_v53, %v2920_v3  ;;  %v10684_v3 = vld [vmem:[#allocation155_spill] sm:$0xff] }
 0x2dd   : > { %v2530_v34 = vsel %vm854_vm1, %v2503_v20, %v2519_v6  ;;  %v2538_v39 = vsel %vm854_vm1, %v2519_v6, %v2503_v20  ;;  %v10686_v6 = vld [vmem:[#allocation26_spill] sm:$0xff] }
 0x2de   : > { %v2563_v16 = vmul.f32 %v10579_v10, %v2538_v39  ;;  %v2564_v24 = vmul.f32 %v10580_v25, %v2530_v34  ;;  %v2968_v17 = vadd.f32 %v2952_v63, %v2785_v49  ;;  %v2969_v29 = vadd.f32 %v2953_v42, %v2786_v30  ;;  %v2105_v47 = vpop.permute.xlu1 %2104  ;;  %v10685_v30 = vld [vmem:[#allocation156_spill] sm:$0xff] }
 0x2df   : > { %3107 = vrot.lane.b32.xlu1 %v8515_v55, %s4387_s11  ;;  %4246 = vrot.lane.b32.xlu0 %v8608_v58, %s4386_s13  ;;  %v3412_v55 = vsel %vm708_vm2, %v3407_v28, %v3411_v23  ;;  %v8654_v28 = vrot.slane %v4156_v37, %v10611_v21  ;;  %v4157_v42 = vld [vmem:[%s9276_s3 + $0x26] ss:$8 sm:$0x3] }
 0x2e0   : > { %v2579_v62 = vadd.f32 %v2563_v16, %v8484_v60  ;;  %v2580_v20 = vadd.f32 %v2564_v24, %v8486_v9  ;;  %v8632_v45 = vpop.permute.xlu0 %2197  ;;  %v8638_v49 = vadd.f32 %v10684_v3, %v2968_v17  ;;  %v8641_v5 = vadd.f32 %v10685_v30, %v2969_v29  ;;  %v10687_v9 = vld [vmem:[#allocation107_spill] sm:$0xff]  ;;  %v10688_v24 = vld [vmem:[#allocation66_spill] sm:$0xff]  ;;  %v10690_v30 = vld [vmem:[#allocation116_spill] sm:$0xff] }
 0x2e1   : > { %v8664_v17 = vrot.slane %v10688_v24, 1  ;;  %v8675_v2 = vrot.slane %v4157_v42, %v10611_v21 }
 0x2e2   : > { %v8645_v60 = vadd.f32 %v10686_v6, %v2579_v62  ;;  %v8648_v35 = vadd.f32 %v10687_v9, %v2580_v20  ;;  %v2121_v63 = vpop.permute.xlu1 %2120  ;;  %v3414_v62 = vsel %vm708_vm2, %v3409_v31, %v3413_v46  ;;  %v8672_v20 = vrot.slane %v4157_v42, %v10609_v13  ;;  %v3351_v42 = vld [vmem:[#allocation2 + $0xb0] sm:$0x1] }
 0x2e3   : > { %3123 = vrot.lane.b32.xlu1 %v2868_v59, %s4387_s11  ;;  %3657 = vrot.lane.b32.xlu0 %v3412_v55, %s4387_s11  ;;  %v8651_v59 = vrot.slane %v4156_v37, %v10609_v13  ;;  %v2129_v34 = vsel %vm1062_vm5, %v2105_v47, %v2121_v63  ;;  %v2137_v39 = vsel %vm1062_vm5, %v2121_v63, %v2105_v47  ;;  %v10689_v47 = vld [vmem:[#allocation108_spill] sm:$0xff] }
 0x2e4   : > { %v3098_v16 = vpop.permute.xlu0 %3097  ;;  %v2165_v29 = vmul.f32 %v10635_v7, %v2129_v34  ;;  %v2166_v37 = vmul.f32 %v10636_v50, %v2137_v39  ;;  %v3208_v7 = vmul.f32 %v8654_v28, %v10690_v30  ;;  %v4158_v50 = vld [vmem:[%s9276_s3 + $0x27] ss:$8 sm:$0x3]  ;;  %v3416_v63 = vsel %vm708_vm2, %v3411_v23, %v8664_v17  ;;  %v4363_v30 = vld [vmem:[#allocation2 + $0x30] sm:$0xff] }
 0x2e5   : > { %v3207_v3 = vmul.f32 %v8651_v59, %v10689_v47  ;;  %v10691_v23 = vld [vmem:[#allocation60_spill] sm:$0xff] }
 0x2e6   : > { %v2181_v31 = vadd.f32 %v2165_v29, %v8503_v57  ;;  %v2505_v6 = vpop.permute.xlu1 %2504  ;;  %v3224_v39 = vadd.f32 %v3208_v7, %v8291_v8  ;;  %v8696_v57 = vrot.slane %v4158_v50, %v10609_v13 }
 0x2e7   : > { %3449 = vrot.lane.b32.xlu1 %v3412_v55, %s4386_s13  ;;  %3673 = vrot.lane.b32.xlu0 %v3414_v62, %s4387_s11  ;;  %v2182_v55 = vadd.f32 %v2166_v37, %v8506_v54  ;;  %v3223_v34 = vadd.f32 %v3207_v3, %v8288_v51  ;;  %v8699_v54 = vrot.slane %v4158_v50, %v10611_v21  ;;  %v10692_v37 = vld [vmem:[#allocation143_spill] sm:$0xff]  ;;  %v4159_v50 = vld [vmem:[%s9276_s3 + $0x30] ss:$8 sm:$0x3] }
 0x2e8   : > { %v3114_v9 = vpop.permute.xlu0 %3113  ;;  %v3418_v3 = vsel %vm708_vm2, %v3413_v46, %v8664_v17 }
 0x2e9   : > { %v3127_v24 = vsel %vm1062_vm5, %v3098_v16, %v3114_v9  ;;  %v3135_v47 = vsel %vm1062_vm5, %v3114_v9, %v3098_v16  ;;  %v3252_v16 = vmul.f32 %v4363_v30, %v8672_v20  ;;  %v10693_v9 = vld [vmem:[#allocation113_spill] sm:$0xff] }
 0x2ea   : > { %v3158_v29 = vmul.f32 %v10691_v23, %v3127_v24  ;;  %v3159_v51 = vmul.f32 %v10692_v37, %v3135_v47  ;;  %v2521_v8 = vpop.permute.xlu1 %2520  ;;  %v3369_v24 = vmul.f32 %v3351_v42, %v10693_v9 }
 0x2eb   : > { %3465 = vrot.lane.b32.xlu1 %v3414_v62, %s4386_s13  ;;  %3451 = vrot.lane.b32.xlu0 %v3416_v63, %s4386_s13  ;;  %v4364_v62 = vld [vmem:[#allocation2 + $0x38] sm:$0xff]  ;;  %v2531_v46 = vsel %vm854_vm1, %v2505_v6, %v2521_v8  ;;  %v2539_v30 = vsel %vm854_vm1, %v2521_v8, %v2505_v6  ;;  %v3268_v42 = vadd.f32 %v3252_v16, %v3223_v34 }
 0x2ec   : > { %v3253_v7 = vmul.f32 %v4364_v62, %v8675_v2  ;;  %v8713_v47 = vadd.f32 %v3158_v29, %v8552_v0  ;;  %v8716_v27 = vadd.f32 %v3159_v51, %v8555_v36  ;;  %v3440_v62 = vpop.permute.xlu0 %3439  ;;  %v2565_v22 = vmul.f32 %v10579_v10, %v2539_v30  ;;  %v10696_v29 = vld [vmem:[#allocation39_spill] sm:$0xff]  ;;  %v10697_v51 = vld [vmem:[#allocation158_spill] sm:$0xff] }
 0x2ed   : > { %v2566_v11 = vmul.f32 %v10580_v25, %v2531_v46  ;;  %v3303_v36 = vmul.f32 %v8696_v57, %v10696_v29  ;;  %v8732_v6 = vrot.slane %v4159_v50, %v10609_v13  ;;  %v3370_v8 = vmul.f32 %v3352_v41, %v10693_v9  ;;  %v10700_v9 = vld [vmem:[#allocation10_spill] sm:$0xff] }
 0x2ee   : > { %10694 = vst [vmem:[#allocation7_spill] sm:$0xff] %v8713_v47  ;;  %10695 = vst [vmem:[#allocation40_spill] sm:$0xff] %v8716_v27  ;;  %v3269_v0 = vadd.f32 %v3253_v7, %v3224_v39  ;;  %v3304_v27 = vmul.f32 %v8699_v54, %v10697_v51  ;;  %v2581_v46 = vadd.f32 %v2565_v22, %v8587_v38  ;;  %v3419_v39 = vrot.slane %v3369_v24, 1  ;;  %v10701_v22 = vld [vmem:[#allocation109_spill] sm:$0xff]  ;;  %v4365_v47 = vld [vmem:[#allocation2 + $0x40] sm:$0xff] }
 0x2ef   : > { %3655 = vrot.lane.b32.xlu1 %v8572_v44, %s4387_s11  ;;  %3467 = vrot.lane.b32.xlu0 %v3418_v3, %s4386_s13  ;;  %v2582_v30 = vadd.f32 %v2566_v11, %v8589_v43  ;;  %v2212_v44 = vpop.permute.xlu1 %2211  ;;  %v8738_v34 = vrot.slane %v4159_v50, %v10611_v21  ;;  %v3561_v38 = vmul.f32 %v10700_v9, %v3369_v24  ;;  %v10702_v24 = vld [vmem:[#allocation180_spill] sm:$0xff] }
 0x2f0   : > { %v8743_v16 = vsel %vm854_vm1, %v8632_v45, %v2212_v44  ;;  %v8748_v7 = vsel %vm854_vm1, %v2212_v44, %v8632_v45  ;;  %v3456_v41 = vpop.permute.xlu0 %3455  ;;  %v3562_v43 = vmul.f32 %v10701_v22, %v3370_v8  ;;  %v3319_v29 = vadd.f32 %v3303_v36, %v3268_v42  ;;  %v10703_v22 = vld [vmem:[#allocation181_spill] sm:$0xff] }
 0x2f1   : > { %10698 = vst [vmem:[#allocation52_spill] sm:$0xff] %v8743_v16  ;;  %10699 = vst [vmem:[#allocation21_spill] sm:$0xff] %v8748_v7  ;;  %v2254_v11 = vmul.f32 %v10546_v19, %v8748_v7  ;;  %v2255_v50 = vmul.f32 %v10547_v4, %v8743_v16  ;;  %v3320_v51 = vadd.f32 %v3304_v27, %v3269_v0 }
 0x2f2   : > { %v3471_v45 = vsel %vm854_vm1, %v3440_v62, %v3456_v41  ;;  %v3479_v44 = vsel %vm854_vm1, %v3456_v41, %v3440_v62  ;;  %v8764_v9 = vadd.f32 %v10702_v24, %v2581_v46  ;;  %v8767_v7 = vadd.f32 %v10703_v22, %v2582_v30  ;;  %v10705_v41 = vld [vmem:[#allocation187_spill] sm:$0xff] }
 0x2f3   : > { %3671 = vrot.lane.b32.xlu1 %v8604_v1, %s4387_s11  ;;  %3659 = vrot.lane.b32.xlu0 %v3416_v63, %s4387_s11  ;;  %v8769_v16 = vadd.f32 %v2254_v11, %v2181_v31  ;;  %v8771_v27 = vadd.f32 %v2255_v50, %v2182_v55  ;;  %v3500_v1 = vmul.f32 %v8732_v6, %v3479_v44  ;;  %v3100_v0 = vpop.permute.xlu1 %3099  ;;  %v10704_v63 = vld [vmem:[#allocation85_spill] sm:$0xff]  ;;  %v3421_v11 = vrot.slane %v3370_v8, 1 }
 0x2f4   : > { %v3501_v42 = vmul.f32 %v8738_v34, %v3471_v45  ;;  %v2711_v36 = vpop.permute.xlu0 %2710  ;;  %v3254_v62 = vmul.f32 %v4365_v47, %v8672_v20  ;;  %v3209_v46 = vmul.f32 %v8651_v59, %v10704_v63  ;;  %v3210_v30 = vmul.f32 %v8654_v28, %v10705_v41  ;;  %v10706_v63 = vld [vmem:[#allocation163_spill] sm:$0xff] }
 0x2f5   : > { %v3516_v24 = vadd.f32 %v3500_v1, %v3319_v29  ;;  %v3420_v55 = vsel %vm708_vm2, %v8664_v17, %v3419_v39  ;;  %v3611_v50 = vrot.slane %v3561_v38, 1  ;;  %v3613_v45 = vrot.slane %v3562_v43, 1  ;;  %v10707_v29 = vld [vmem:[#allocation165_spill] sm:$0xff]  ;;  %v10708_v39 = vld [vmem:[#allocation178_spill] sm:$0xff] }
 0x2f6   : > { %v3517_v31 = vadd.f32 %v3501_v42, %v3320_v51  ;;  %v3225_v47 = vadd.f32 %v3209_v46, %v8419_v14  ;;  %v3226_v44 = vadd.f32 %v3210_v30, %v8422_v40  ;;  %v10709_v38 = vrot.slane %v10708_v39, 1  ;;  %v10711_v40 = vld [vmem:[#allocation198_spill] sm:$0xff] }
 0x2f7   : > { %4251 = vrot.lane.b32.xlu1 %v8608_v58, %s4387_s11  ;;  %3675 = vrot.lane.b32.xlu0 %v3418_v3, %s4387_s11  ;;  %v3116_v22 = vpop.permute.xlu1 %3115  ;;  %v8788_v41 = vadd.f32 %v10706_v63, %v3516_v24  ;;  %v10712_v43 = vrot.slane %v10711_v40, 1  ;;  %v10714_v63 = vld [vmem:[#allocation87_spill] sm:$0xff] }
 0x2f8   : > { %v8791_v51 = vadd.f32 %v10707_v29, %v3517_v31  ;;  %v3128_v58 = vsel %vm1062_vm5, %v3100_v0, %v3116_v22  ;;  %v3136_v3 = vsel %vm1062_vm5, %v3116_v22, %v3100_v0  ;;  %v2727_v8 = vpop.permute.xlu0 %2726  ;;  %v8800_v14 = vsel %vm708_vm2, %v10709_v38, %v3611_v50 }
 0x2f9   : > { %10710 = vst [vmem:[#allocation95_spill] sm:$0xff] %v8800_v14  ;;  %v8805_v1 = vsel %vm708_vm2, %v10712_v43, %v3613_v45  ;;  %v3160_v42 = vmul.f32 %v10691_v23, %v3128_v58  ;;  %v3161_v46 = vmul.f32 %v10692_v37, %v3136_v3  ;;  %v2738_v30 = vsel %vm1062_vm5, %v2711_v36, %v2727_v8  ;;  %v4366_v45 = vld [vmem:[#allocation2 + $0x48] sm:$0xff]  ;;  %v10715_v58 = vld [vmem:[#allocation86_spill] sm:$0xff] }
 0x2fa   : > { %10713 = vst [vmem:[#allocation127_spill] sm:$0xff] %v8805_v1  ;;  %v2746_v0 = vsel %vm1062_vm5, %v2727_v8, %v2711_v36  ;;  %v2771_v24 = vmul.f32 %v10644_v61, %v2738_v30  ;;  %v3422_v50 = vsel %vm708_vm2, %v8664_v17, %v3421_v11  ;;  %v3255_v22 = vmul.f32 %v4366_v45, %v8675_v2 }
 0x2fb   : > { %3453 = vrot.lane.b32.xlu1 %v3420_v55, %s4386_s13  ;;  %v2772_v31 = vmul.f32 %v10645_v48, %v2746_v0  ;;  %v3213_v29 = vmul.f32 %v8651_v59, %v10714_v63  ;;  %v3214_v3 = vmul.f32 %v8654_v28, %v10715_v58  ;;  %v3176_v36 = vadd.f32 %v3160_v42, %v8638_v49  ;;  %v3442_v39 = vpop.permute.xlu1 %3441  ;;  %v10716_v42 = vld [vmem:[#allocation81_spill] sm:$0xff] }
 0x2fc   : > { %v3177_v8 = vadd.f32 %v3161_v46, %v8641_v5  ;;  %v2787_v38 = vadd.f32 %v2771_v24, %v8645_v60  ;;  %v2330_v43 = vpop.permute.xlu0 %2329  ;;  %v3270_v17 = vadd.f32 %v3254_v62, %v3225_v47  ;;  %v3271_v11 = vadd.f32 %v3255_v22, %v3226_v44  ;;  %v10717_v46 = vld [vmem:[#allocation82_spill] sm:$0xff]  ;;  %v10719_v47 = vld [vmem:[#allocation149_spill] sm:$0xff] }
 0x2fd   : > { %v2788_v40 = vadd.f32 %v2772_v31, %v8648_v35  ;;  %v3229_v30 = vadd.f32 %v3213_v29, %v3176_v36  ;;  %v3258_v45 = vmul.f32 %v8443_v26, %v8672_v20  ;;  %v3259_v49 = vmul.f32 %v8447_v15, %v8675_v2  ;;  %v10718_v35 = vld [vmem:[#allocation28_spill] sm:$0xff] }
 0x2fe   : > { %v3230_v0 = vadd.f32 %v3214_v3, %v3177_v8  ;;  %v3305_v5 = vmul.f32 %v8696_v57, %v10716_v42  ;;  %v3306_v60 = vmul.f32 %v8699_v54, %v10717_v46  ;;  %v3309_v62 = vmul.f32 %v8696_v57, %v10718_v35 }
 0x2ff   : > { %3469 = vrot.lane.b32.xlu1 %v3422_v50, %s4386_s13  ;;  %v3310_v44 = vmul.f32 %v8699_v54, %v10719_v47  ;;  %v3458_v24 = vpop.permute.xlu1 %3457  ;;  %v3274_v31 = vadd.f32 %v3258_v45, %v3229_v30 }
 0x300   : > { %v3275_v22 = vadd.f32 %v3259_v49, %v3230_v0  ;;  %v3321_v63 = vadd.f32 %v3305_v5, %v3270_v17  ;;  %v3322_v26 = vadd.f32 %v3306_v60, %v3271_v11  ;;  %v3472_v15 = vsel %vm854_vm1, %v3442_v39, %v3458_v24  ;;  %v2894_v58 = vpop.permute.xlu0 %2893  ;;  %v10720_v49 = vld [vmem:[#allocation167_spill] sm:$0xff] }
 0x301   : > { %v3480_v29 = vsel %vm854_vm1, %v3458_v24, %v3442_v39  ;;  %v3503_v36 = vmul.f32 %v8738_v34, %v3472_v15  ;;  %v8847_v8 = vadd.f32 %v3309_v62, %v3274_v31 }
 0x302   : > { %v3502_v3 = vmul.f32 %v8732_v6, %v3480_v29  ;;  %v8849_v42 = vadd.f32 %v3310_v44, %v3275_v22  ;;  %v10723_v29 = vld [vmem:[#allocation72_spill] sm:$0xff] }
 0x303   : > { %3661 = vrot.lane.b32.xlu1 %v3420_v55, %s4387_s11  ;;  %v3519_v17 = vadd.f32 %v3503_v36, %v3322_v26  ;;  %v2713_v11 = vpop.permute.xlu1 %2712  ;;  %v10721_v55 = vld [vmem:[#allocation168_spill] sm:$0xff] }
 0x304   : > { %v3518_v30 = vadd.f32 %v3502_v3, %v3321_v63  ;;  %v2910_v0 = vpop.permute.xlu0 %2909  ;;  %v10722_v26 = vld [vmem:[#allocation12_spill] sm:$0xff]  ;;  %v8878_v3 = vld [vmem:[#allocation2 + $0x90] sm:$0xff] }
 0x305   : > { %v2921_v45 = vsel %vm854_vm1, %v2894_v58, %v2910_v0  ;;  %v2929_v39 = vsel %vm854_vm1, %v2910_v0, %v2894_v58  ;;  %v8860_v46 = vadd.f32 %v10721_v55, %v3519_v17  ;;  %v2299_v36 = vmul.f32 %v8878_v3, %v10652_v52  ;;  %v10724_v0 = vld [vmem:[#allocation195_spill] sm:$0xff]  ;;  %v4161_v55 = vld [vmem:[%s9276_s3 + $0x32] ss:$8 sm:$0x3] }
 0x306   : > { %v8857_v5 = vadd.f32 %v10720_v49, %v3518_v30  ;;  %v2954_v60 = vmul.f32 %v10665_v12, %v2929_v39  ;;  %v2955_v35 = vmul.f32 %v10666_v53, %v2921_v45  ;;  %v8882_v30 = vld [vmem:[#allocation2 + $0x98] sm:$0xff]  ;;  %v2252_v45 = vmul.f32 %v10546_v19, %v10724_v0 }
 0x307   : > { %3677 = vrot.lane.b32.xlu1 %v3422_v50, %s4387_s11  ;;  %v2729_v62 = vpop.permute.xlu1 %2728  ;;  %v2300_v17 = vmul.f32 %v8882_v30, %v10653_v56  ;;  %v10725_v39 = vld [vmem:[#allocation194_spill] sm:$0xff] }
 0x308   : > { %v2970_v47 = vadd.f32 %v2954_v60, %v2787_v38  ;;  %v2971_v44 = vadd.f32 %v2955_v35, %v2788_v40  ;;  %v2739_v24 = vsel %vm1062_vm5, %v2713_v11, %v2729_v62  ;;  %v2747_v31 = vsel %vm1062_vm5, %v2729_v62, %v2713_v11  ;;  %v3648_v50 = vpop.permute.xlu0 %3647 }
 0x309   : > { %v2773_v22 = vmul.f32 %v10644_v61, %v2739_v24  ;;  %v2774_v63 = vmul.f32 %v10645_v48, %v2747_v31  ;;  %v2253_v49 = vmul.f32 %v10547_v4, %v10725_v39  ;;  %v2315_v35 = vadd.f32 %v2299_v36, %v8769_v16  ;;  %v10727_v24 = vld [vmem:[#allocation42_spill] sm:$0xff]  ;;  %v10728_v36 = vld [vmem:[#allocation83_spill] sm:$0xff] }
 0x30a   : > { %v8871_v15 = vadd.f32 %v10722_v26, %v2970_v47  ;;  %v8874_v58 = vadd.f32 %v10723_v29, %v2971_v44  ;;  %v2316_v19 = vadd.f32 %v2300_v17, %v8771_v27  ;;  %v10726_v47 = vld [vmem:[#allocation162_spill] sm:$0xff]  ;;  %v8917_v27 = vrot.slane %v4161_v55, %v10611_v21 }
 0x30b   : > { %v2789_v38 = vadd.f32 %v2773_v22, %v8764_v9  ;;  %v2790_v40 = vadd.f32 %v2774_v63, %v8767_v7  ;;  %v2344_v11 = vpop.permute.xlu1 %2343  ;;  %v2268_v44 = vadd.f32 %v2252_v45, %v10726_v47  ;;  %v8914_v63 = vrot.slane %v4161_v55, %v10609_v13 }
 0x30c   : > { %v8892_v7 = vsel %vm1062_vm5, %v2330_v43, %v2344_v11  ;;  %v8896_v9 = vsel %vm1062_vm5, %v2344_v11, %v2330_v43  ;;  %v3664_v60 = vpop.permute.xlu0 %3663  ;;  %v2269_v43 = vadd.f32 %v2253_v49, %v10727_v24  ;;  %v2297_v17 = vmul.f32 %v10728_v36, %v10652_v52  ;;  %v10729_v11 = vld [vmem:[#allocation84_spill] sm:$0xff] }
 0x30d   : > { %v2386_v4 = vmul.f32 %v10576_v32, %v8892_v7  ;;  %v2387_v62 = vmul.f32 %v10577_v18, %v8896_v9  ;;  %v3679_v26 = vsel %vm1062_vm5, %v3648_v50, %v3664_v60  ;;  %v2298_v45 = vmul.f32 %v10729_v11, %v10653_v56 }
 0x30e   : > { %v3687_v49 = vsel %vm1062_vm5, %v3664_v60, %v3648_v50  ;;  %v3708_v21 = vmul.f32 %v8914_v63, %v3679_v26 }
 0x30f   : > { %v8909_v31 = vadd.f32 %v2386_v4, %v2315_v35  ;;  %v8911_v22 = vadd.f32 %v2387_v62, %v2316_v19  ;;  %v2896_v16 = vpop.permute.xlu1 %2895  ;;  %v2313_v35 = vadd.f32 %v2297_v17, %v2268_v44  ;;  %v2314_v13 = vadd.f32 %v2298_v45, %v2269_v43  ;;  %v10730_v19 = vld [vmem:[#allocation19_spill] sm:$0xff]  ;;  %v10731_v62 = vld [vmem:[#allocation184_spill] sm:$0xff] }
 0x310   : > { %v2507_v29 = vpop.permute.xlu0 %2506  ;;  %v2384_v4 = vmul.f32 %v10576_v32, %v10730_v19  ;;  %v2385_v47 = vmul.f32 %v10577_v18, %v10731_v62  ;;  %v3709_v24 = vmul.f32 %v8917_v27, %v3687_v49  ;;  %v8945_v17 = vadd.f32 %v3708_v21, %v8788_v41  ;;  %v4369_v21 = vld [vmem:[#allocation2 + $0x50] sm:$0xff] }
 0x312   : > { %v2400_v43 = vadd.f32 %v2384_v4, %v2313_v35  ;;  %v2401_v26 = vadd.f32 %v2385_v47, %v2314_v13  ;;  %v10732_v35 = vld [vmem:[#allocation75_spill] sm:$0xff] }
 0x313   : > { %v3211_v13 = vmul.f32 %v8651_v59, %v10732_v35 }
 0x315   : > { %v2912_v55 = vpop.permute.xlu1 %2911  ;;  %v2523_v50 = vpop.permute.xlu0 %2522 }
 0x316   : > { %v2922_v52 = vsel %vm854_vm1, %v2896_v16, %v2912_v55  ;;  %v2930_v56 = vsel %vm854_vm1, %v2912_v55, %v2896_v16  ;;  %v2532_v32 = vsel %vm854_vm1, %v2507_v29, %v2523_v50  ;;  %v2540_v18 = vsel %vm854_vm1, %v2523_v50, %v2507_v29  ;;  %v10733_v29 = vld [vmem:[#allocation50_spill] sm:$0xff]  ;;  %v10734_v50 = vld [vmem:[#allocation51_spill] sm:$0xff] }
 0x317   : > { %v2956_v60 = vmul.f32 %v10665_v12, %v2930_v56  ;;  %v2957_v44 = vmul.f32 %v10666_v53, %v2922_v52  ;;  %v2568_v36 = vmul.f32 %v10580_v25, %v2532_v32  ;;  %v2567_v45 = vmul.f32 %v10579_v10, %v2540_v18  ;;  %v4370_v18 = vld [vmem:[#allocation2 + $0x58] sm:$0xff] }
 0x318   : > { %v8949_v55 = vadd.f32 %v3709_v24, %v8791_v51  ;;  %v10736_v51 = vld [vmem:[#allocation32_spill] sm:$0xff] }
 0x319   : > { %v2972_v11 = vadd.f32 %v2956_v60, %v2789_v38  ;;  %v2973_v16 = vadd.f32 %v2957_v44, %v2790_v40  ;;  %v3650_v49 = vpop.permute.xlu1 %3649  ;;  %v2584_v52 = vadd.f32 %v2568_v36, %v2401_v26  ;;  %v3102_v56 = vpop.permute.xlu0 %3101  ;;  %v2583_v4 = vadd.f32 %v2567_v45, %v2400_v43  ;;  %v10735_v38 = vld [vmem:[#allocation74_spill] sm:$0xff]  ;;  %v10737_v44 = vld [vmem:[#allocation7_spill] sm:$0xff]  ;;  %v10739_v45 = vld [vmem:[#allocation40_spill] sm:$0xff] }
 0x31a   : > { %v3212_v40 = vmul.f32 %v8654_v28, %v10735_v38  ;;  %v3256_v60 = vmul.f32 %v4369_v21, %v8672_v20  ;;  %v3227_v32 = vadd.f32 %v3211_v13, %v10737_v44  ;;  %v3756_v26 = vmul.f32 0.70710677, %v8945_v17 }
 0x31b   : > { %v8954_v47 = vadd.f32 %v10733_v29, %v2972_v11  ;;  %v8957_v41 = vadd.f32 %v10734_v50, %v2973_v16  ;;  %v8963_v24 = vadd.f32 %v10736_v51, %v2584_v52  ;;  %v3257_v36 = vmul.f32 %v4370_v18, %v8675_v2  ;;  %v10738_v11 = vld [vmem:[#allocation30_spill] sm:$0xff]  ;;  %v10741_v18 = vld [vmem:[#allocation63_spill] sm:$0xff] }
 0x31c   : > { %v8969_v16 = vadd.f32 %v10738_v11, %v2583_v4  ;;  %v3228_v35 = vadd.f32 %v3212_v40, %v10739_v45  ;;  %v3757_v29 = vmul.f32 0.70710677, %v8949_v55  ;;  %v10740_v40 = vld [vmem:[#allocation33_spill] sm:$0xff]  ;;  %v3216_v11 = vmul.f32 %v8654_v28, %v10741_v18 }
 0x31d   : > { %v3666_v43 = vpop.permute.xlu1 %3665  ;;  %v3118_v13 = vpop.permute.xlu0 %3117  ;;  %v3215_v44 = vmul.f32 %v8651_v59, %v10740_v40  ;;  %4299 = verf.f32 %v3756_v26  ;;  %v3272_v1 = vadd.f32 %v3256_v60, %v3227_v32  ;;  %v10742_v18 = vld [vmem:[#allocation57_spill] sm:$0xff] }
 0x31e   : > { %v3680_v50 = vsel %vm1062_vm5, %v3650_v49, %v3666_v43  ;;  %v3688_v52 = vsel %vm1062_vm5, %v3666_v43, %v3650_v49  ;;  %v3129_v51 = vsel %vm1062_vm5, %v3102_v56, %v3118_v13  ;;  %v3137_v4 = vsel %vm1062_vm5, %v3118_v13, %v3102_v56 }
 0x31f   : > { %v3710_v38 = vmul.f32 %v8914_v63, %v3680_v50  ;;  %v3711_v21 = vmul.f32 %v8917_v27, %v3688_v52  ;;  %v3162_v45 = vmul.f32 %v10691_v23, %v3129_v51  ;;  %v3163_v49 = vmul.f32 %v10692_v37, %v3137_v4  ;;  %v4371_v4 = vld [vmem:[#allocation2 + $0x70] sm:$0xff] }
 0x320   : > { %v3273_v14 = vadd.f32 %v3257_v36, %v3228_v35  ;;  %4301 = verf.f32 %v3757_v29  ;;  %v3307_v51 = vmul.f32 %v8696_v57, %v10742_v18  ;;  %v10745_v35 = vld [vmem:[#allocation16_spill] sm:$0xff] }
 0x321   : > { %v3726_v43 = vadd.f32 %v3710_v38, %v8857_v5  ;;  %v8991_v50 = vadd.f32 %v3711_v21, %v8860_v46  ;;  %v2509_v52 = vpop.permute.xlu1 %2508  ;;  %v3178_v56 = vadd.f32 %v3162_v45, %v8871_v15  ;;  %v3179_v13 = vadd.f32 %v3163_v49, %v8874_v58  ;;  %v3444_v40 = vpop.permute.xlu0 %3443  ;;  %v10743_v46 = vld [vmem:[#allocation4_spill] sm:$0xff]  ;;  %v4372_v15 = vld [vmem:[#allocation2 + $0x78] sm:$0xff]  ;;  %v10744_v21 = vld [vmem:[#allocation25_spill] sm:$0xff] }
 0x322   : > { %v3260_v5 = vmul.f32 %v4371_v4, %v8672_v20  ;;  %v3308_v38 = vmul.f32 %v8699_v54, %v10743_v46  ;;  %v3261_v58 = vmul.f32 %v4372_v15, %v8675_v2  ;;  %v3311_v36 = vmul.f32 %v8696_v57, %v10744_v21 }
 0x323   : > { %v3758_v62 = vmul.f32 0.70710677, %v3726_v43  ;;  %v3759_v26 = vmul.f32 0.70710677, %v8991_v50  ;;  %v3231_v60 = vadd.f32 %v3215_v44, %v3178_v56  ;;  %v3232_v32 = vadd.f32 %v3216_v11, %v3179_v13 }
 0x324   : > { %v3312_v29 = vmul.f32 %v8699_v54, %v10745_v35  ;;  %v3323_v49 = vadd.f32 %v3307_v51, %v3272_v1  ;;  %v3324_v44 = vadd.f32 %v3308_v38, %v3273_v14 }
 0x325   : > { %4303 = verf.f32 %v3758_v62  ;;  %v2525_v45 = vpop.permute.xlu1 %2524  ;;  %v3460_v11 = vpop.permute.xlu0 %3459  ;;  %v3276_v15 = vadd.f32 %v3260_v5, %v3231_v60  ;;  %v3277_v21 = vadd.f32 %v3261_v58, %v3232_v32 }
 0x326   : > { %v2533_v18 = vsel %vm854_vm1, %v2509_v52, %v2525_v45  ;;  %v2541_v4 = vsel %vm854_vm1, %v2525_v45, %v2509_v52  ;;  %4305 = verf.f32 %v3759_v26  ;;  %v3473_v46 = vsel %vm854_vm1, %v3444_v40, %v3460_v11 }
 0x327   : > { %v2569_v56 = vmul.f32 %v10579_v10, %v2541_v4  ;;  %v2570_v13 = vmul.f32 %v10580_v25, %v2533_v18  ;;  %v3481_v62 = vsel %vm854_vm1, %v3460_v11, %v3444_v40  ;;  %v3505_v51 = vmul.f32 %v8738_v34, %v3473_v46  ;;  %v4300_v40 = vpop.eup %4299  ;;  %v10746_v18 = vld [vmem:[#allocation93_spill] sm:$0xff] }
 0x328   : > { %v3504_v1 = vmul.f32 %v8732_v6, %v3481_v62  ;;  %v9022_v35 = vadd.f32 %v3311_v36, %v3276_v15  ;;  %v9024_v45 = vadd.f32 %v3312_v29, %v3277_v21  ;;  %v10747_v11 = vld [vmem:[#allocation121_spill] sm:$0xff]  ;;  %v3788_v36 = vadd.f32 1.0, %v4300_v40 }
 0x329   : > { %v2585_v14 = vadd.f32 %v2569_v56, %v8909_v31  ;;  %v2586_v52 = vadd.f32 %v2570_v13, %v8911_v22  ;;  %v9020_v26 = vpop.permute.xlu1 %3103  ;;  %v3521_v25 = vadd.f32 %v3505_v51, %v3324_v44  ;;  %v2715_v38 = vpop.permute.xlu0 %2714  ;;  %v10748_v31 = vld [vmem:[#allocation170_spill] sm:$0xff]  ;;  %v10749_v22 = vld [vmem:[#allocation44_spill] sm:$0xff]  ;;  %v3740_v46 = vmul.f32 0.5, %v8945_v17 }
 0x32a   : > { %v3520_v10 = vadd.f32 %v3504_v1, %v3323_v49  ;;  %v4302_v60 = vpop.eup %4301  ;;  %v3742_v62 = vmul.f32 0.5, %v3726_v43  ;;  %v3741_v1 = vmul.f32 0.5, %v8949_v55 }
 0x32b   : > { %v9027_v4 = vadd.f32 %v10746_v18, %v2585_v14  ;;  %v9030_v5 = vadd.f32 %v10747_v11, %v2586_v52  ;;  %v9036_v58 = vadd.f32 %v10749_v22, %v3521_v25  ;;  %v3789_v29 = vadd.f32 1.0, %v4302_v60 }
 0x32c   : > { %v9033_v32 = vadd.f32 %v10748_v31, %v3520_v10  ;;  %v3743_v52 = vmul.f32 0.5, %v8991_v50  ;;  %v3804_v40 = vmul.f32 %v3788_v36, %v3740_v46 }
 0x32d   : > { %v3120_v49 = vpop.permute.xlu1 %3119  ;;  %v2731_v44 = vpop.permute.xlu0 %2730  ;;  %v3805_v11 = vmul.f32 %v3789_v29, %v3741_v1 }
 0x32e   : > { %v2740_v15 = vsel %vm1062_vm5, %v2715_v38, %v2731_v44  ;;  %v2748_v21 = vsel %vm1062_vm5, %v2731_v44, %v2715_v38 }
 0x32f   : > { %v4304_v56 = vpop.eup %4303  ;;  %v2775_v17 = vmul.f32 %v10644_v61, %v2740_v15  ;;  %v2776_v55 = vmul.f32 %v10645_v48, %v2748_v21 }
 0x330   : > { %v4306_v13 = vpop.eup %4305  ;;  %v3790_v51 = vadd.f32 1.0, %v4304_v56 }
 0x331   : > { %v3446_v14 = vpop.permute.xlu1 %3445  ;;  %v3791_v10 = vadd.f32 1.0, %v4306_v13  ;;  %v2898_v25 = vpop.permute.xlu0 %2897  ;;  %v2791_v46 = vadd.f32 %v2775_v17, %v8969_v16  ;;  %v10753_v17 = vld [vmem:[#allocation27_spill] sm:$0xff] }
 0x332   : > { %v3806_v18 = vmul.f32 %v3790_v51, %v3742_v62  ;;  %v2792_v62 = vadd.f32 %v2776_v55, %v8963_v24  ;;  %v10752_v24 = vld [vmem:[#allocation94_spill] sm:$0xff] }
 0x333   : > { %v3807_v60 = vmul.f32 %v3791_v10, %v3743_v52 }
 0x334   : > { %v3820_v43 = vpack.c.bf16 %v3806_v18, %v3804_v40  ;;  %v10750_v18 = vld [vmem:[#allocation54_spill] sm:$0xff] }
 0x335   : > { %v3462_v31 = vpop.permute.xlu1 %3461  ;;  %v3821_v22 = vpack.c.bf16 %v3807_v60, %v3805_v11  ;;  %v2914_v50 = vpop.permute.xlu0 %2913  ;;  %v10751_v11 = vld [vmem:[#allocation55_spill] sm:$0xff] }
 0x336   : > { %v3474_v56 = vsel %vm854_vm1, %v3446_v14, %v3462_v31  ;;  %v3482_v38 = vsel %vm854_vm1, %v3462_v31, %v3446_v14  ;;  %v2923_v29 = vsel %vm854_vm1, %v2898_v25, %v2914_v50  ;;  %v2931_v13 = vsel %vm854_vm1, %v2914_v50, %v2898_v25 }
 0x337   : > { %v3506_v44 = vmul.f32 %v8732_v6, %v3482_v38  ;;  %v3507_v36 = vmul.f32 %v8738_v34, %v3474_v56  ;;  %3995 = vmatprep.mubr.bf16.mxu1 %v3821_v22  ;;  %v2958_v1 = vmul.f32 %v10665_v12, %v2931_v13  ;;  %v2959_v51 = vmul.f32 %v10666_v53, %v2923_v29 }
 0x338   : > { %3996 = vmatmul.mubr.bf16.vlgmr.msra.gmra.mrb[0].mxu1 %v3820_v43 }
 0x339   : > { %v3522_v15 = vadd.f32 %v3506_v44, %v8847_v8  ;;  %v3523_v21 = vadd.f32 %v3507_v36, %v8849_v42  ;;  %v2717_v14 = vpop.permute.xlu1 %2716  ;;  %v2974_v52 = vadd.f32 %v2958_v1, %v2791_v46  ;;  %v2975_v10 = vadd.f32 %v2959_v51, %v2792_v62  ;;  %v3652_v40 = vpop.permute.xlu0 %3651 }
 0x33a   : > { %v3130_v46 = vsel %vm1062_vm5, %v9020_v26, %v3120_v49  ;;  %v3138_v62 = vsel %vm1062_vm5, %v3120_v49, %v9020_v26 }
 0x33b   : > { %v9064_v25 = vadd.f32 %v10750_v18, %v3522_v15  ;;  %v9067_v16 = vadd.f32 %v10751_v11, %v3523_v21  ;;  %v3089_v60 = vadd.f32 %v10752_v24, %v2974_v52  ;;  %v3090_v55 = vadd.f32 %v10753_v17, %v2975_v10 }
 0x33d   : > { %v2733_v31 = vpop.permute.xlu1 %2732  ;;  %v3668_v43 = vpop.permute.xlu0 %3667 }
 0x33e   : > { %v2741_v8 = vsel %vm1062_vm5, %v2717_v14, %v2733_v31  ;;  %v3681_v42 = vsel %vm1062_vm5, %v3652_v40, %v3668_v43  ;;  %v3689_v22 = vsel %vm1062_vm5, %v3668_v43, %v3652_v40  ;;  %v2749_v56 = vsel %vm1062_vm5, %v2733_v31, %v2717_v14 }
 0x33f   : > { %v3713_v38 = vmul.f32 %v8917_v27, %v3689_v22  ;;  %v2777_v44 = vmul.f32 %v10644_v61, %v2741_v8  ;;  %v3712_v36 = vmul.f32 %v8914_v63, %v3681_v42  ;;  %v2778_v13 = vmul.f32 %v10645_v48, %v2749_v56  ;;  %v10755_v22 = vld [vmem:[#allocation52_spill] sm:$0xff] }
 0x340   : > { %v3264_v42 = vmul.f32 %v8878_v3, %v8672_v20  ;;  %v3220_v56 = vmul.f32 %v8654_v28, %v10755_v22  ;;  %v3265_v3 = vmul.f32 %v8882_v30, %v8675_v2  ;;  %v4374_v22 = vld [vmem:[#allocation2 + $0x88] sm:$0xff] }
 0x341   : > { %v2900_v50 = vpop.permute.xlu1 %2899  ;;  %v3106_v29 = vpop.permute.xlu0 %3105  ;;  %v9090_v1 = vadd.f32 %v3713_v38, %v9036_v58  ;;  %v2793_v15 = vadd.f32 %v2777_v44, %v9027_v4  ;;  %v9094_v61 = vadd.f32 %v3712_v36, %v9033_v32  ;;  %v2794_v52 = vadd.f32 %v2778_v13, %v9030_v5  ;;  %v10757_v36 = vld [vmem:[#allocation199_spill] sm:$0xff] }
 0x342   : > { %v3164_v4 = vmul.f32 %v10691_v23, %v3130_v46  ;;  %v3165_v32 = vmul.f32 %v10692_v37, %v3138_v62  ;;  %v3315_v13 = vmul.f32 %v8696_v57, %v8892_v7 }
 0x343   : > { %v3761_v18 = vmul.f32 0.70710677, %v9090_v1  ;;  %v3760_v31 = vmul.f32 0.70710677, %v9094_v61 }
 0x344   : > { %v3180_v62 = vadd.f32 %v3164_v4, %v8954_v47  ;;  %v3217_v4 = vmul.f32 %v8651_v59, %v10724_v0  ;;  %v10758_v0 = vld [vmem:[#allocation196_spill] sm:$0xff] }
 0x345   : > { %v2916_v51 = vpop.permute.xlu1 %2915  ;;  %v3122_v14 = vpop.permute.xlu0 %3121  ;;  %4307 = verf.f32 %v3761_v18  ;;  %v3218_v18 = vmul.f32 %v8654_v28, %v10725_v39 }
 0x346   : > { %v2924_v48 = vsel %vm854_vm1, %v2900_v50, %v2916_v51  ;;  %v2932_v21 = vsel %vm854_vm1, %v2916_v51, %v2900_v50  ;;  %v3131_v49 = vsel %vm1062_vm5, %v3106_v29, %v3122_v14  ;;  %v3139_v10 = vsel %vm1062_vm5, %v3122_v14, %v3106_v29  ;;  %v10756_v50 = vld [vmem:[#allocation177_spill] sm:$0xff] }
 0x347   : > { %v2960_v26 = vmul.f32 %v10665_v12, %v2932_v21  ;;  %v2961_v58 = vmul.f32 %v10666_v53, %v2924_v48  ;;  %v3166_v40 = vmul.f32 %v10691_v23, %v3131_v49  ;;  %v3167_v12 = vmul.f32 %v10692_v37, %v3139_v10  ;;  %v10754_v53 = vld [vmem:[#allocation21_spill] sm:$0xff] }
 0x348   : > { %v3219_v17 = vmul.f32 %v8651_v59, %v10754_v53  ;;  %4309 = verf.f32 %v3760_v31  ;;  %v3233_v31 = vadd.f32 %v3217_v4, %v3180_v62  ;;  %v3313_v62 = vmul.f32 %v8696_v57, %v10730_v19 }
 0x349   : > { %v2976_v11 = vadd.f32 %v2960_v26, %v2793_v15  ;;  %v2977_v5 = vadd.f32 %v2961_v58, %v2794_v52  ;;  %v3654_v24 = vpop.permute.xlu1 %3653  ;;  %v3182_v43 = vadd.f32 %v3166_v40, %v3089_v60  ;;  %v3448_v8 = vpop.permute.xlu0 %3447  ;;  %v3183_v38 = vadd.f32 %v3167_v12, %v3090_v55 }
 0x34a   : > { %v3316_v60 = vmul.f32 %v8699_v54, %v8896_v9  ;;  %v3181_v55 = vadd.f32 %v3165_v32, %v8957_v41 }
 0x34b   : > { %v9120_v44 = vadd.f32 %v10756_v50, %v2976_v11  ;;  %v9123_v29 = vadd.f32 %v10757_v36, %v2977_v5  ;;  %v3235_v46 = vadd.f32 %v3219_v17, %v3182_v43  ;;  %v3236_v51 = vadd.f32 %v3220_v56, %v3183_v38 }
 0x34c   : > { %v3234_v43 = vadd.f32 %v3218_v18, %v3181_v55  ;;  %v3263_v56 = vmul.f32 %v4374_v22, %v8675_v2  ;;  %v10760_v55 = vld [vmem:[#allocation184_spill] sm:$0xff] }
 0x34d   : > { %v3670_v15 = vpop.permute.xlu1 %3669  ;;  %v3464_v21 = vpop.permute.xlu0 %3463  ;;  %v3280_v9 = vadd.f32 %v3264_v42, %v3235_v46  ;;  %v3281_v58 = vadd.f32 %v3265_v3, %v3236_v51  ;;  %v3314_v51 = vmul.f32 %v8699_v54, %v10760_v55 }
 0x34e   : > { %v3682_v48 = vsel %vm1062_vm5, %v3654_v24, %v3670_v15  ;;  %v3690_v7 = vsel %vm1062_vm5, %v3670_v15, %v3654_v24  ;;  %v3475_v47 = vsel %vm854_vm1, %v3448_v8, %v3464_v21  ;;  %v3483_v41 = vsel %vm854_vm1, %v3464_v21, %v3448_v8 }
 0x34f   : > { %v3714_v14 = vmul.f32 %v8914_v63, %v3682_v48  ;;  %v3715_v30 = vmul.f32 %v8917_v27, %v3690_v7  ;;  %v3508_v52 = vmul.f32 %v8732_v6, %v3483_v41  ;;  %v3509_v26 = vmul.f32 %v8738_v34, %v3475_v47  ;;  %v4308_v38 = vpop.eup %4307 }
 0x350   : > { %v9145_v49 = vadd.f32 %v3315_v13, %v3280_v9  ;;  %v9155_v24 = vadd.f32 %v3316_v60, %v3281_v58  ;;  %v3279_v13 = vadd.f32 %v3263_v56, %v3234_v43  ;;  %v3793_v48 = vadd.f32 1.0, %v4308_v38 }
 0x351   : > { %v3730_v32 = vadd.f32 %v3714_v14, %v9064_v25  ;;  %v3731_v10 = vadd.f32 %v3715_v30, %v9067_v16  ;;  %v3108_v40 = vpop.permute.xlu1 %3107  ;;  %v3524_v11 = vadd.f32 %v3508_v52, %v9022_v35  ;;  %v3525_v5 = vadd.f32 %v3509_v26, %v9024_v45  ;;  %v4247_v12 = vpop.permute.xlu0 %4246  ;;  %v10759_v25 = vld [vmem:[#allocation197_spill] sm:$0xff]  ;;  %v4373_v35 = vld [vmem:[#allocation2 + $0x80] sm:$0xff] }
 0x352   : > { %v3262_v45 = vmul.f32 %v4373_v35, %v8672_v20  ;;  %v4310_v50 = vpop.eup %4309  ;;  %v4249_v60 = vunpack.i.h.bf16 %v4247_v12  ;;  %v4248_v46 = vunpack.i.l.bf16 %v4247_v12  ;;  %v3745_v7 = vmul.f32 0.5, %v9090_v1 }
 0x353   : > { %v3762_v53 = vmul.f32 0.70710677, %v3730_v32  ;;  %v3763_v17 = vmul.f32 0.70710677, %v3731_v10  ;;  %v9158_v8 = vadd.f32 %v10758_v0, %v3524_v11  ;;  %v9161_v16 = vadd.f32 %v10759_v25, %v3525_v5 }
 0x354   : > { %v3278_v36 = vadd.f32 %v3262_v45, %v3233_v31  ;;  %v3330_v9 = vadd.f32 %v3314_v51, %v3279_v13  ;;  %v3792_v14 = vadd.f32 1.0, %v4310_v50  ;;  %v3744_v30 = vmul.f32 0.5, %v9094_v61  ;;  %v10761_v13 = vld [vmem:[#allocation200_spill] sm:$0xff] }
 0x355   : > { %4311 = verf.f32 %v3762_v53  ;;  %v3124_v42 = vpop.permute.xlu1 %3123  ;;  %v3658_v39 = vpop.permute.xlu0 %3657  ;;  %v3746_v47 = vmul.f32 0.5, %v3730_v32  ;;  %v3747_v41 = vmul.f32 0.5, %v3731_v10  ;;  %v3193_v52 = vsel %vm854_vm1, %v4249_v60, %v4248_v46 }
 0x356   : > { %4313 = verf.f32 %v3763_v17  ;;  %v3329_v21 = vadd.f32 %v3313_v62, %v3278_v36  ;;  %v3132_v19 = vsel %vm1062_vm5, %v3108_v40, %v3124_v42  ;;  %v3809_v18 = vmul.f32 %v3793_v48, %v3745_v7 }
 0x357   : > { %v3192_v53 = vsel %vm854_vm1, %v4248_v46, %v4249_v60  ;;  %v3221_v17 = vmul.f32 %v8651_v59, %v3193_v52  ;;  %v3808_v43 = vmul.f32 %v3792_v14, %v3744_v30  ;;  %v3140_v0 = vsel %vm1062_vm5, %v3124_v42, %v3108_v40  ;;  %v10762_v59 = vld [vmem:[#allocation201_spill] sm:$0xff] }
 0x358   : > { %v3222_v51 = vmul.f32 %v8654_v28, %v3192_v53 }
 0x359   : > { %v3450_v3 = vpop.permute.xlu1 %3449  ;;  %v3674_v15 = vpop.permute.xlu0 %3673 }
 0x35a   : > { %v3684_v61 = vsel %vm1062_vm5, %v3658_v39, %v3674_v15  ;;  %v3692_v32 = vsel %vm1062_vm5, %v3674_v15, %v3658_v39  ;;  %v3168_v39 = vmul.f32 %v10691_v23, %v3132_v19  ;;  %v3169_v15 = vmul.f32 %v10692_v37, %v3140_v0 }
 0x35b   : > { %v3718_v56 = vmul.f32 %v8914_v63, %v3684_v61  ;;  %v3719_v38 = vmul.f32 %v8917_v27, %v3692_v32 }
 0x35c   : > { %v3184_v19 = vadd.f32 %v3168_v39, %v9120_v44 }
 0x35d   : > { %v3466_v26 = vpop.permute.xlu1 %3465  ;;  %v3452_v4 = vpop.permute.xlu0 %3451 }
 0x35e   : > { %v3476_v58 = vsel %vm854_vm1, %v3450_v3, %v3466_v26  ;;  %v3484_v1 = vsel %vm854_vm1, %v3466_v26, %v3450_v3 }
 0x35f   : > { %v4312_v11 = vpop.eup %4311  ;;  %v3510_v10 = vmul.f32 %v8732_v6, %v3484_v1  ;;  %v3511_v5 = vmul.f32 %v8738_v34, %v3476_v58  ;;  %v10763_v58 = vld [vmem:[#allocation202_spill] sm:$0xff]  ;;  %v10764_v1 = vld [vmem:[#allocation203_spill] sm:$0xff] }
 0x360   : > { %v4314_v12 = vpop.eup %4313  ;;  %v3794_v31 = vadd.f32 1.0, %v4312_v11  ;;  %v3185_v11 = vadd.f32 %v3169_v15, %v9123_v29 }
 0x361   : > { %v3526_v25 = vadd.f32 %v3510_v10, %v3329_v21  ;;  %v3527_v35 = vadd.f32 %v3511_v5, %v3330_v9  ;;  %v3656_v45 = vpop.permute.xlu1 %3655  ;;  %v3795_v22 = vadd.f32 1.0, %v4314_v12  ;;  %v3468_v50 = vpop.permute.xlu0 %3467 }
 0x362   : > { %v3810_v36 = vmul.f32 %v3794_v31, %v3746_v47  ;;  %v3477_v3 = vsel %vm854_vm1, %v3452_v4, %v3468_v50  ;;  %v3485_v40 = vsel %vm854_vm1, %v3468_v50, %v3452_v4  ;;  %v3238_v0 = vadd.f32 %v3222_v51, %v3185_v11 }
 0x363   : > { %v3641_v60 = vadd.f32 %v10761_v13, %v3526_v25  ;;  %v3642_v46 = vadd.f32 %v10762_v59, %v3527_v35  ;;  %v3512_v42 = vmul.f32 %v8732_v6, %v3485_v40  ;;  %v3513_v23 = vmul.f32 %v8738_v34, %v3477_v3 }
 0x364   : > { %v3811_v62 = vmul.f32 %v3795_v22, %v3747_v41  ;;  %v3822_v55 = vpack.c.bf16 %v3810_v36, %v3808_v43  ;;  %v4375_v43 = vld [vmem:[#allocation2 + $0x10] sm:$0xff] }
 0x365   : > { %v9203_v48 = vadd.f32 %v3718_v56, %v3641_v60  ;;  %v9205_v7 = vadd.f32 %v3719_v38, %v3642_v46  ;;  %v3672_v21 = vpop.permute.xlu1 %3671  ;;  %v3528_v9 = vadd.f32 %v3512_v42, %v9145_v49  ;;  %v3529_v14 = vadd.f32 %v3513_v23, %v9155_v24  ;;  %v3660_v41 = vpop.permute.xlu0 %3659 }
 0x366   : > { %v3683_v30 = vsel %vm1062_vm5, %v3656_v45, %v3672_v21  ;;  %v3691_v47 = vsel %vm1062_vm5, %v3672_v21, %v3656_v45  ;;  %v3823_v49 = vpack.c.bf16 %v3811_v62, %v3809_v18  ;;  %v3267_v35 = vmul.f32 %v4375_v43, %v8675_v2  ;;  %v10765_v21 = vld [vmem:[#allocation95_spill] sm:$0xff] }
 0x367   : > { %v3766_v28 = vmul.f32 0.70710677, %v9203_v48  ;;  %v3767_v37 = vmul.f32 0.70710677, %v9205_v7  ;;  %v3716_v52 = vmul.f32 %v8914_v63, %v3683_v30  ;;  %v3717_v26 = vmul.f32 %v8917_v27, %v3691_v47 }
 0x368   : > { %v3643_v24 = vadd.f32 %v10763_v58, %v3528_v9  ;;  %v3644_v4 = vadd.f32 %v10764_v1, %v3529_v14  ;;  %4003 = vmatprep.mubr.bf16.mxu1 %v3823_v49  ;;  %v3283_v36 = vadd.f32 %v3267_v35, %v3238_v0  ;;  %v10766_v14 = vld [vmem:[#allocation127_spill] sm:$0xff] }
 0x369   : > { %v3732_v61 = vadd.f32 %v3716_v52, %v9158_v8  ;;  %v3733_v32 = vadd.f32 %v3717_v26, %v9161_v16  ;;  %v4252_v10 = vpop.permute.xlu1 %4251  ;;  %4315 = verf.f32 %v3767_v37  ;;  %4004 = vmatmul.mubr.bf16.gmra.mrb[4].mxu1 %v3822_v55  ;;  %v3676_v44 = vpop.permute.xlu0 %3675  ;;  %v3266_v8 = vmul.f32 %v4375_v43, %v8672_v20 }
 0x36a   : > { %v4254_v5 = vunpack.i.h.bf16 %v4252_v10  ;;  %v4253_v12 = vunpack.i.l.bf16 %v4252_v10  ;;  %4317 = verf.f32 %v3766_v28  ;;  %v3237_v16 = vadd.f32 %v3221_v17, %v3184_v19 }
 0x36b   : > { %v3764_v53 = vmul.f32 0.70710677, %v3732_v61  ;;  %v3765_v31 = vmul.f32 0.70710677, %v3733_v32  ;;  %v3685_v45 = vsel %vm1062_vm5, %v3660_v41, %v3676_v44  ;;  %v3693_v22 = vsel %vm1062_vm5, %v3676_v44, %v3660_v41 }
 0x36c   : > { %v3288_v18 = vsel %vm1062_vm5, %v4253_v12, %v4254_v5  ;;  %v3289_v29 = vsel %vm1062_vm5, %v4254_v5, %v4253_v12  ;;  %v3720_v38 = vmul.f32 %v8914_v63, %v3685_v45  ;;  %v3721_v20 = vmul.f32 %v8917_v27, %v3693_v22 }
 0x36d   : > { %4319 = verf.f32 %v3764_v53  ;;  %v3454_v25 = vpop.permute.xlu1 %3453  ;;  %v3317_v39 = vmul.f32 %v8696_v57, %v3288_v18  ;;  %v3318_v56 = vmul.f32 %v8699_v54, %v3289_v29  ;;  %v3282_v50 = vadd.f32 %v3266_v8, %v3237_v16 }
 0x36e   : > { %4321 = verf.f32 %v3765_v31  ;;  %v3736_v40 = vadd.f32 %v3720_v38, %v3643_v24  ;;  %v3737_v42 = vadd.f32 %v3721_v20, %v3644_v4  ;;  %v3748_v28 = vmul.f32 0.5, %v3732_v61 }
 0x36f   : > { %v3333_v59 = vadd.f32 %v3317_v39, %v3282_v50  ;;  %v3334_v46 = vadd.f32 %v3318_v56, %v3283_v36  ;;  %v3751_v37 = vmul.f32 0.5, %v9205_v7  ;;  %v3749_v52 = vmul.f32 0.5, %v3733_v32  ;;  %v4162_v36 = vld [vmem:[%s9279_s6] ss:$0 sm:$0xff] }
 0x370   : > { %v3768_v26 = vmul.f32 0.70710677, %v3736_v40  ;;  %v3769_v19 = vmul.f32 0.70710677, %v3737_v42  ;;  %v3752_v8 = vmul.f32 0.5, %v3736_v40 }
 0x371   : > { %v3470_v17 = vpop.permute.xlu1 %3469 }
 0x372   : > { %v3478_v2 = vsel %vm854_vm1, %v3454_v25, %v3470_v17  ;;  %v3486_v13 = vsel %vm854_vm1, %v3470_v17, %v3454_v25  ;;  %4323 = verf.f32 %v3768_v26  ;;  %v3753_v25 = vmul.f32 0.5, %v3737_v42 }
 0x373   : > { %v4316_v60 = vpop.eup %4315  ;;  %v3514_v57 = vmul.f32 %v8732_v6, %v3486_v13  ;;  %v3515_v54 = vmul.f32 %v8738_v34, %v3478_v2  ;;  %v3750_v6 = vmul.f32 0.5, %v9203_v48  ;;  %4325 = verf.f32 %v3769_v19 }
 0x374   : > { %v4318_v3 = vpop.eup %4317  ;;  %v3799_v47 = vadd.f32 1.0, %v4316_v60 }
 0x375   : > { %v3530_v23 = vadd.f32 %v3514_v57, %v3333_v59  ;;  %v3531_v62 = vadd.f32 %v3515_v54, %v3334_v46  ;;  %v3662_v55 = vpop.permute.xlu1 %3661  ;;  %v3798_v51 = vadd.f32 1.0, %v4318_v3 }
 0x376   : > { %v3815_v48 = vmul.f32 %v3799_v47, %v3751_v37 }
 0x377   : > { %v4320_v15 = vpop.eup %4319  ;;  %v3645_v9 = vadd.f32 %v10765_v21, %v3530_v23  ;;  %v3646_v30 = vadd.f32 %v10766_v14, %v3531_v62  ;;  %v3814_v11 = vmul.f32 %v3798_v51, %v3750_v6 }
 0x378   : > { %v4322_v41 = vpop.eup %4321  ;;  %v3796_v34 = vadd.f32 1.0, %v4320_v15 }
 0x379   : > { %v3678_v49 = vpop.permute.xlu1 %3677  ;;  %v3797_v58 = vadd.f32 1.0, %v4322_v41 }
 0x37a   : > { %v3686_v24 = vsel %vm1062_vm5, %v3662_v55, %v3678_v49  ;;  %v3694_v1 = vsel %vm1062_vm5, %v3678_v49, %v3662_v55  ;;  %v3812_v4 = vmul.f32 %v3796_v34, %v3748_v28 }
 0x37b   : > { %v3722_v61 = vmul.f32 %v8914_v63, %v3686_v24  ;;  %v3723_v7 = vmul.f32 %v8917_v27, %v3694_v1  ;;  %v3813_v10 = vmul.f32 %v3797_v58, %v3749_v52 }
 0x37c   : > { %v3824_v5 = vpack.c.bf16 %v3814_v11, %v3812_v4  ;;  %v4324_v33 = vpop.eup %4323 }
 0x37d   : > { %v3738_v32 = vadd.f32 %v3722_v61, %v3645_v9  ;;  %v3739_v12 = vadd.f32 %v3723_v7, %v3646_v30  ;;  %v3825_v53 = vpack.c.bf16 %v3815_v48, %v3813_v10  ;;  %v4326_v18 = vpop.eup %4325  ;;  %v3800_v29 = vadd.f32 1.0, %v4324_v33 }
 0x37e   : > { %v3801_v43 = vadd.f32 1.0, %v4326_v18 }
 0x37f   : > { %v3770_v31 = vmul.f32 0.70710677, %v3738_v32  ;;  %v3771_v44 = vmul.f32 0.70710677, %v3739_v12  ;;  %4011 = vmatprep.mubr.bf16.mxu1 %v3825_v53  ;;  %v3754_v16 = vmul.f32 0.5, %v3738_v32  ;;  %v3755_v35 = vmul.f32 0.5, %v3739_v12 }
 0x380   : > { %4012 = vmatmul.mubr.bf16.gmra.mrb[8].mxu1 %v3824_v5  ;;  %v3816_v22 = vmul.f32 %v3800_v29, %v3752_v8  ;;  %v3817_v56 = vmul.f32 %v3801_v43, %v3753_v25 }
 0x381   : > { %4327 = verf.f32 %v3770_v31 }
 0x382   : > { %4329 = verf.f32 %v3771_v44 }
 0x38b   : > { %v4328_v63 = vpop.eup %4327 }
 0x38c   : > { %v4330_v27 = vpop.eup %4329  ;;  %v3802_v0 = vadd.f32 1.0, %v4328_v63 }
 0x38d   : > { %v3803_v45 = vadd.f32 1.0, %v4330_v27 }
 0x38e   : > { %v3818_v39 = vmul.f32 %v3802_v0, %v3754_v16 }
 0x38f   : > { %v3819_v38 = vmul.f32 %v3803_v45, %v3755_v35 }
 0x390   : > { %v3826_v20 = vpack.c.bf16 %v3818_v39, %v3816_v22 }
 0x391   : > { %v3827_v17 = vpack.c.bf16 %v3819_v38, %v3817_v56 }
 0x393   : > { %4019 = vmatprep.mubr.bf16.mxu1 %v3827_v17 }
 0x394   : > { %4020 = vmatmul.mubr.bf16.gmra.mrb[12].mxu1 %v3826_v20 }
 0x40b   : > { %v4199_v50 = vpop.f32.mrb[0].mxu1 }
 0x40c   : > { %v4200_v2 = vpop.f32.mrb[1].mxu1 }
 0x40d   : > { %v4201_v13 = vadd.f32 %v4200_v2, %v4199_v50  ;;  %v4202_v60 = vpop.f32.mrb[2].mxu1 }
 0x40e   : > { %v4203_v59 = vpop.f32.mrb[3].mxu1 }
 0x40f   : > { %v3998_v46 = vadd.f32 %v4201_v13, %v4162_v36  ;;  %v4204_v57 = vadd.f32 %v4203_v59, %v4202_v60 }
 0x411   : > { %4028 = vst [vmem:[%s9260_s19] sm:$0xff] %v3998_v46  ;;  %v4001_v54 = vadd.f32 %v4204_v57, %v4162_v36 }
 0x413   : > { %4029 = vst [vmem:[%s9260_s19 + $0x8] sm:$0xff] %v4001_v54 }
 0x43c   : > { %v4205_v3 = vpop.f32.mrb[4].mxu1 }
 0x43d   : > { %v4206_v40 = vpop.f32.mrb[5].mxu1 }
 0x43e   : > { %v4207_v42 = vadd.f32 %v4206_v40, %v4205_v3  ;;  %v4208_v23 = vpop.f32.mrb[6].mxu1 }
 0x43f   : > { %v4209_v62 = vpop.f32.mrb[7].mxu1 }
 0x440   : > { %v4006_v55 = vadd.f32 %v4207_v42, %v4162_v36  ;;  %v4210_v51 = vadd.f32 %v4209_v62, %v4208_v23 }
 0x442   : > { %4030 = vst [vmem:[%s9260_s19 + $0x10] sm:$0xff] %v4006_v55  ;;  %v4009_v15 = vadd.f32 %v4210_v51, %v4162_v36 }
 0x444   : > { %4031 = vst [vmem:[%s9260_s19 + $0x18] sm:$0xff] %v4009_v15 }
 0x453   : > { %v4211_v21 = vpop.f32.mrb[8].mxu1 }
 0x454   : > { %v4212_v9 = vpop.f32.mrb[9].mxu1 }
 0x455   : > { %v4213_v14 = vadd.f32 %v4212_v9, %v4211_v21  ;;  %v4214_v30 = vpop.f32.mrb[10].mxu1 }
 0x456   : > { %v4215_v47 = vpop.f32.mrb[11].mxu1 }
 0x457   : > { %v4014_v41 = vadd.f32 %v4213_v14, %v4162_v36  ;;  %v4216_v28 = vadd.f32 %v4215_v47, %v4214_v30 }
 0x459   : > { %4032 = vst [vmem:[%s9260_s19 + $0x20] sm:$0xff] %v4014_v41  ;;  %v4017_v37 = vadd.f32 %v4216_v28, %v4162_v36 }
 0x45b   : > { %4033 = vst [vmem:[%s9260_s19 + $0x28] sm:$0xff] %v4017_v37 }
 0x467   : > { %v4217_v6 = vpop.f32.mrb[12].mxu1 }
 0x468   : > { %v4218_v34 = vpop.f32.mrb[13].mxu1 }
 0x469   : > { %v4219_v52 = vadd.f32 %v4218_v34, %v4217_v6  ;;  %v4220_v26 = vpop.f32.mrb[14].mxu1 }
 0x46a   : > { %v4221_v19 = vpop.f32.mrb[15].mxu1 }
 0x46b   : > { %v4022_v49 = vadd.f32 %v4219_v52, %v4162_v36  ;;  %v4222_v58 = vadd.f32 %v4221_v19, %v4220_v26 }
 0x46d   : > { %4034 = vst [vmem:[%s9260_s19 + $0x30] sm:$0xff] %v4022_v49  ;;  %v4025_v24 = vadd.f32 %v4222_v58, %v4162_v36 }
 0x46f   : > { %4035 = vst [vmem:[%s9260_s19 + $0x38] sm:$0xff] %v4025_v24 }
 0x470 PF: > { %s17_s24 = sadd.s32 1, %s4382_s24  }
 0x471   : > { %p14_p4 = scmp.ge.s32.totalorder %s17_s24, 4  }
 0x473   :  { %16 = sbr.rel (!%p14_p4) target bundleno = 1 (0x1), region = 104 }

</bundles_post_ra>
